<compile_context>
chip_gen: v6e
topology: v6e:2x2x1
jax: 0.10.0
libtpu: 0.0.40
codegen_flags: <defaults>
</compile_context>

<pallas_src>
import math

import jax
import jax.numpy as jnp
from jax.experimental import pallas as pl
from jax.experimental.pallas import tpu as pltpu


# ----------------------------------------------------------------------------
# helpers (glue, plain JAX)
# ----------------------------------------------------------------------------
def lengths_to_padding_mask(lengths, max_length):
    """(B,) lengths -> (B, T) bool mask, True = padding."""
    return jnp.arange(max_length)[None, :] >= lengths[:, None]


def padding_mask_to_lengths(padding_mask):
    """(B, 1, T') padding mask -> (B,) valid lengths (intended semantics)."""
    # TODO(synk): reference padding_mask_to_lengths has a free-variable bug and a
    # 3-D torch.where indexing quirk; implemented with the intended semantics.
    return jnp.sum(jnp.logical_not(padding_mask[:, 0, :]), axis=-1).astype(jnp.int32)


def _gelu(x):
    # exact (erf) GELU, matching torch.nn.GELU() default
    return 0.5 * x * (1.0 + jax.lax.erf(x * (1.0 / math.sqrt(2.0))))


def _pick_tile(extent, max_tile):
    """Full extent for small inputs (always legal), else a multiple-of-8 tile."""
    if extent <= max_tile:
        return extent
    return max_tile  # max_tile is chosen as a multiple of 8


# ----------------------------------------------------------------------------
# DepthwiseSeparableConv1dSubsampling10  (Pallas kernel)
#   depthwise Conv1d(k=15, s=10, p=3, groups=Cin) -> ReLU
#   pointwise Conv1d(Cin -> D, k=1)               -> ReLU
#   LayerNorm(D)   (Dropout is identity at inference)
# ----------------------------------------------------------------------------
def _downsample_kernel(xlo_ref, xhi_ref, wlo_ref, whi_ref, wpw_ref, g_ref, b_ref,
                       o_ref):
    # xlo_ref: (1, 10, Tt, Cin) taps 0..9 of window t (phase-split view, no im2col)
    # xhi_ref: (1, 5,  Tt, Cin) taps 10..14 (window rows t+1; halo prebuilt in XLA)
    # wlo_ref: (10,1,Cin)  whi_ref: (5,1,Cin)  wpw_ref: (Cin, D)
    acc = xlo_ref[0, 0] * wlo_ref[0]
    for r in range(1, 10):
        acc = acc + xlo_ref[0, r] * wlo_ref[r]
    for r in range(5):
        acc = acc + xhi_ref[0, r] * whi_ref[r]
    dw = jnp.maximum(acc, 0.0)                                       # ReLU
    pw = jnp.dot(dw, wpw_ref[...], preferred_element_type=jnp.float32)
    pw = jnp.maximum(pw, 0.0)                                        # ReLU
    mu = jnp.mean(pw, axis=-1, keepdims=True)
    var = jnp.mean(jnp.square(pw - mu), axis=-1, keepdims=True)
    y = (pw - mu) * jax.lax.rsqrt(var + 1e-5) * g_ref[...] + b_ref[...]
    # TODO(synk): nn.Dropout(p=0.1) omitted (identity at inference).
    o_ref[0] = y


def downsample_pallas(x, w_dw, w_pw_t, ln_g, ln_b, *, time_tile=512):
    B, T, Cin = x.shape
    K, stride, pad = 15, 10, 3
    Tp = (T + 2 * pad - K) // stride + 1
    D = w_pw_t.shape[1]

    # phase-split views of the zero-padded input (replaces the 15x im2col):
    #   out[t] uses x_pad[10t + k]; k = r      (r<10) -> x_ph[t,   r]
    #                               k = 10 + r (r<5)  -> x_ph[t+1, r]
    need = stride * (Tp + 1)
    usable = min(T, need - pad)
    x_pad = jnp.pad(x[:, :usable, :], ((0, 0), (pad, need - pad - usable), (0, 0)))
    x_ph = x_pad.reshape(B, Tp + 1, stride, Cin)
    x_lo = jnp.transpose(x_ph[:, :Tp], (0, 2, 1, 3))                 # (B,10,Tp,Cin)
    x_hi = jnp.transpose(x_ph[:, 1:, :5, :], (0, 2, 1, 3))           # (B, 5,Tp,Cin)
    w_lo, w_hi = w_dw[:10], w_dw[10:]

    tile = _pick_tile(Tp, time_tile)
    grid = (B, pl.cdiv(Tp, tile))
    return pl.pallas_call(
        _downsample_kernel,
        out_shape=jax.ShapeDtypeStruct((B, Tp, D), jnp.float32),
        grid=grid,
        in_specs=[
            pl.BlockSpec((1, 10, tile, Cin), lambda b, t: (b, 0, t, 0)),
            pl.BlockSpec((1, 5, tile, Cin), lambda b, t: (b, 0, t, 0)),
            pl.BlockSpec((10, 1, Cin), lambda b, t: (0, 0, 0)),
            pl.BlockSpec((5, 1, Cin), lambda b, t: (0, 0, 0)),
            pl.BlockSpec((Cin, D), lambda b, t: (0, 0)),
            pl.BlockSpec((1, D), lambda b, t: (0, 0)),
            pl.BlockSpec((1, D), lambda b, t: (0, 0)),
        ],
        out_specs=pl.BlockSpec((1, tile, D), lambda b, t: (b, t, 0)),
        compiler_params=pltpu.CompilerParams(
            dimension_semantics=("parallel", "parallel")),
    )(x_lo, x_hi, w_lo, w_hi, w_pw_t, ln_g, ln_b)


# ----------------------------------------------------------------------------
# OneDimTransposedConvolutionUpsampleLayer  (Pallas kernel)
#   ConvTranspose1d(k=3, s=2, p=1, op=1) -> GELU
#   ConvTranspose1d(k=5, s=5, p=0)       -> GELU
#   LayerNorm(D) -> GELU
# ----------------------------------------------------------------------------
def _upsample_kernel(x_ref, xn_ref, w1a_ref, w1b_ref, b1_ref, w2_ref, b2_ref,
                     g_ref, be_ref, o_ref):
    D = b1_ref.shape[-1]
    x = x_ref[0]                                     # (n, D)
    xn = xn_ref[0]                                   # (n, D) == x[s+1] (0 past end)
    b1 = b1_ref[...]
    # ConvTranspose1d #1: taps fused along N (one (n,D)@(D,2D) + one (n,D)@(D,D))
    #   h[2s]   = gelu(x[s]@W1[:,:,1] + b1)
    #   h[2s+1] = gelu(x[s]@W1[:,:,2] + x[s+1]@W1[:,:,0] + b1)
    a = jnp.dot(x, w1a_ref[...], preferred_element_type=jnp.float32)   # [tap1 | tap2]
    c = jnp.dot(xn, w1b_ref[...], preferred_element_type=jnp.float32)  # tap0 on x[s+1]
    h_even = _gelu(a[:, :D] + b1)
    h_odd = _gelu(a[:, D:] + c + b1)
    b2 = b2_ref[...]
    gam = g_ref[...]
    bet = be_ref[...]
    # ConvTranspose1d #2 (stride==kernel==5): five taps fused along N -> (n, 5D)
    y_even = jnp.dot(h_even, w2_ref[...], preferred_element_type=jnp.float32)
    y_odd = jnp.dot(h_odd, w2_ref[...], preferred_element_type=jnp.float32)
    # final time index t = 10*s + p with phase p = 5*j + k; output is written
    # lane-dense: lane group p of the (1, n, 10*D) block (unmasked vst).
    for j, y in enumerate((y_even, y_odd)):
        for k in range(5):
            p = 5 * j + k
            z = _gelu(y[:, k * D:(k + 1) * D] + b2)
            mu = jnp.mean(z, axis=-1, keepdims=True)
            var = jnp.mean(jnp.square(z - mu), axis=-1, keepdims=True)
            z = _gelu((z - mu) * jax.lax.rsqrt(var + 1e-5) * gam + bet)
            o_ref[0, :, p * D:(p + 1) * D] = z


def upsample_pallas(x, w1, b1, w2, b2, ln_g, ln_b, *, time_tile=256):
    B, Tp, D = x.shape
    # prebuilt x[s+1] view (zero past the end) -> no halo across time tiles
    x_next = jnp.concatenate([x[:, 1:, :], jnp.zeros((B, 1, D), x.dtype)], axis=1)
    # fuse transposed-conv taps along N for wide MXU matmuls
    w1a = jnp.concatenate([w1[1], w1[2]], axis=-1)                    # (D, 2D)
    w1b = w1[0]                                                       # (D, D)
    w2cat = jnp.concatenate([w2[k] for k in range(5)], axis=-1)       # (D, 5D)

    tile = _pick_tile(Tp, time_tile)
    grid = (B, pl.cdiv(Tp, tile))
    out = pl.pallas_call(
        _upsample_kernel,
        out_shape=jax.ShapeDtypeStruct((B, Tp, 10 * D), jnp.float32),
        grid=grid,
        in_specs=[
            pl.BlockSpec((1, tile, D), lambda b, t: (b, t, 0)),
            pl.BlockSpec((1, tile, D), lambda b, t: (b, t, 0)),
            pl.BlockSpec((D, 2 * D), lambda b, t: (0, 0)),
            pl.BlockSpec((D, D), lambda b, t: (0, 0)),
            pl.BlockSpec((1, D), lambda b, t: (0, 0)),
            pl.BlockSpec((D, 5 * D), lambda b, t: (0, 0)),
            pl.BlockSpec((1, D), lambda b, t: (0, 0)),
            pl.BlockSpec((1, D), lambda b, t: (0, 0)),
            pl.BlockSpec((1, D), lambda b, t: (0, 0)),
        ],
        out_specs=pl.BlockSpec((1, tile, 10 * D), lambda b, t: (b, t, 0)),
        compiler_params=pltpu.CompilerParams(
            dimension_semantics=("parallel", "parallel")),
    )(x, x_next, w1a, w1b, b1, w2cat, b2, ln_g, ln_b)
    # contiguous (row-major) reshape: (B, Tp, 10*D) -> (B, 10*Tp, D); free in HBM
    return out.reshape(B, 10 * Tp, D)


# ----------------------------------------------------------------------------
# Backbone.forward
# ----------------------------------------------------------------------------
def backbone_forward(x, x_len, params):
    B, T, _ = x.shape
    x_padding_mask = lengths_to_padding_mask(x_len, T)[:, None, :]        # (B,1,T)

    # downsample (Pallas)
    x_ds = downsample_pallas(x, params["dw_w"], params["pw_w"],
                             params["ds_ln_g"], params["ds_ln_b"])        # (B, T', D)
    x_padding_mask = x_padding_mask[:, :, :-14:9]                         # mask subsample
    x_downsample_len = padding_mask_to_lengths(x_padding_mask)            # (B,)
    del x_downsample_len  # only consumed by the (skipped) encoder

    # encoder
    # TODO(synk): torchaudio.models.Conformer (6-layer) source not provided in the
    # reference; treated as identity pass-through here.
    x_down = x_ds

    # upsample (Pallas) -- applied to the downsampled features, as in the reference
    x_up = upsample_pallas(x_ds, params["up_w1"], params["up_b1"],
                           params["up_w2"], params["up_b2"],
                           params["up_ln_g"], params["up_ln_b"])          # (B, 10*T', D)
    return x_down, x_up


def init_params(key, cin, d):
    ks = jax.random.split(key, 6)
    return {
        "dw_w": 0.1 * jax.random.normal(ks[0], (15, 1, cin), jnp.float32),
        "pw_w": (1.0 / math.sqrt(cin)) * jax.random.normal(ks[1], (cin, d), jnp.float32),
        "ds_ln_g": jnp.ones((1, d), jnp.float32),
        "ds_ln_b": jnp.zeros((1, d), jnp.float32),
        "up_w1": (1.0 / math.sqrt(3 * d)) * jax.random.normal(ks[2], (3, d, d), jnp.float32),
        "up_b1": 0.01 * jax.random.normal(ks[3], (1, d), jnp.float32),
        "up_w2": (1.0 / math.sqrt(5 * d)) * jax.random.normal(ks[4], (5, d, d), jnp.float32),
        "up_b2": 0.01 * jax.random.normal(ks[5], (1, d), jnp.float32),
        "up_ln_g": jnp.ones((1, d), jnp.float32),
        "up_ln_b": jnp.zeros((1, d), jnp.float32),
    }


# ----------------------------------------------------------------------------
# pure-JAX references (small-shape correctness check)
# ----------------------------------------------------------------------------
def _ref_downsample(x, w_dw, w_pw_t, g, b):
    B, T, Cin = x.shape
    K, s, pad = 15, 10, 3
    Tp = (T + 2 * pad - K) // s + 1
    xp = jnp.pad(x, ((0, 0), (pad, pad), (0, 0)))
    rows = []
    for t in range(Tp):
        win = xp[:, t * s:t * s + K, :]                               # (B,K,Cin)
        rows.append(jnp.sum(win * w_dw[None, :, 0, :], axis=1))       # depthwise
    dw = jnp.maximum(jnp.stack(rows, axis=1), 0.0)
    pw = jnp.maximum(dw @ w_pw_t, 0.0)
    mu = jnp.mean(pw, -1, keepdims=True)
    var = jnp.mean((pw - mu) ** 2, -1, keepdims=True)
    return (pw - mu) * jax.lax.rsqrt(var + 1e-5) * g + b


def _ref_upsample(x, w1, b1, w2, b2, g, be):
    B, Tp, D = x.shape
    h = jnp.zeros((B, 2 * Tp, D), jnp.float32)
    for s in range(Tp):
        for k in range(3):
            t = 2 * s + k - 1
            if 0 <= t < 2 * Tp:
                h = h.at[:, t, :].add(x[:, s, :] @ w1[k])
    h = _gelu(h + b1)
    y = jnp.zeros((B, 10 * Tp, D), jnp.float32)
    for s in range(2 * Tp):
        for k in range(5):
            y = y.at[:, 5 * s + k, :].set(h[:, s, :] @ w2[k])
    y = _gelu(y + b2)
    mu = jnp.mean(y, -1, keepdims=True)
    var = jnp.mean((y - mu) ** 2, -1, keepdims=True)
    return _gelu((y - mu) * jax.lax.rsqrt(var + 1e-5) * g + be)


if __name__ == "__main__":
    key = jax.random.PRNGKey(0)
    k_x, k_p = jax.random.split(key)

    B, T, CIN, D = 2, 120, 23, 128       # small shapes; input_feat_dim=23 as in the module
    x = jax.random.normal(k_x, (B, T, CIN), jnp.float32)
    x_len = jnp.array([120, 85], jnp.int32)
    params = init_params(k_p, CIN, D)

    fwd = jax.jit(lambda a, b: backbone_forward(a, b, params))
    x_down, x_up = fwd(x, x_len)
    jax.block_until_ready((x_down, x_up))

    Tp = (T + 6 - 15) // 10 + 1          # = 12
    assert x_down.shape == (B, Tp, D), x_down.shape
    assert x_up.shape == (B, 10 * Tp, D), x_up.shape
    assert bool(jnp.all(jnp.isfinite(x_down))) and bool(jnp.all(jnp.isfinite(x_up)))

    # correctness vs. pure-JAX reference (loose tol: default TPU matmul precision)
    ref_down = _ref_downsample(x, params["dw_w"], params["pw_w"],
                               params["ds_ln_g"], params["ds_ln_b"])
    ref_up = _ref_upsample(ref_down, params["up_w1"], params["up_b1"],
                           params["up_w2"], params["up_b2"],
                           params["up_ln_g"], params["up_ln_b"])
    err_d = float(jnp.max(jnp.abs(x_down - ref_down)))
    err_u = float(jnp.max(jnp.abs(x_up - ref_up)))
    assert err_d < 5e-2, ("downsample mismatch", err_d)
    assert err_u < 5e-2, ("upsample mismatch", err_u)

    print("KERNEL_OK")
</pallas_src>

<mosaic_0001>
module attributes {stable_mosaic.version = 11 : i64} {
  func.func @_downsample_kernel(%arg0: i32, %arg1: i32, %arg2: memref<1x10x12x23xf32, #tpu.memory_space<vmem>>, %arg3: memref<1x5x12x23xf32, #tpu.memory_space<vmem>>, %arg4: memref<10x1x23xf32, #tpu.memory_space<vmem>>, %arg5: memref<5x1x23xf32, #tpu.memory_space<vmem>>, %arg6: memref<23x128xf32, #tpu.memory_space<vmem>>, %arg7: memref<1x128xf32, #tpu.memory_space<vmem>>, %arg8: memref<1x128xf32, #tpu.memory_space<vmem>>, %arg9: memref<1x12x128xf32, #tpu.memory_space<vmem>>) attributes {dimension_semantics = [#tpu.dimension_semantics<parallel>, #tpu.dimension_semantics<parallel>], iteration_bounds = array<i64: 2, 1>, scalar_prefetch = 0 : i64, scratch_operands = 0 : i64, tpu.core_type = #tpu.core_type<tc>, window_params = [{transform_indices = @transform_0, window_bounds = array<i64: 1, 10, 12, 23>}, {transform_indices = @transform_1, window_bounds = array<i64: 1, 5, 12, 23>}, {pipeline_mode = #tpu.pipeline_mode<synchronous>, transform_indices = @transform_2, window_bounds = array<i64: 10, 1, 23>}, {pipeline_mode = #tpu.pipeline_mode<synchronous>, transform_indices = @transform_3, window_bounds = array<i64: 5, 1, 23>}, {pipeline_mode = #tpu.pipeline_mode<synchronous>, transform_indices = @transform_4, window_bounds = array<i64: 23, 128>}, {pipeline_mode = #tpu.pipeline_mode<synchronous>, transform_indices = @transform_5, window_bounds = array<i64: 1, 128>}, {pipeline_mode = #tpu.pipeline_mode<synchronous>, transform_indices = @transform_6, window_bounds = array<i64: 1, 128>}, {transform_indices = @transform_7, window_bounds = array<i64: 1, 12, 128>}]} {
    %c0 = arith.constant 0 : index
    %c0_0 = arith.constant 0 : index
    %c0_1 = arith.constant 0 : index
    %c0_2 = arith.constant 0 : index
    %0 = vector.load %arg2[%c0, %c0_0, %c0_1, %c0_2] : memref<1x10x12x23xf32, #tpu.memory_space<vmem>>, vector<1x1x12x23xf32>
    %1 = vector.shape_cast %0 : vector<1x1x12x23xf32> to vector<12x23xf32>
    %c0_3 = arith.constant 0 : index
    %c0_4 = arith.constant 0 : index
    %c0_5 = arith.constant 0 : index
    %2 = vector.load %arg4[%c0_3, %c0_4, %c0_5] : memref<10x1x23xf32, #tpu.memory_space<vmem>>, vector<1x1x23xf32>
    %3 = vector.shape_cast %2 : vector<1x1x23xf32> to vector<1x23xf32>
    %4 = vector.broadcast %3 : vector<1x23xf32> to vector<12x23xf32>
    %5 = arith.mulf %1, %4 : vector<12x23xf32>
    %c0_6 = arith.constant 0 : index
    %c1 = arith.constant 1 : index
    %c0_7 = arith.constant 0 : index
    %c0_8 = arith.constant 0 : index
    %6 = vector.load %arg2[%c0_6, %c1, %c0_7, %c0_8] : memref<1x10x12x23xf32, #tpu.memory_space<vmem>>, vector<1x1x12x23xf32>
    %7 = vector.shape_cast %6 : vector<1x1x12x23xf32> to vector<12x23xf32>
    %c1_9 = arith.constant 1 : index
    %c0_10 = arith.constant 0 : index
    %c0_11 = arith.constant 0 : index
    %8 = vector.load %arg4[%c1_9, %c0_10, %c0_11] : memref<10x1x23xf32, #tpu.memory_space<vmem>>, vector<1x1x23xf32>
    %9 = vector.shape_cast %8 : vector<1x1x23xf32> to vector<1x23xf32>
    %10 = vector.broadcast %9 : vector<1x23xf32> to vector<12x23xf32>
    %11 = arith.mulf %7, %10 : vector<12x23xf32>
    %12 = arith.addf %5, %11 : vector<12x23xf32>
    %c0_12 = arith.constant 0 : index
    %c2 = arith.constant 2 : index
    %c0_13 = arith.constant 0 : index
    %c0_14 = arith.constant 0 : index
    %13 = vector.load %arg2[%c0_12, %c2, %c0_13, %c0_14] : memref<1x10x12x23xf32, #tpu.memory_space<vmem>>, vector<1x1x12x23xf32>
    %14 = vector.shape_cast %13 : vector<1x1x12x23xf32> to vector<12x23xf32>
    %c2_15 = arith.constant 2 : index
    %c0_16 = arith.constant 0 : index
    %c0_17 = arith.constant 0 : index
    %15 = vector.load %arg4[%c2_15, %c0_16, %c0_17] : memref<10x1x23xf32, #tpu.memory_space<vmem>>, vector<1x1x23xf32>
    %16 = vector.shape_cast %15 : vector<1x1x23xf32> to vector<1x23xf32>
    %17 = vector.broadcast %16 : vector<1x23xf32> to vector<12x23xf32>
    %18 = arith.mulf %14, %17 : vector<12x23xf32>
    %19 = arith.addf %12, %18 : vector<12x23xf32>
    %c0_18 = arith.constant 0 : index
    %c3 = arith.constant 3 : index
    %c0_19 = arith.constant 0 : index
    %c0_20 = arith.constant 0 : index
    %20 = vector.load %arg2[%c0_18, %c3, %c0_19, %c0_20] : memref<1x10x12x23xf32, #tpu.memory_space<vmem>>, vector<1x1x12x23xf32>
    %21 = vector.shape_cast %20 : vector<1x1x12x23xf32> to vector<12x23xf32>
    %c3_21 = arith.constant 3 : index
    %c0_22 = arith.constant 0 : index
    %c0_23 = arith.constant 0 : index
    %22 = vector.load %arg4[%c3_21, %c0_22, %c0_23] : memref<10x1x23xf32, #tpu.memory_space<vmem>>, vector<1x1x23xf32>
    %23 = vector.shape_cast %22 : vector<1x1x23xf32> to vector<1x23xf32>
    %24 = vector.broadcast %23 : vector<1x23xf32> to vector<12x23xf32>
    %25 = arith.mulf %21, %24 : vector<12x23xf32>
    %26 = arith.addf %19, %25 : vector<12x23xf32>
    %c0_24 = arith.constant 0 : index
    %c4 = arith.constant 4 : index
    %c0_25 = arith.constant 0 : index
    %c0_26 = arith.constant 0 : index
    %27 = vector.load %arg2[%c0_24, %c4, %c0_25, %c0_26] : memref<1x10x12x23xf32, #tpu.memory_space<vmem>>, vector<1x1x12x23xf32>
    %28 = vector.shape_cast %27 : vector<1x1x12x23xf32> to vector<12x23xf32>
    %c4_27 = arith.constant 4 : index
    %c0_28 = arith.constant 0 : index
    %c0_29 = arith.constant 0 : index
    %29 = vector.load %arg4[%c4_27, %c0_28, %c0_29] : memref<10x1x23xf32, #tpu.memory_space<vmem>>, vector<1x1x23xf32>
    %30 = vector.shape_cast %29 : vector<1x1x23xf32> to vector<1x23xf32>
    %31 = vector.broadcast %30 : vector<1x23xf32> to vector<12x23xf32>
    %32 = arith.mulf %28, %31 : vector<12x23xf32>
    %33 = arith.addf %26, %32 : vector<12x23xf32>
    %c0_30 = arith.constant 0 : index
    %c5 = arith.constant 5 : index
    %c0_31 = arith.constant 0 : index
    %c0_32 = arith.constant 0 : index
    %34 = vector.load %arg2[%c0_30, %c5, %c0_31, %c0_32] : memref<1x10x12x23xf32, #tpu.memory_space<vmem>>, vector<1x1x12x23xf32>
    %35 = vector.shape_cast %34 : vector<1x1x12x23xf32> to vector<12x23xf32>
    %c5_33 = arith.constant 5 : index
    %c0_34 = arith.constant 0 : index
    %c0_35 = arith.constant 0 : index
    %36 = vector.load %arg4[%c5_33, %c0_34, %c0_35] : memref<10x1x23xf32, #tpu.memory_space<vmem>>, vector<1x1x23xf32>
    %37 = vector.shape_cast %36 : vector<1x1x23xf32> to vector<1x23xf32>
    %38 = vector.broadcast %37 : vector<1x23xf32> to vector<12x23xf32>
    %39 = arith.mulf %35, %38 : vector<12x23xf32>
    %40 = arith.addf %33, %39 : vector<12x23xf32>
    %c0_36 = arith.constant 0 : index
    %c6 = arith.constant 6 : index
    %c0_37 = arith.constant 0 : index
    %c0_38 = arith.constant 0 : index
    %41 = vector.load %arg2[%c0_36, %c6, %c0_37, %c0_38] : memref<1x10x12x23xf32, #tpu.memory_space<vmem>>, vector<1x1x12x23xf32>
    %42 = vector.shape_cast %41 : vector<1x1x12x23xf32> to vector<12x23xf32>
    %c6_39 = arith.constant 6 : index
    %c0_40 = arith.constant 0 : index
    %c0_41 = arith.constant 0 : index
    %43 = vector.load %arg4[%c6_39, %c0_40, %c0_41] : memref<10x1x23xf32, #tpu.memory_space<vmem>>, vector<1x1x23xf32>
    %44 = vector.shape_cast %43 : vector<1x1x23xf32> to vector<1x23xf32>
    %45 = vector.broadcast %44 : vector<1x23xf32> to vector<12x23xf32>
    %46 = arith.mulf %42, %45 : vector<12x23xf32>
    %47 = arith.addf %40, %46 : vector<12x23xf32>
    %c0_42 = arith.constant 0 : index
    %c7 = arith.constant 7 : index
    %c0_43 = arith.constant 0 : index
    %c0_44 = arith.constant 0 : index
    %48 = vector.load %arg2[%c0_42, %c7, %c0_43, %c0_44] : memref<1x10x12x23xf32, #tpu.memory_space<vmem>>, vector<1x1x12x23xf32>
    %49 = vector.shape_cast %48 : vector<1x1x12x23xf32> to vector<12x23xf32>
    %c7_45 = arith.constant 7 : index
    %c0_46 = arith.constant 0 : index
    %c0_47 = arith.constant 0 : index
    %50 = vector.load %arg4[%c7_45, %c0_46, %c0_47] : memref<10x1x23xf32, #tpu.memory_space<vmem>>, vector<1x1x23xf32>
    %51 = vector.shape_cast %50 : vector<1x1x23xf32> to vector<1x23xf32>
    %52 = vector.broadcast %51 : vector<1x23xf32> to vector<12x23xf32>
    %53 = arith.mulf %49, %52 : vector<12x23xf32>
    %54 = arith.addf %47, %53 : vector<12x23xf32>
    %c0_48 = arith.constant 0 : index
    %c8 = arith.constant 8 : index
    %c0_49 = arith.constant 0 : index
    %c0_50 = arith.constant 0 : index
    %55 = vector.load %arg2[%c0_48, %c8, %c0_49, %c0_50] : memref<1x10x12x23xf32, #tpu.memory_space<vmem>>, vector<1x1x12x23xf32>
    %56 = vector.shape_cast %55 : vector<1x1x12x23xf32> to vector<12x23xf32>
    %c8_51 = arith.constant 8 : index
    %c0_52 = arith.constant 0 : index
    %c0_53 = arith.constant 0 : index
    %57 = vector.load %arg4[%c8_51, %c0_52, %c0_53] : memref<10x1x23xf32, #tpu.memory_space<vmem>>, vector<1x1x23xf32>
    %58 = vector.shape_cast %57 : vector<1x1x23xf32> to vector<1x23xf32>
    %59 = vector.broadcast %58 : vector<1x23xf32> to vector<12x23xf32>
    %60 = arith.mulf %56, %59 : vector<12x23xf32>
    %61 = arith.addf %54, %60 : vector<12x23xf32>
    %c0_54 = arith.constant 0 : index
    %c9 = arith.constant 9 : index
    %c0_55 = arith.constant 0 : index
    %c0_56 = arith.constant 0 : index
    %62 = vector.load %arg2[%c0_54, %c9, %c0_55, %c0_56] : memref<1x10x12x23xf32, #tpu.memory_space<vmem>>, vector<1x1x12x23xf32>
    %63 = vector.shape_cast %62 : vector<1x1x12x23xf32> to vector<12x23xf32>
    %c9_57 = arith.constant 9 : index
    %c0_58 = arith.constant 0 : index
    %c0_59 = arith.constant 0 : index
    %64 = vector.load %arg4[%c9_57, %c0_58, %c0_59] : memref<10x1x23xf32, #tpu.memory_space<vmem>>, vector<1x1x23xf32>
    %65 = vector.shape_cast %64 : vector<1x1x23xf32> to vector<1x23xf32>
    %66 = vector.broadcast %65 : vector<1x23xf32> to vector<12x23xf32>
    %67 = arith.mulf %63, %66 : vector<12x23xf32>
    %68 = arith.addf %61, %67 : vector<12x23xf32>
    %c0_60 = arith.constant 0 : index
    %c0_61 = arith.constant 0 : index
    %c0_62 = arith.constant 0 : index
    %c0_63 = arith.constant 0 : index
    %69 = vector.load %arg3[%c0_60, %c0_61, %c0_62, %c0_63] : memref<1x5x12x23xf32, #tpu.memory_space<vmem>>, vector<1x1x12x23xf32>
    %70 = vector.shape_cast %69 : vector<1x1x12x23xf32> to vector<12x23xf32>
    %c0_64 = arith.constant 0 : index
    %c0_65 = arith.constant 0 : index
    %c0_66 = arith.constant 0 : index
    %71 = vector.load %arg5[%c0_64, %c0_65, %c0_66] : memref<5x1x23xf32, #tpu.memory_space<vmem>>, vector<1x1x23xf32>
    %72 = vector.shape_cast %71 : vector<1x1x23xf32> to vector<1x23xf32>
    %73 = vector.broadcast %72 : vector<1x23xf32> to vector<12x23xf32>
    %74 = arith.mulf %70, %73 : vector<12x23xf32>
    %75 = arith.addf %68, %74 : vector<12x23xf32>
    %c0_67 = arith.constant 0 : index
    %c1_68 = arith.constant 1 : index
    %c0_69 = arith.constant 0 : index
    %c0_70 = arith.constant 0 : index
    %76 = vector.load %arg3[%c0_67, %c1_68, %c0_69, %c0_70] : memref<1x5x12x23xf32, #tpu.memory_space<vmem>>, vector<1x1x12x23xf32>
    %77 = vector.shape_cast %76 : vector<1x1x12x23xf32> to vector<12x23xf32>
    %c1_71 = arith.constant 1 : index
    %c0_72 = arith.constant 0 : index
    %c0_73 = arith.constant 0 : index
    %78 = vector.load %arg5[%c1_71, %c0_72, %c0_73] : memref<5x1x23xf32, #tpu.memory_space<vmem>>, vector<1x1x23xf32>
    %79 = vector.shape_cast %78 : vector<1x1x23xf32> to vector<1x23xf32>
    %80 = vector.broadcast %79 : vector<1x23xf32> to vector<12x23xf32>
    %81 = arith.mulf %77, %80 : vector<12x23xf32>
    %82 = arith.addf %75, %81 : vector<12x23xf32>
    %c0_74 = arith.constant 0 : index
    %c2_75 = arith.constant 2 : index
    %c0_76 = arith.constant 0 : index
    %c0_77 = arith.constant 0 : index
    %83 = vector.load %arg3[%c0_74, %c2_75, %c0_76, %c0_77] : memref<1x5x12x23xf32, #tpu.memory_space<vmem>>, vector<1x1x12x23xf32>
    %84 = vector.shape_cast %83 : vector<1x1x12x23xf32> to vector<12x23xf32>
    %c2_78 = arith.constant 2 : index
    %c0_79 = arith.constant 0 : index
    %c0_80 = arith.constant 0 : index
    %85 = vector.load %arg5[%c2_78, %c0_79, %c0_80] : memref<5x1x23xf32, #tpu.memory_space<vmem>>, vector<1x1x23xf32>
    %86 = vector.shape_cast %85 : vector<1x1x23xf32> to vector<1x23xf32>
    %87 = vector.broadcast %86 : vector<1x23xf32> to vector<12x23xf32>
    %88 = arith.mulf %84, %87 : vector<12x23xf32>
    %89 = arith.addf %82, %88 : vector<12x23xf32>
    %c0_81 = arith.constant 0 : index
    %c3_82 = arith.constant 3 : index
    %c0_83 = arith.constant 0 : index
    %c0_84 = arith.constant 0 : index
    %90 = vector.load %arg3[%c0_81, %c3_82, %c0_83, %c0_84] : memref<1x5x12x23xf32, #tpu.memory_space<vmem>>, vector<1x1x12x23xf32>
    %91 = vector.shape_cast %90 : vector<1x1x12x23xf32> to vector<12x23xf32>
    %c3_85 = arith.constant 3 : index
    %c0_86 = arith.constant 0 : index
    %c0_87 = arith.constant 0 : index
    %92 = vector.load %arg5[%c3_85, %c0_86, %c0_87] : memref<5x1x23xf32, #tpu.memory_space<vmem>>, vector<1x1x23xf32>
    %93 = vector.shape_cast %92 : vector<1x1x23xf32> to vector<1x23xf32>
    %94 = vector.broadcast %93 : vector<1x23xf32> to vector<12x23xf32>
    %95 = arith.mulf %91, %94 : vector<12x23xf32>
    %96 = arith.addf %89, %95 : vector<12x23xf32>
    %c0_88 = arith.constant 0 : index
    %c4_89 = arith.constant 4 : index
    %c0_90 = arith.constant 0 : index
    %c0_91 = arith.constant 0 : index
    %97 = vector.load %arg3[%c0_88, %c4_89, %c0_90, %c0_91] : memref<1x5x12x23xf32, #tpu.memory_space<vmem>>, vector<1x1x12x23xf32>
    %98 = vector.shape_cast %97 : vector<1x1x12x23xf32> to vector<12x23xf32>
    %c4_92 = arith.constant 4 : index
    %c0_93 = arith.constant 0 : index
    %c0_94 = arith.constant 0 : index
    %99 = vector.load %arg5[%c4_92, %c0_93, %c0_94] : memref<5x1x23xf32, #tpu.memory_space<vmem>>, vector<1x1x23xf32>
    %100 = vector.shape_cast %99 : vector<1x1x23xf32> to vector<1x23xf32>
    %101 = vector.broadcast %100 : vector<1x23xf32> to vector<12x23xf32>
    %102 = arith.mulf %98, %101 : vector<12x23xf32>
    %103 = arith.addf %96, %102 : vector<12x23xf32>
    %cst = arith.constant 0.000000e+00 : f32
    %104 = vector.broadcast %cst : f32 to vector<12x23xf32>
    %105 = arith.maximumf %103, %104 : vector<12x23xf32>
    %c0_95 = arith.constant 0 : index
    %c0_96 = arith.constant 0 : index
    %106 = vector.load %arg6[%c0_95, %c0_96] : memref<23x128xf32, #tpu.memory_space<vmem>>, vector<23x128xf32>
    %cst_97 = arith.constant dense<0.000000e+00> : vector<12x128xf32>
    %107 = tpu.matmul %105, %106, %cst_97 {dimension_numbers = #tpu.dot_dimension_numbers<[1], [0], [0], [1], [0, 0, 1, 1], [], []>} : vector<12x23xf32>, vector<23x128xf32>, vector<12x128xf32> -> vector<12x128xf32>
    %cst_98 = arith.constant 0.000000e+00 : f32
    %108 = vector.broadcast %cst_98 : f32 to vector<12x128xf32>
    %109 = arith.maximumf %107, %108 : vector<12x128xf32>
    %cst_99 = arith.constant dense<0.000000e+00> : vector<12xf32>
    %110 = vector.multi_reduction <add>, %109, %cst_99 [1] : vector<12x128xf32> to vector<12xf32>
    %111 = vector.shape_cast %110 : vector<12xf32> to vector<12x1xf32>
    %cst_100 = arith.constant 1.280000e+02 : f32
    %112 = vector.broadcast %cst_100 : f32 to vector<12x1xf32>
    %113 = arith.divf %111, %112 : vector<12x1xf32>
    %114 = vector.broadcast %113 : vector<12x1xf32> to vector<12x128xf32>
    %115 = arith.subf %109, %114 : vector<12x128xf32>
    %116 = arith.mulf %115, %115 : vector<12x128xf32>
    %cst_101 = arith.constant dense<0.000000e+00> : vector<12xf32>
    %117 = vector.multi_reduction <add>, %116, %cst_101 [1] : vector<12x128xf32> to vector<12xf32>
    %118 = vector.shape_cast %117 : vector<12xf32> to vector<12x1xf32>
    %cst_102 = arith.constant 1.280000e+02 : f32
    %119 = vector.broadcast %cst_102 : f32 to vector<12x1xf32>
    %120 = arith.divf %118, %119 : vector<12x1xf32>
    %121 = vector.broadcast %113 : vector<12x1xf32> to vector<12x128xf32>
    %122 = arith.subf %109, %121 : vector<12x128xf32>
    %cst_103 = arith.constant 9.99999974E-6 : f32
    %123 = vector.broadcast %cst_103 : f32 to vector<12x1xf32>
    %124 = arith.addf %120, %123 : vector<12x1xf32>
    %125 = math.rsqrt %124 : vector<12x1xf32>
    %126 = vector.broadcast %125 : vector<12x1xf32> to vector<12x128xf32>
    %127 = arith.mulf %122, %126 : vector<12x128xf32>
    %c0_104 = arith.constant 0 : index
    %c0_105 = arith.constant 0 : index
    %128 = vector.load %arg7[%c0_104, %c0_105] : memref<1x128xf32, #tpu.memory_space<vmem>>, vector<1x128xf32>
    %129 = vector.broadcast %128 : vector<1x128xf32> to vector<12x128xf32>
    %130 = arith.mulf %127, %129 : vector<12x128xf32>
    %c0_106 = arith.constant 0 : index
    %c0_107 = arith.constant 0 : index
    %131 = vector.load %arg8[%c0_106, %c0_107] : memref<1x128xf32, #tpu.memory_space<vmem>>, vector<1x128xf32>
    %132 = vector.broadcast %131 : vector<1x128xf32> to vector<12x128xf32>
    %133 = arith.addf %130, %132 : vector<12x128xf32>
    %c0_108 = arith.constant 0 : index
    %c0_109 = arith.constant 0 : index
    %c0_110 = arith.constant 0 : index
    %134 = vector.load %arg9[%c0_108, %c0_109, %c0_110] : memref<1x12x128xf32, #tpu.memory_space<vmem>>, vector<1x12x128xf32>
    %135 = vector.shape_cast %134 : vector<1x12x128xf32> to vector<12x128xf32>
    %136 = vector.shape_cast %133 : vector<12x128xf32> to vector<1x12x128xf32>
    tpu.vector_store %arg9[%c0_108, %c0_109, %c0_110], %136 {strides = array<i32>} : memref<1x12x128xf32, #tpu.memory_space<vmem>>, vector<1x12x128xf32>,
    return
  }
  func.func @transform_0(%arg0: i32, %arg1: i32) -> (i32, i32, i32, i32) {
    %c0_i32 = arith.constant 0 : i32
    %c0_i32_0 = arith.constant 0 : i32
    %c0_i32_1 = arith.constant 0 : i32
    return %arg0, %c0_i32, %arg1, %c0_i32_0 : i32, i32, i32, i32
  }
  func.func @transform_1(%arg0: i32, %arg1: i32) -> (i32, i32, i32, i32) {
    %c0_i32 = arith.constant 0 : i32
    %c0_i32_0 = arith.constant 0 : i32
    %c0_i32_1 = arith.constant 0 : i32
    return %arg0, %c0_i32, %arg1, %c0_i32_0 : i32, i32, i32, i32
  }
  func.func @transform_2(%arg0: i32, %arg1: i32) -> (i32, i32, i32) {
    %c0_i32 = arith.constant 0 : i32
    %c0_i32_0 = arith.constant 0 : i32
    %c0_i32_1 = arith.constant 0 : i32
    %c0_i32_2 = arith.constant 0 : i32
    return %c0_i32, %c0_i32_0, %c0_i32_1 : i32, i32, i32
  }
  func.func @transform_3(%arg0: i32, %arg1: i32) -> (i32, i32, i32) {
    %c0_i32 = arith.constant 0 : i32
    %c0_i32_0 = arith.constant 0 : i32
    %c0_i32_1 = arith.constant 0 : i32
    %c0_i32_2 = arith.constant 0 : i32
    return %c0_i32, %c0_i32_0, %c0_i32_1 : i32, i32, i32
  }
  func.func @transform_4(%arg0: i32, %arg1: i32) -> (i32, i32) {
    %c0_i32 = arith.constant 0 : i32
    %c0_i32_0 = arith.constant 0 : i32
    %c0_i32_1 = arith.constant 0 : i32
    return %c0_i32, %c0_i32_0 : i32, i32
  }
  func.func @transform_5(%arg0: i32, %arg1: i32) -> (i32, i32) {
    %c0_i32 = arith.constant 0 : i32
    %c0_i32_0 = arith.constant 0 : i32
    %c0_i32_1 = arith.constant 0 : i32
    return %c0_i32, %c0_i32_0 : i32, i32
  }
  func.func @transform_6(%arg0: i32, %arg1: i32) -> (i32, i32) {
    %c0_i32 = arith.constant 0 : i32
    %c0_i32_0 = arith.constant 0 : i32
    %c0_i32_1 = arith.constant 0 : i32
    return %c0_i32, %c0_i32_0 : i32, i32
  }
  func.func @transform_7(%arg0: i32, %arg1: i32) -> (i32, i32, i32) {
    %c0_i32 = arith.constant 0 : i32
    %c0_i32_0 = arith.constant 0 : i32
    return %arg0, %arg1, %c0_i32 : i32, i32, i32
  }
}

module attributes {stable_mosaic.version = 11 : i64} {
  func.func @_upsample_kernel(%arg0: i32, %arg1: i32, %arg2: memref<1x12x128xf32, #tpu.memory_space<vmem>>, %arg3: memref<1x12x128xf32, #tpu.memory_space<vmem>>, %arg4: memref<128x256xf32, #tpu.memory_space<vmem>>, %arg5: memref<128x128xf32, #tpu.memory_space<vmem>>, %arg6: memref<1x128xf32, #tpu.memory_space<vmem>>, %arg7: memref<128x640xf32, #tpu.memory_space<vmem>>, %arg8: memref<1x128xf32, #tpu.memory_space<vmem>>, %arg9: memref<1x128xf32, #tpu.memory_space<vmem>>, %arg10: memref<1x128xf32, #tpu.memory_space<vmem>>, %arg11: memref<1x12x1280xf32, #tpu.memory_space<vmem>>) attributes {dimension_semantics = [#tpu.dimension_semantics<parallel>, #tpu.dimension_semantics<parallel>], iteration_bounds = array<i64: 2, 1>, scalar_prefetch = 0 : i64, scratch_operands = 0 : i64, tpu.core_type = #tpu.core_type<tc>, window_params = [{transform_indices = @transform_0, window_bounds = array<i64: 1, 12, 128>}, {transform_indices = @transform_1, window_bounds = array<i64: 1, 12, 128>}, {pipeline_mode = #tpu.pipeline_mode<synchronous>, transform_indices = @transform_2, window_bounds = array<i64: 128, 256>}, {pipeline_mode = #tpu.pipeline_mode<synchronous>, transform_indices = @transform_3, window_bounds = array<i64: 128, 128>}, {pipeline_mode = #tpu.pipeline_mode<synchronous>, transform_indices = @transform_4, window_bounds = array<i64: 1, 128>}, {pipeline_mode = #tpu.pipeline_mode<synchronous>, transform_indices = @transform_5, window_bounds = array<i64: 128, 640>}, {pipeline_mode = #tpu.pipeline_mode<synchronous>, transform_indices = @transform_6, window_bounds = array<i64: 1, 128>}, {pipeline_mode = #tpu.pipeline_mode<synchronous>, transform_indices = @transform_7, window_bounds = array<i64: 1, 128>}, {pipeline_mode = #tpu.pipeline_mode<synchronous>, transform_indices = @transform_8, window_bounds = array<i64: 1, 128>}, {transform_indices = @transform_9, window_bounds = array<i64: 1, 12, 1280>}]} {
    %c0 = arith.constant 0 : index
    %c0_0 = arith.constant 0 : index
    %c0_1 = arith.constant 0 : index
    %0 = vector.load %arg2[%c0, %c0_0, %c0_1] : memref<1x12x128xf32, #tpu.memory_space<vmem>>, vector<1x12x128xf32>
    %1 = vector.shape_cast %0 : vector<1x12x128xf32> to vector<12x128xf32>
    %c0_2 = arith.constant 0 : index
    %c0_3 = arith.constant 0 : index
    %c0_4 = arith.constant 0 : index
    %2 = vector.load %arg3[%c0_2, %c0_3, %c0_4] : memref<1x12x128xf32, #tpu.memory_space<vmem>>, vector<1x12x128xf32>
    %3 = vector.shape_cast %2 : vector<1x12x128xf32> to vector<12x128xf32>
    %c0_5 = arith.constant 0 : index
    %c0_6 = arith.constant 0 : index
    %4 = vector.load %arg6[%c0_5, %c0_6] : memref<1x128xf32, #tpu.memory_space<vmem>>, vector<1x128xf32>
    %c0_7 = arith.constant 0 : index
    %c0_8 = arith.constant 0 : index
    %5 = vector.load %arg4[%c0_7, %c0_8] : memref<128x256xf32, #tpu.memory_space<vmem>>, vector<128x256xf32>
    %cst = arith.constant dense<0.000000e+00> : vector<12x256xf32>
    %6 = tpu.matmul %1, %5, %cst {dimension_numbers = #tpu.dot_dimension_numbers<[1], [0], [0], [1], [0, 0, 1, 1], [], []>} : vector<12x128xf32>, vector<128x256xf32>, vector<12x256xf32> -> vector<12x256xf32>
    %c0_9 = arith.constant 0 : index
    %c0_10 = arith.constant 0 : index
    %7 = vector.load %arg5[%c0_9, %c0_10] : memref<128x128xf32, #tpu.memory_space<vmem>>, vector<128x128xf32>
    %cst_11 = arith.constant dense<0.000000e+00> : vector<12x128xf32>
    %8 = tpu.matmul %3, %7, %cst_11 {dimension_numbers = #tpu.dot_dimension_numbers<[1], [0], [0], [1], [0, 0, 1, 1], [], []>} : vector<12x128xf32>, vector<128x128xf32>, vector<12x128xf32> -> vector<12x128xf32>
    %9 = vector.extract_strided_slice %6 {offsets = [0, 0], sizes = [12, 128], strides = [1, 1]} : vector<12x256xf32> to vector<12x128xf32>
    %10 = vector.broadcast %4 : vector<1x128xf32> to vector<12x128xf32>
    %11 = arith.addf %9, %10 : vector<12x128xf32>
    %cst_12 = arith.constant 5.000000e-01 : f32
    %12 = vector.broadcast %cst_12 : f32 to vector<12x128xf32>
    %13 = arith.mulf %12, %11 : vector<12x128xf32>
    %cst_13 = arith.constant 0.707106769 : f32
    %14 = vector.broadcast %cst_13 : f32 to vector<12x128xf32>
    %15 = arith.mulf %11, %14 : vector<12x128xf32>
    %16 = math.erf %15 : vector<12x128xf32>
    %cst_14 = arith.constant 1.000000e+00 : f32
    %17 = vector.broadcast %cst_14 : f32 to vector<12x128xf32>
    %18 = arith.addf %17, %16 : vector<12x128xf32>
    %19 = arith.mulf %13, %18 : vector<12x128xf32>
    %20 = vector.extract_strided_slice %6 {offsets = [0, 128], sizes = [12, 128], strides = [1, 1]} : vector<12x256xf32> to vector<12x128xf32>
    %21 = arith.addf %20, %8 : vector<12x128xf32>
    %22 = vector.broadcast %4 : vector<1x128xf32> to vector<12x128xf32>
    %23 = arith.addf %21, %22 : vector<12x128xf32>
    %cst_15 = arith.constant 5.000000e-01 : f32
    %24 = vector.broadcast %cst_15 : f32 to vector<12x128xf32>
    %25 = arith.mulf %24, %23 : vector<12x128xf32>
    %cst_16 = arith.constant 0.707106769 : f32
    %26 = vector.broadcast %cst_16 : f32 to vector<12x128xf32>
    %27 = arith.mulf %23, %26 : vector<12x128xf32>
    %28 = math.erf %27 : vector<12x128xf32>
    %cst_17 = arith.constant 1.000000e+00 : f32
    %29 = vector.broadcast %cst_17 : f32 to vector<12x128xf32>
    %30 = arith.addf %29, %28 : vector<12x128xf32>
    %31 = arith.mulf %25, %30 : vector<12x128xf32>
    %c0_18 = arith.constant 0 : index
    %c0_19 = arith.constant 0 : index
    %32 = vector.load %arg8[%c0_18, %c0_19] : memref<1x128xf32, #tpu.memory_space<vmem>>, vector<1x128xf32>
    %c0_20 = arith.constant 0 : index
    %c0_21 = arith.constant 0 : index
    %33 = vector.load %arg9[%c0_20, %c0_21] : memref<1x128xf32, #tpu.memory_space<vmem>>, vector<1x128xf32>
    %c0_22 = arith.constant 0 : index
    %c0_23 = arith.constant 0 : index
    %34 = vector.load %arg10[%c0_22, %c0_23] : memref<1x128xf32, #tpu.memory_space<vmem>>, vector<1x128xf32>
    %c0_24 = arith.constant 0 : index
    %c0_25 = arith.constant 0 : index
    %35 = vector.load %arg7[%c0_24, %c0_25] : memref<128x640xf32, #tpu.memory_space<vmem>>, vector<128x640xf32>
    %cst_26 = arith.constant dense<0.000000e+00> : vector<12x640xf32>
    %36 = tpu.matmul %19, %35, %cst_26 {dimension_numbers = #tpu.dot_dimension_numbers<[1], [0], [0], [1], [0, 0, 1, 1], [], []>} : vector<12x128xf32>, vector<128x640xf32>, vector<12x640xf32> -> vector<12x640xf32>
    %c0_27 = arith.constant 0 : index
    %c0_28 = arith.constant 0 : index
    %37 = vector.load %arg7[%c0_27, %c0_28] : memref<128x640xf32, #tpu.memory_space<vmem>>, vector<128x640xf32>
    %cst_29 = arith.constant dense<0.000000e+00> : vector<12x640xf32>
    %38 = tpu.matmul %31, %37, %cst_29 {dimension_numbers = #tpu.dot_dimension_numbers<[1], [0], [0], [1], [0, 0, 1, 1], [], []>} : vector<12x128xf32>, vector<128x640xf32>, vector<12x640xf32> -> vector<12x640xf32>
    %39 = vector.extract_strided_slice %36 {offsets = [0, 0], sizes = [12, 128], strides = [1, 1]} : vector<12x640xf32> to vector<12x128xf32>
    %40 = vector.broadcast %32 : vector<1x128xf32> to vector<12x128xf32>
    %41 = arith.addf %39, %40 : vector<12x128xf32>
    %cst_30 = arith.constant 5.000000e-01 : f32
    %42 = vector.broadcast %cst_30 : f32 to vector<12x128xf32>
    %43 = arith.mulf %42, %41 : vector<12x128xf32>
    %cst_31 = arith.constant 0.707106769 : f32
    %44 = vector.broadcast %cst_31 : f32 to vector<12x128xf32>
    %45 = arith.mulf %41, %44 : vector<12x128xf32>
    %46 = math.erf %45 : vector<12x128xf32>
    %cst_32 = arith.constant 1.000000e+00 : f32
    %47 = vector.broadcast %cst_32 : f32 to vector<12x128xf32>
    %48 = arith.addf %47, %46 : vector<12x128xf32>
    %49 = arith.mulf %43, %48 : vector<12x128xf32>
    %cst_33 = arith.constant dense<0.000000e+00> : vector<12xf32>
    %50 = vector.multi_reduction <add>, %49, %cst_33 [1] : vector<12x128xf32> to vector<12xf32>
    %51 = vector.shape_cast %50 : vector<12xf32> to vector<12x1xf32>
    %cst_34 = arith.constant 1.280000e+02 : f32
    %52 = vector.broadcast %cst_34 : f32 to vector<12x1xf32>
    %53 = arith.divf %51, %52 : vector<12x1xf32>
    %54 = vector.broadcast %53 : vector<12x1xf32> to vector<12x128xf32>
    %55 = arith.subf %49, %54 : vector<12x128xf32>
    %56 = arith.mulf %55, %55 : vector<12x128xf32>
    %cst_35 = arith.constant dense<0.000000e+00> : vector<12xf32>
    %57 = vector.multi_reduction <add>, %56, %cst_35 [1] : vector<12x128xf32> to vector<12xf32>
    %58 = vector.shape_cast %57 : vector<12xf32> to vector<12x1xf32>
    %cst_36 = arith.constant 1.280000e+02 : f32
    %59 = vector.broadcast %cst_36 : f32 to vector<12x1xf32>
    %60 = arith.divf %58, %59 : vector<12x1xf32>
    %61 = vector.broadcast %53 : vector<12x1xf32> to vector<12x128xf32>
    %62 = arith.subf %49, %61 : vector<12x128xf32>
    %cst_37 = arith.constant 9.99999974E-6 : f32
    %63 = vector.broadcast %cst_37 : f32 to vector<12x1xf32>
    %64 = arith.addf %60, %63 : vector<12x1xf32>
    %65 = math.rsqrt %64 : vector<12x1xf32>
    %66 = vector.broadcast %65 : vector<12x1xf32> to vector<12x128xf32>
    %67 = arith.mulf %62, %66 : vector<12x128xf32>
    %68 = vector.broadcast %33 : vector<1x128xf32> to vector<12x128xf32>
    %69 = arith.mulf %67, %68 : vector<12x128xf32>
    %70 = vector.broadcast %34 : vector<1x128xf32> to vector<12x128xf32>
    %71 = arith.addf %69, %70 : vector<12x128xf32>
    %cst_38 = arith.constant 5.000000e-01 : f32
    %72 = vector.broadcast %cst_38 : f32 to vector<12x128xf32>
    %73 = arith.mulf %72, %71 : vector<12x128xf32>
    %cst_39 = arith.constant 0.707106769 : f32
    %74 = vector.broadcast %cst_39 : f32 to vector<12x128xf32>
    %75 = arith.mulf %71, %74 : vector<12x128xf32>
    %76 = math.erf %75 : vector<12x128xf32>
    %cst_40 = arith.constant 1.000000e+00 : f32
    %77 = vector.broadcast %cst_40 : f32 to vector<12x128xf32>
    %78 = arith.addf %77, %76 : vector<12x128xf32>
    %79 = arith.mulf %73, %78 : vector<12x128xf32>
    %c0_41 = arith.constant 0 : index
    %c0_42 = arith.constant 0 : index
    %c0_43 = arith.constant 0 : index
    %80 = vector.load %arg11[%c0_41, %c0_42, %c0_43] : memref<1x12x1280xf32, #tpu.memory_space<vmem>>, vector<1x12x128xf32>
    %81 = vector.shape_cast %80 : vector<1x12x128xf32> to vector<12x128xf32>
    %82 = vector.shape_cast %79 : vector<12x128xf32> to vector<1x12x128xf32>
    tpu.vector_store %arg11[%c0_41, %c0_42, %c0_43], %82 {strides = array<i32>} : memref<1x12x1280xf32, #tpu.memory_space<vmem>>, vector<1x12x128xf32>,
    %83 = vector.extract_strided_slice %36 {offsets = [0, 128], sizes = [12, 128], strides = [1, 1]} : vector<12x640xf32> to vector<12x128xf32>
    %84 = vector.broadcast %32 : vector<1x128xf32> to vector<12x128xf32>
    %85 = arith.addf %83, %84 : vector<12x128xf32>
    %cst_44 = arith.constant 5.000000e-01 : f32
    %86 = vector.broadcast %cst_44 : f32 to vector<12x128xf32>
    %87 = arith.mulf %86, %85 : vector<12x128xf32>
    %cst_45 = arith.constant 0.707106769 : f32
    %88 = vector.broadcast %cst_45 : f32 to vector<12x128xf32>
    %89 = arith.mulf %85, %88 : vector<12x128xf32>
    %90 = math.erf %89 : vector<12x128xf32>
    %cst_46 = arith.constant 1.000000e+00 : f32
    %91 = vector.broadcast %cst_46 : f32 to vector<12x128xf32>
    %92 = arith.addf %91, %90 : vector<12x128xf32>
    %93 = arith.mulf %87, %92 : vector<12x128xf32>
    %cst_47 = arith.constant dense<0.000000e+00> : vector<12xf32>
    %94 = vector.multi_reduction <add>, %93, %cst_47 [1] : vector<12x128xf32> to vector<12xf32>
    %95 = vector.shape_cast %94 : vector<12xf32> to vector<12x1xf32>
    %cst_48 = arith.constant 1.280000e+02 : f32
    %96 = vector.broadcast %cst_48 : f32 to vector<12x1xf32>
    %97 = arith.divf %95, %96 : vector<12x1xf32>
    %98 = vector.broadcast %97 : vector<12x1xf32> to vector<12x128xf32>
    %99 = arith.subf %93, %98 : vector<12x128xf32>
    %100 = arith.mulf %99, %99 : vector<12x128xf32>
    %cst_49 = arith.constant dense<0.000000e+00> : vector<12xf32>
    %101 = vector.multi_reduction <add>, %100, %cst_49 [1] : vector<12x128xf32> to vector<12xf32>
    %102 = vector.shape_cast %101 : vector<12xf32> to vector<12x1xf32>
    %cst_50 = arith.constant 1.280000e+02 : f32
    %103 = vector.broadcast %cst_50 : f32 to vector<12x1xf32>
    %104 = arith.divf %102, %103 : vector<12x1xf32>
    %105 = vector.broadcast %97 : vector<12x1xf32> to vector<12x128xf32>
    %106 = arith.subf %93, %105 : vector<12x128xf32>
    %cst_51 = arith.constant 9.99999974E-6 : f32
    %107 = vector.broadcast %cst_51 : f32 to vector<12x1xf32>
    %108 = arith.addf %104, %107 : vector<12x1xf32>
    %109 = math.rsqrt %108 : vector<12x1xf32>
    %110 = vector.broadcast %109 : vector<12x1xf32> to vector<12x128xf32>
    %111 = arith.mulf %106, %110 : vector<12x128xf32>
    %112 = vector.broadcast %33 : vector<1x128xf32> to vector<12x128xf32>
    %113 = arith.mulf %111, %112 : vector<12x128xf32>
    %114 = vector.broadcast %34 : vector<1x128xf32> to vector<12x128xf32>
    %115 = arith.addf %113, %114 : vector<12x128xf32>
    %cst_52 = arith.constant 5.000000e-01 : f32
    %116 = vector.broadcast %cst_52 : f32 to vector<12x128xf32>
    %117 = arith.mulf %116, %115 : vector<12x128xf32>
    %cst_53 = arith.constant 0.707106769 : f32
    %118 = vector.broadcast %cst_53 : f32 to vector<12x128xf32>
    %119 = arith.mulf %115, %118 : vector<12x128xf32>
    %120 = math.erf %119 : vector<12x128xf32>
    %cst_54 = arith.constant 1.000000e+00 : f32
    %121 = vector.broadcast %cst_54 : f32 to vector<12x128xf32>
    %122 = arith.addf %121, %120 : vector<12x128xf32>
    %123 = arith.mulf %117, %122 : vector<12x128xf32>
    %c0_55 = arith.constant 0 : index
    %c0_56 = arith.constant 0 : index
    %c128 = arith.constant 128 : index
    %124 = vector.load %arg11[%c0_55, %c0_56, %c128] : memref<1x12x1280xf32, #tpu.memory_space<vmem>>, vector<1x12x128xf32>
    %125 = vector.shape_cast %124 : vector<1x12x128xf32> to vector<12x128xf32>
    %126 = vector.shape_cast %123 : vector<12x128xf32> to vector<1x12x128xf32>
    tpu.vector_store %arg11[%c0_55, %c0_56, %c128], %126 {strides = array<i32>} : memref<1x12x1280xf32, #tpu.memory_space<vmem>>, vector<1x12x128xf32>,
    %127 = vector.extract_strided_slice %36 {offsets = [0, 256], sizes = [12, 128], strides = [1, 1]} : vector<12x640xf32> to vector<12x128xf32>
    %128 = vector.broadcast %32 : vector<1x128xf32> to vector<12x128xf32>
    %129 = arith.addf %127, %128 : vector<12x128xf32>
    %cst_57 = arith.constant 5.000000e-01 : f32
    %130 = vector.broadcast %cst_57 : f32 to vector<12x128xf32>
    %131 = arith.mulf %130, %129 : vector<12x128xf32>
    %cst_58 = arith.constant 0.707106769 : f32
    %132 = vector.broadcast %cst_58 : f32 to vector<12x128xf32>
    %133 = arith.mulf %129, %132 : vector<12x128xf32>
    %134 = math.erf %133 : vector<12x128xf32>
    %cst_59 = arith.constant 1.000000e+00 : f32
    %135 = vector.broadcast %cst_59 : f32 to vector<12x128xf32>
    %136 = arith.addf %135, %134 : vector<12x128xf32>
    %137 = arith.mulf %131, %136 : vector<12x128xf32>
    %cst_60 = arith.constant dense<0.000000e+00> : vector<12xf32>
    %138 = vector.multi_reduction <add>, %137, %cst_60 [1] : vector<12x128xf32> to vector<12xf32>
    %139 = vector.shape_cast %138 : vector<12xf32> to vector<12x1xf32>
    %cst_61 = arith.constant 1.280000e+02 : f32
    %140 = vector.broadcast %cst_61 : f32 to vector<12x1xf32>
    %141 = arith.divf %139, %140 : vector<12x1xf32>
    %142 = vector.broadcast %141 : vector<12x1xf32> to vector<12x128xf32>
    %143 = arith.subf %137, %142 : vector<12x128xf32>
    %144 = arith.mulf %143, %143 : vector<12x128xf32>
    %cst_62 = arith.constant dense<0.000000e+00> : vector<12xf32>
    %145 = vector.multi_reduction <add>, %144, %cst_62 [1] : vector<12x128xf32> to vector<12xf32>
    %146 = vector.shape_cast %145 : vector<12xf32> to vector<12x1xf32>
    %cst_63 = arith.constant 1.280000e+02 : f32
    %147 = vector.broadcast %cst_63 : f32 to vector<12x1xf32>
    %148 = arith.divf %146, %147 : vector<12x1xf32>
    %149 = vector.broadcast %141 : vector<12x1xf32> to vector<12x128xf32>
    %150 = arith.subf %137, %149 : vector<12x128xf32>
    %cst_64 = arith.constant 9.99999974E-6 : f32
    %151 = vector.broadcast %cst_64 : f32 to vector<12x1xf32>
    %152 = arith.addf %148, %151 : vector<12x1xf32>
    %153 = math.rsqrt %152 : vector<12x1xf32>
    %154 = vector.broadcast %153 : vector<12x1xf32> to vector<12x128xf32>
    %155 = arith.mulf %150, %154 : vector<12x128xf32>
    %156 = vector.broadcast %33 : vector<1x128xf32> to vector<12x128xf32>
    %157 = arith.mulf %155, %156 : vector<12x128xf32>
    %158 = vector.broadcast %34 : vector<1x128xf32> to vector<12x128xf32>
    %159 = arith.addf %157, %158 : vector<12x128xf32>
    %cst_65 = arith.constant 5.000000e-01 : f32
    %160 = vector.broadcast %cst_65 : f32 to vector<12x128xf32>
    %161 = arith.mulf %160, %159 : vector<12x128xf32>
    %cst_66 = arith.constant 0.707106769 : f32
    %162 = vector.broadcast %cst_66 : f32 to vector<12x128xf32>
    %163 = arith.mulf %159, %162 : vector<12x128xf32>
    %164 = math.erf %163 : vector<12x128xf32>
    %cst_67 = arith.constant 1.000000e+00 : f32
    %165 = vector.broadcast %cst_67 : f32 to vector<12x128xf32>
    %166 = arith.addf %165, %164 : vector<12x128xf32>
    %167 = arith.mulf %161, %166 : vector<12x128xf32>
    %c0_68 = arith.constant 0 : index
    %c0_69 = arith.constant 0 : index
    %c256 = arith.constant 256 : index
    %168 = vector.load %arg11[%c0_68, %c0_69, %c256] : memref<1x12x1280xf32, #tpu.memory_space<vmem>>, vector<1x12x128xf32>
    %169 = vector.shape_cast %168 : vector<1x12x128xf32> to vector<12x128xf32>
    %170 = vector.shape_cast %167 : vector<12x128xf32> to vector<1x12x128xf32>
    tpu.vector_store %arg11[%c0_68, %c0_69, %c256], %170 {strides = array<i32>} : memref<1x12x1280xf32, #tpu.memory_space<vmem>>, vector<1x12x128xf32>,
    %171 = vector.extract_strided_slice %36 {offsets = [0, 384], sizes = [12, 128], strides = [1, 1]} : vector<12x640xf32> to vector<12x128xf32>
    %172 = vector.broadcast %32 : vector<1x128xf32> to vector<12x128xf32>
    %173 = arith.addf %171, %172 : vector<12x128xf32>
    %cst_70 = arith.constant 5.000000e-01 : f32
    %174 = vector.broadcast %cst_70 : f32 to vector<12x128xf32>
    %175 = arith.mulf %174, %173 : vector<12x128xf32>
    %cst_71 = arith.constant 0.707106769 : f32
    %176 = vector.broadcast %cst_71 : f32 to vector<12x128xf32>
    %177 = arith.mulf %173, %176 : vector<12x128xf32>
    %178 = math.erf %177 : vector<12x128xf32>
    %cst_72 = arith.constant 1.000000e+00 : f32
    %179 = vector.broadcast %cst_72 : f32 to vector<12x128xf32>
    %180 = arith.addf %179, %178 : vector<12x128xf32>
    %181 = arith.mulf %175, %180 : vector<12x128xf32>
    %cst_73 = arith.constant dense<0.000000e+00> : vector<12xf32>
    %182 = vector.multi_reduction <add>, %181, %cst_73 [1] : vector<12x128xf32> to vector<12xf32>
    %183 = vector.shape_cast %182 : vector<12xf32> to vector<12x1xf32>
    %cst_74 = arith.constant 1.280000e+02 : f32
    %184 = vector.broadcast %cst_74 : f32 to vector<12x1xf32>
    %185 = arith.divf %183, %184 : vector<12x1xf32>
    %186 = vector.broadcast %185 : vector<12x1xf32> to vector<12x128xf32>
    %187 = arith.subf %181, %186 : vector<12x128xf32>
    %188 = arith.mulf %187, %187 : vector<12x128xf32>
    %cst_75 = arith.constant dense<0.000000e+00> : vector<12xf32>
    %189 = vector.multi_reduction <add>, %188, %cst_75 [1] : vector<12x128xf32> to vector<12xf32>
    %190 = vector.shape_cast %189 : vector<12xf32> to vector<12x1xf32>
    %cst_76 = arith.constant 1.280000e+02 : f32
    %191 = vector.broadcast %cst_76 : f32 to vector<12x1xf32>
    %192 = arith.divf %190, %191 : vector<12x1xf32>
    %193 = vector.broadcast %185 : vector<12x1xf32> to vector<12x128xf32>
    %194 = arith.subf %181, %193 : vector<12x128xf32>
    %cst_77 = arith.constant 9.99999974E-6 : f32
    %195 = vector.broadcast %cst_77 : f32 to vector<12x1xf32>
    %196 = arith.addf %192, %195 : vector<12x1xf32>
    %197 = math.rsqrt %196 : vector<12x1xf32>
    %198 = vector.broadcast %197 : vector<12x1xf32> to vector<12x128xf32>
    %199 = arith.mulf %194, %198 : vector<12x128xf32>
    %200 = vector.broadcast %33 : vector<1x128xf32> to vector<12x128xf32>
    %201 = arith.mulf %199, %200 : vector<12x128xf32>
    %202 = vector.broadcast %34 : vector<1x128xf32> to vector<12x128xf32>
    %203 = arith.addf %201, %202 : vector<12x128xf32>
    %cst_78 = arith.constant 5.000000e-01 : f32
    %204 = vector.broadcast %cst_78 : f32 to vector<12x128xf32>
    %205 = arith.mulf %204, %203 : vector<12x128xf32>
    %cst_79 = arith.constant 0.707106769 : f32
    %206 = vector.broadcast %cst_79 : f32 to vector<12x128xf32>
    %207 = arith.mulf %203, %206 : vector<12x128xf32>
    %208 = math.erf %207 : vector<12x128xf32>
    %cst_80 = arith.constant 1.000000e+00 : f32
    %209 = vector.broadcast %cst_80 : f32 to vector<12x128xf32>
    %210 = arith.addf %209, %208 : vector<12x128xf32>
    %211 = arith.mulf %205, %210 : vector<12x128xf32>
    %c0_81 = arith.constant 0 : index
    %c0_82 = arith.constant 0 : index
    %c384 = arith.constant 384 : index
    %212 = vector.load %arg11[%c0_81, %c0_82, %c384] : memref<1x12x1280xf32, #tpu.memory_space<vmem>>, vector<1x12x128xf32>
    %213 = vector.shape_cast %212 : vector<1x12x128xf32> to vector<12x128xf32>
    %214 = vector.shape_cast %211 : vector<12x128xf32> to vector<1x12x128xf32>
    tpu.vector_store %arg11[%c0_81, %c0_82, %c384], %214 {strides = array<i32>} : memref<1x12x1280xf32, #tpu.memory_space<vmem>>, vector<1x12x128xf32>,
    %215 = vector.extract_strided_slice %36 {offsets = [0, 512], sizes = [12, 128], strides = [1, 1]} : vector<12x640xf32> to vector<12x128xf32>
    %216 = vector.broadcast %32 : vector<1x128xf32> to vector<12x128xf32>
    %217 = arith.addf %215, %216 : vector<12x128xf32>
    %cst_83 = arith.constant 5.000000e-01 : f32
    %218 = vector.broadcast %cst_83 : f32 to vector<12x128xf32>
    %219 = arith.mulf %218, %217 : vector<12x128xf32>
    %cst_84 = arith.constant 0.707106769 : f32
    %220 = vector.broadcast %cst_84 : f32 to vector<12x128xf32>
    %221 = arith.mulf %217, %220 : vector<12x128xf32>
    %222 = math.erf %221 : vector<12x128xf32>
    %cst_85 = arith.constant 1.000000e+00 : f32
    %223 = vector.broadcast %cst_85 : f32 to vector<12x128xf32>
    %224 = arith.addf %223, %222 : vector<12x128xf32>
    %225 = arith.mulf %219, %224 : vector<12x128xf32>
    %cst_86 = arith.constant dense<0.000000e+00> : vector<12xf32>
    %226 = vector.multi_reduction <add>, %225, %cst_86 [1] : vector<12x128xf32> to vector<12xf32>
    %227 = vector.shape_cast %226 : vector<12xf32> to vector<12x1xf32>
    %cst_87 = arith.constant 1.280000e+02 : f32
    %228 = vector.broadcast %cst_87 : f32 to vector<12x1xf32>
    %229 = arith.divf %227, %228 : vector<12x1xf32>
    %230 = vector.broadcast %229 : vector<12x1xf32> to vector<12x128xf32>
    %231 = arith.subf %225, %230 : vector<12x128xf32>
    %232 = arith.mulf %231, %231 : vector<12x128xf32>
    %cst_88 = arith.constant dense<0.000000e+00> : vector<12xf32>
    %233 = vector.multi_reduction <add>, %232, %cst_88 [1] : vector<12x128xf32> to vector<12xf32>
    %234 = vector.shape_cast %233 : vector<12xf32> to vector<12x1xf32>
    %cst_89 = arith.constant 1.280000e+02 : f32
    %235 = vector.broadcast %cst_89 : f32 to vector<12x1xf32>
    %236 = arith.divf %234, %235 : vector<12x1xf32>
    %237 = vector.broadcast %229 : vector<12x1xf32> to vector<12x128xf32>
    %238 = arith.subf %225, %237 : vector<12x128xf32>
    %cst_90 = arith.constant 9.99999974E-6 : f32
    %239 = vector.broadcast %cst_90 : f32 to vector<12x1xf32>
    %240 = arith.addf %236, %239 : vector<12x1xf32>
    %241 = math.rsqrt %240 : vector<12x1xf32>
    %242 = vector.broadcast %241 : vector<12x1xf32> to vector<12x128xf32>
    %243 = arith.mulf %238, %242 : vector<12x128xf32>
    %244 = vector.broadcast %33 : vector<1x128xf32> to vector<12x128xf32>
    %245 = arith.mulf %243, %244 : vector<12x128xf32>
    %246 = vector.broadcast %34 : vector<1x128xf32> to vector<12x128xf32>
    %247 = arith.addf %245, %246 : vector<12x128xf32>
    %cst_91 = arith.constant 5.000000e-01 : f32
    %248 = vector.broadcast %cst_91 : f32 to vector<12x128xf32>
    %249 = arith.mulf %248, %247 : vector<12x128xf32>
    %cst_92 = arith.constant 0.707106769 : f32
    %250 = vector.broadcast %cst_92 : f32 to vector<12x128xf32>
    %251 = arith.mulf %247, %250 : vector<12x128xf32>
    %252 = math.erf %251 : vector<12x128xf32>
    %cst_93 = arith.constant 1.000000e+00 : f32
    %253 = vector.broadcast %cst_93 : f32 to vector<12x128xf32>
    %254 = arith.addf %253, %252 : vector<12x128xf32>
    %255 = arith.mulf %249, %254 : vector<12x128xf32>
    %c0_94 = arith.constant 0 : index
    %c0_95 = arith.constant 0 : index
    %c512 = arith.constant 512 : index
    %256 = vector.load %arg11[%c0_94, %c0_95, %c512] : memref<1x12x1280xf32, #tpu.memory_space<vmem>>, vector<1x12x128xf32>
    %257 = vector.shape_cast %256 : vector<1x12x128xf32> to vector<12x128xf32>
    %258 = vector.shape_cast %255 : vector<12x128xf32> to vector<1x12x128xf32>
    tpu.vector_store %arg11[%c0_94, %c0_95, %c512], %258 {strides = array<i32>} : memref<1x12x1280xf32, #tpu.memory_space<vmem>>, vector<1x12x128xf32>,
    %259 = vector.extract_strided_slice %38 {offsets = [0, 0], sizes = [12, 128], strides = [1, 1]} : vector<12x640xf32> to vector<12x128xf32>
    %260 = vector.broadcast %32 : vector<1x128xf32> to vector<12x128xf32>
    %261 = arith.addf %259, %260 : vector<12x128xf32>
    %cst_96 = arith.constant 5.000000e-01 : f32
    %262 = vector.broadcast %cst_96 : f32 to vector<12x128xf32>
    %263 = arith.mulf %262, %261 : vector<12x128xf32>
    %cst_97 = arith.constant 0.707106769 : f32
    %264 = vector.broadcast %cst_97 : f32 to vector<12x128xf32>
    %265 = arith.mulf %261, %264 : vector<12x128xf32>
    %266 = math.erf %265 : vector<12x128xf32>
    %cst_98 = arith.constant 1.000000e+00 : f32
    %267 = vector.broadcast %cst_98 : f32 to vector<12x128xf32>
    %268 = arith.addf %267, %266 : vector<12x128xf32>
    %269 = arith.mulf %263, %268 : vector<12x128xf32>
    %cst_99 = arith.constant dense<0.000000e+00> : vector<12xf32>
    %270 = vector.multi_reduction <add>, %269, %cst_99 [1] : vector<12x128xf32> to vector<12xf32>
    %271 = vector.shape_cast %270 : vector<12xf32> to vector<12x1xf32>
    %cst_100 = arith.constant 1.280000e+02 : f32
    %272 = vector.broadcast %cst_100 : f32 to vector<12x1xf32>
    %273 = arith.divf %271, %272 : vector<12x1xf32>
    %274 = vector.broadcast %273 : vector<12x1xf32> to vector<12x128xf32>
    %275 = arith.subf %269, %274 : vector<12x128xf32>
    %276 = arith.mulf %275, %275 : vector<12x128xf32>
    %cst_101 = arith.constant dense<0.000000e+00> : vector<12xf32>
    %277 = vector.multi_reduction <add>, %276, %cst_101 [1] : vector<12x128xf32> to vector<12xf32>
    %278 = vector.shape_cast %277 : vector<12xf32> to vector<12x1xf32>
    %cst_102 = arith.constant 1.280000e+02 : f32
    %279 = vector.broadcast %cst_102 : f32 to vector<12x1xf32>
    %280 = arith.divf %278, %279 : vector<12x1xf32>
    %281 = vector.broadcast %273 : vector<12x1xf32> to vector<12x128xf32>
    %282 = arith.subf %269, %281 : vector<12x128xf32>
    %cst_103 = arith.constant 9.99999974E-6 : f32
    %283 = vector.broadcast %cst_103 : f32 to vector<12x1xf32>
    %284 = arith.addf %280, %283 : vector<12x1xf32>
    %285 = math.rsqrt %284 : vector<12x1xf32>
    %286 = vector.broadcast %285 : vector<12x1xf32> to vector<12x128xf32>
    %287 = arith.mulf %282, %286 : vector<12x128xf32>
    %288 = vector.broadcast %33 : vector<1x128xf32> to vector<12x128xf32>
    %289 = arith.mulf %287, %288 : vector<12x128xf32>
    %290 = vector.broadcast %34 : vector<1x128xf32> to vector<12x128xf32>
    %291 = arith.addf %289, %290 : vector<12x128xf32>
    %cst_104 = arith.constant 5.000000e-01 : f32
    %292 = vector.broadcast %cst_104 : f32 to vector<12x128xf32>
    %293 = arith.mulf %292, %291 : vector<12x128xf32>
    %cst_105 = arith.constant 0.707106769 : f32
    %294 = vector.broadcast %cst_105 : f32 to vector<12x128xf32>
    %295 = arith.mulf %291, %294 : vector<12x128xf32>
    %296 = math.erf %295 : vector<12x128xf32>
    %cst_106 = arith.constant 1.000000e+00 : f32
    %297 = vector.broadcast %cst_106 : f32 to vector<12x128xf32>
    %298 = arith.addf %297, %296 : vector<12x128xf32>
    %299 = arith.mulf %293, %298 : vector<12x128xf32>
    %c0_107 = arith.constant 0 : index
    %c0_108 = arith.constant 0 : index
    %c640 = arith.constant 640 : index
    %300 = vector.load %arg11[%c0_107, %c0_108, %c640] : memref<1x12x1280xf32, #tpu.memory_space<vmem>>, vector<1x12x128xf32>
    %301 = vector.shape_cast %300 : vector<1x12x128xf32> to vector<12x128xf32>
    %302 = vector.shape_cast %299 : vector<12x128xf32> to vector<1x12x128xf32>
    tpu.vector_store %arg11[%c0_107, %c0_108, %c640], %302 {strides = array<i32>} : memref<1x12x1280xf32, #tpu.memory_space<vmem>>, vector<1x12x128xf32>,
    %303 = vector.extract_strided_slice %38 {offsets = [0, 128], sizes = [12, 128], strides = [1, 1]} : vector<12x640xf32> to vector<12x128xf32>
    %304 = vector.broadcast %32 : vector<1x128xf32> to vector<12x128xf32>
    %305 = arith.addf %303, %304 : vector<12x128xf32>
    %cst_109 = arith.constant 5.000000e-01 : f32
    %306 = vector.broadcast %cst_109 : f32 to vector<12x128xf32>
    %307 = arith.mulf %306, %305 : vector<12x128xf32>
    %cst_110 = arith.constant 0.707106769 : f32
    %308 = vector.broadcast %cst_110 : f32 to vector<12x128xf32>
    %309 = arith.mulf %305, %308 : vector<12x128xf32>
    %310 = math.erf %309 : vector<12x128xf32>
    %cst_111 = arith.constant 1.000000e+00 : f32
    %311 = vector.broadcast %cst_111 : f32 to vector<12x128xf32>
    %312 = arith.addf %311, %310 : vector<12x128xf32>
    %313 = arith.mulf %307, %312 : vector<12x128xf32>
    %cst_112 = arith.constant dense<0.000000e+00> : vector<12xf32>
    %314 = vector.multi_reduction <add>, %313, %cst_112 [1] : vector<12x128xf32> to vector<12xf32>
    %315 = vector.shape_cast %314 : vector<12xf32> to vector<12x1xf32>
    %cst_113 = arith.constant 1.280000e+02 : f32
    %316 = vector.broadcast %cst_113 : f32 to vector<12x1xf32>
    %317 = arith.divf %315, %316 : vector<12x1xf32>
    %318 = vector.broadcast %317 : vector<12x1xf32> to vector<12x128xf32>
    %319 = arith.subf %313, %318 : vector<12x128xf32>
    %320 = arith.mulf %319, %319 : vector<12x128xf32>
    %cst_114 = arith.constant dense<0.000000e+00> : vector<12xf32>
    %321 = vector.multi_reduction <add>, %320, %cst_114 [1] : vector<12x128xf32> to vector<12xf32>
    %322 = vector.shape_cast %321 : vector<12xf32> to vector<12x1xf32>
    %cst_115 = arith.constant 1.280000e+02 : f32
    %323 = vector.broadcast %cst_115 : f32 to vector<12x1xf32>
    %324 = arith.divf %322, %323 : vector<12x1xf32>
    %325 = vector.broadcast %317 : vector<12x1xf32> to vector<12x128xf32>
    %326 = arith.subf %313, %325 : vector<12x128xf32>
    %cst_116 = arith.constant 9.99999974E-6 : f32
    %327 = vector.broadcast %cst_116 : f32 to vector<12x1xf32>
    %328 = arith.addf %324, %327 : vector<12x1xf32>
    %329 = math.rsqrt %328 : vector<12x1xf32>
    %330 = vector.broadcast %329 : vector<12x1xf32> to vector<12x128xf32>
    %331 = arith.mulf %326, %330 : vector<12x128xf32>
    %332 = vector.broadcast %33 : vector<1x128xf32> to vector<12x128xf32>
    %333 = arith.mulf %331, %332 : vector<12x128xf32>
    %334 = vector.broadcast %34 : vector<1x128xf32> to vector<12x128xf32>
    %335 = arith.addf %333, %334 : vector<12x128xf32>
    %cst_117 = arith.constant 5.000000e-01 : f32
    %336 = vector.broadcast %cst_117 : f32 to vector<12x128xf32>
    %337 = arith.mulf %336, %335 : vector<12x128xf32>
    %cst_118 = arith.constant 0.707106769 : f32
    %338 = vector.broadcast %cst_118 : f32 to vector<12x128xf32>
    %339 = arith.mulf %335, %338 : vector<12x128xf32>
    %340 = math.erf %339 : vector<12x128xf32>
    %cst_119 = arith.constant 1.000000e+00 : f32
    %341 = vector.broadcast %cst_119 : f32 to vector<12x128xf32>
    %342 = arith.addf %341, %340 : vector<12x128xf32>
    %343 = arith.mulf %337, %342 : vector<12x128xf32>
    %c0_120 = arith.constant 0 : index
    %c0_121 = arith.constant 0 : index
    %c768 = arith.constant 768 : index
    %344 = vector.load %arg11[%c0_120, %c0_121, %c768] : memref<1x12x1280xf32, #tpu.memory_space<vmem>>, vector<1x12x128xf32>
    %345 = vector.shape_cast %344 : vector<1x12x128xf32> to vector<12x128xf32>
    %346 = vector.shape_cast %343 : vector<12x128xf32> to vector<1x12x128xf32>
    tpu.vector_store %arg11[%c0_120, %c0_121, %c768], %346 {strides = array<i32>} : memref<1x12x1280xf32, #tpu.memory_space<vmem>>, vector<1x12x128xf32>,
    %347 = vector.extract_strided_slice %38 {offsets = [0, 256], sizes = [12, 128], strides = [1, 1]} : vector<12x640xf32> to vector<12x128xf32>
    %348 = vector.broadcast %32 : vector<1x128xf32> to vector<12x128xf32>
    %349 = arith.addf %347, %348 : vector<12x128xf32>
    %cst_122 = arith.constant 5.000000e-01 : f32
    %350 = vector.broadcast %cst_122 : f32 to vector<12x128xf32>
    %351 = arith.mulf %350, %349 : vector<12x128xf32>
    %cst_123 = arith.constant 0.707106769 : f32
    %352 = vector.broadcast %cst_123 : f32 to vector<12x128xf32>
    %353 = arith.mulf %349, %352 : vector<12x128xf32>
    %354 = math.erf %353 : vector<12x128xf32>
    %cst_124 = arith.constant 1.000000e+00 : f32
    %355 = vector.broadcast %cst_124 : f32 to vector<12x128xf32>
    %356 = arith.addf %355, %354 : vector<12x128xf32>
    %357 = arith.mulf %351, %356 : vector<12x128xf32>
    %cst_125 = arith.constant dense<0.000000e+00> : vector<12xf32>
    %358 = vector.multi_reduction <add>, %357, %cst_125 [1] : vector<12x128xf32> to vector<12xf32>
    %359 = vector.shape_cast %358 : vector<12xf32> to vector<12x1xf32>
    %cst_126 = arith.constant 1.280000e+02 : f32
    %360 = vector.broadcast %cst_126 : f32 to vector<12x1xf32>
    %361 = arith.divf %359, %360 : vector<12x1xf32>
    %362 = vector.broadcast %361 : vector<12x1xf32> to vector<12x128xf32>
    %363 = arith.subf %357, %362 : vector<12x128xf32>
    %364 = arith.mulf %363, %363 : vector<12x128xf32>
    %cst_127 = arith.constant dense<0.000000e+00> : vector<12xf32>
    %365 = vector.multi_reduction <add>, %364, %cst_127 [1] : vector<12x128xf32> to vector<12xf32>
    %366 = vector.shape_cast %365 : vector<12xf32> to vector<12x1xf32>
    %cst_128 = arith.constant 1.280000e+02 : f32
    %367 = vector.broadcast %cst_128 : f32 to vector<12x1xf32>
    %368 = arith.divf %366, %367 : vector<12x1xf32>
    %369 = vector.broadcast %361 : vector<12x1xf32> to vector<12x128xf32>
    %370 = arith.subf %357, %369 : vector<12x128xf32>
    %cst_129 = arith.constant 9.99999974E-6 : f32
    %371 = vector.broadcast %cst_129 : f32 to vector<12x1xf32>
    %372 = arith.addf %368, %371 : vector<12x1xf32>
    %373 = math.rsqrt %372 : vector<12x1xf32>
    %374 = vector.broadcast %373 : vector<12x1xf32> to vector<12x128xf32>
    %375 = arith.mulf %370, %374 : vector<12x128xf32>
    %376 = vector.broadcast %33 : vector<1x128xf32> to vector<12x128xf32>
    %377 = arith.mulf %375, %376 : vector<12x128xf32>
    %378 = vector.broadcast %34 : vector<1x128xf32> to vector<12x128xf32>
    %379 = arith.addf %377, %378 : vector<12x128xf32>
    %cst_130 = arith.constant 5.000000e-01 : f32
    %380 = vector.broadcast %cst_130 : f32 to vector<12x128xf32>
    %381 = arith.mulf %380, %379 : vector<12x128xf32>
    %cst_131 = arith.constant 0.707106769 : f32
    %382 = vector.broadcast %cst_131 : f32 to vector<12x128xf32>
    %383 = arith.mulf %379, %382 : vector<12x128xf32>
    %384 = math.erf %383 : vector<12x128xf32>
    %cst_132 = arith.constant 1.000000e+00 : f32
    %385 = vector.broadcast %cst_132 : f32 to vector<12x128xf32>
    %386 = arith.addf %385, %384 : vector<12x128xf32>
    %387 = arith.mulf %381, %386 : vector<12x128xf32>
    %c0_133 = arith.constant 0 : index
    %c0_134 = arith.constant 0 : index
    %c896 = arith.constant 896 : index
    %388 = vector.load %arg11[%c0_133, %c0_134, %c896] : memref<1x12x1280xf32, #tpu.memory_space<vmem>>, vector<1x12x128xf32>
    %389 = vector.shape_cast %388 : vector<1x12x128xf32> to vector<12x128xf32>
    %390 = vector.shape_cast %387 : vector<12x128xf32> to vector<1x12x128xf32>
    tpu.vector_store %arg11[%c0_133, %c0_134, %c896], %390 {strides = array<i32>} : memref<1x12x1280xf32, #tpu.memory_space<vmem>>, vector<1x12x128xf32>,
    %391 = vector.extract_strided_slice %38 {offsets = [0, 384], sizes = [12, 128], strides = [1, 1]} : vector<12x640xf32> to vector<12x128xf32>
    %392 = vector.broadcast %32 : vector<1x128xf32> to vector<12x128xf32>
    %393 = arith.addf %391, %392 : vector<12x128xf32>
    %cst_135 = arith.constant 5.000000e-01 : f32
    %394 = vector.broadcast %cst_135 : f32 to vector<12x128xf32>
    %395 = arith.mulf %394, %393 : vector<12x128xf32>
    %cst_136 = arith.constant 0.707106769 : f32
    %396 = vector.broadcast %cst_136 : f32 to vector<12x128xf32>
    %397 = arith.mulf %393, %396 : vector<12x128xf32>
    %398 = math.erf %397 : vector<12x128xf32>
    %cst_137 = arith.constant 1.000000e+00 : f32
    %399 = vector.broadcast %cst_137 : f32 to vector<12x128xf32>
    %400 = arith.addf %399, %398 : vector<12x128xf32>
    %401 = arith.mulf %395, %400 : vector<12x128xf32>
    %cst_138 = arith.constant dense<0.000000e+00> : vector<12xf32>
    %402 = vector.multi_reduction <add>, %401, %cst_138 [1] : vector<12x128xf32> to vector<12xf32>
    %403 = vector.shape_cast %402 : vector<12xf32> to vector<12x1xf32>
    %cst_139 = arith.constant 1.280000e+02 : f32
    %404 = vector.broadcast %cst_139 : f32 to vector<12x1xf32>
    %405 = arith.divf %403, %404 : vector<12x1xf32>
    %406 = vector.broadcast %405 : vector<12x1xf32> to vector<12x128xf32>
    %407 = arith.subf %401, %406 : vector<12x128xf32>
    %408 = arith.mulf %407, %407 : vector<12x128xf32>
    %cst_140 = arith.constant dense<0.000000e+00> : vector<12xf32>
    %409 = vector.multi_reduction <add>, %408, %cst_140 [1] : vector<12x128xf32> to vector<12xf32>
    %410 = vector.shape_cast %409 : vector<12xf32> to vector<12x1xf32>
    %cst_141 = arith.constant 1.280000e+02 : f32
    %411 = vector.broadcast %cst_141 : f32 to vector<12x1xf32>
    %412 = arith.divf %410, %411 : vector<12x1xf32>
    %413 = vector.broadcast %405 : vector<12x1xf32> to vector<12x128xf32>
    %414 = arith.subf %401, %413 : vector<12x128xf32>
    %cst_142 = arith.constant 9.99999974E-6 : f32
    %415 = vector.broadcast %cst_142 : f32 to vector<12x1xf32>
    %416 = arith.addf %412, %415 : vector<12x1xf32>
    %417 = math.rsqrt %416 : vector<12x1xf32>
    %418 = vector.broadcast %417 : vector<12x1xf32> to vector<12x128xf32>
    %419 = arith.mulf %414, %418 : vector<12x128xf32>
    %420 = vector.broadcast %33 : vector<1x128xf32> to vector<12x128xf32>
    %421 = arith.mulf %419, %420 : vector<12x128xf32>
    %422 = vector.broadcast %34 : vector<1x128xf32> to vector<12x128xf32>
    %423 = arith.addf %421, %422 : vector<12x128xf32>
    %cst_143 = arith.constant 5.000000e-01 : f32
    %424 = vector.broadcast %cst_143 : f32 to vector<12x128xf32>
    %425 = arith.mulf %424, %423 : vector<12x128xf32>
    %cst_144 = arith.constant 0.707106769 : f32
    %426 = vector.broadcast %cst_144 : f32 to vector<12x128xf32>
    %427 = arith.mulf %423, %426 : vector<12x128xf32>
    %428 = math.erf %427 : vector<12x128xf32>
    %cst_145 = arith.constant 1.000000e+00 : f32
    %429 = vector.broadcast %cst_145 : f32 to vector<12x128xf32>
    %430 = arith.addf %429, %428 : vector<12x128xf32>
    %431 = arith.mulf %425, %430 : vector<12x128xf32>
    %c0_146 = arith.constant 0 : index
    %c0_147 = arith.constant 0 : index
    %c1024 = arith.constant 1024 : index
    %432 = vector.load %arg11[%c0_146, %c0_147, %c1024] : memref<1x12x1280xf32, #tpu.memory_space<vmem>>, vector<1x12x128xf32>
    %433 = vector.shape_cast %432 : vector<1x12x128xf32> to vector<12x128xf32>
    %434 = vector.shape_cast %431 : vector<12x128xf32> to vector<1x12x128xf32>
    tpu.vector_store %arg11[%c0_146, %c0_147, %c1024], %434 {strides = array<i32>} : memref<1x12x1280xf32, #tpu.memory_space<vmem>>, vector<1x12x128xf32>,
    %435 = vector.extract_strided_slice %38 {offsets = [0, 512], sizes = [12, 128], strides = [1, 1]} : vector<12x640xf32> to vector<12x128xf32>
    %436 = vector.broadcast %32 : vector<1x128xf32> to vector<12x128xf32>
    %437 = arith.addf %435, %436 : vector<12x128xf32>
    %cst_148 = arith.constant 5.000000e-01 : f32
    %438 = vector.broadcast %cst_148 : f32 to vector<12x128xf32>
    %439 = arith.mulf %438, %437 : vector<12x128xf32>
    %cst_149 = arith.constant 0.707106769 : f32
    %440 = vector.broadcast %cst_149 : f32 to vector<12x128xf32>
    %441 = arith.mulf %437, %440 : vector<12x128xf32>
    %442 = math.erf %441 : vector<12x128xf32>
    %cst_150 = arith.constant 1.000000e+00 : f32
    %443 = vector.broadcast %cst_150 : f32 to vector<12x128xf32>
    %444 = arith.addf %443, %442 : vector<12x128xf32>
    %445 = arith.mulf %439, %444 : vector<12x128xf32>
    %cst_151 = arith.constant dense<0.000000e+00> : vector<12xf32>
    %446 = vector.multi_reduction <add>, %445, %cst_151 [1] : vector<12x128xf32> to vector<12xf32>
    %447 = vector.shape_cast %446 : vector<12xf32> to vector<12x1xf32>
    %cst_152 = arith.constant 1.280000e+02 : f32
    %448 = vector.broadcast %cst_152 : f32 to vector<12x1xf32>
    %449 = arith.divf %447, %448 : vector<12x1xf32>
    %450 = vector.broadcast %449 : vector<12x1xf32> to vector<12x128xf32>
    %451 = arith.subf %445, %450 : vector<12x128xf32>
    %452 = arith.mulf %451, %451 : vector<12x128xf32>
    %cst_153 = arith.constant dense<0.000000e+00> : vector<12xf32>
    %453 = vector.multi_reduction <add>, %452, %cst_153 [1] : vector<12x128xf32> to vector<12xf32>
    %454 = vector.shape_cast %453 : vector<12xf32> to vector<12x1xf32>
    %cst_154 = arith.constant 1.280000e+02 : f32
    %455 = vector.broadcast %cst_154 : f32 to vector<12x1xf32>
    %456 = arith.divf %454, %455 : vector<12x1xf32>
    %457 = vector.broadcast %449 : vector<12x1xf32> to vector<12x128xf32>
    %458 = arith.subf %445, %457 : vector<12x128xf32>
    %cst_155 = arith.constant 9.99999974E-6 : f32
    %459 = vector.broadcast %cst_155 : f32 to vector<12x1xf32>
    %460 = arith.addf %456, %459 : vector<12x1xf32>
    %461 = math.rsqrt %460 : vector<12x1xf32>
    %462 = vector.broadcast %461 : vector<12x1xf32> to vector<12x128xf32>
    %463 = arith.mulf %458, %462 : vector<12x128xf32>
    %464 = vector.broadcast %33 : vector<1x128xf32> to vector<12x128xf32>
    %465 = arith.mulf %463, %464 : vector<12x128xf32>
    %466 = vector.broadcast %34 : vector<1x128xf32> to vector<12x128xf32>
    %467 = arith.addf %465, %466 : vector<12x128xf32>
    %cst_156 = arith.constant 5.000000e-01 : f32
    %468 = vector.broadcast %cst_156 : f32 to vector<12x128xf32>
    %469 = arith.mulf %468, %467 : vector<12x128xf32>
    %cst_157 = arith.constant 0.707106769 : f32
    %470 = vector.broadcast %cst_157 : f32 to vector<12x128xf32>
    %471 = arith.mulf %467, %470 : vector<12x128xf32>
    %472 = math.erf %471 : vector<12x128xf32>
    %cst_158 = arith.constant 1.000000e+00 : f32
    %473 = vector.broadcast %cst_158 : f32 to vector<12x128xf32>
    %474 = arith.addf %473, %472 : vector<12x128xf32>
    %475 = arith.mulf %469, %474 : vector<12x128xf32>
    %c0_159 = arith.constant 0 : index
    %c0_160 = arith.constant 0 : index
    %c1152 = arith.constant 1152 : index
    %476 = vector.load %arg11[%c0_159, %c0_160, %c1152] : memref<1x12x1280xf32, #tpu.memory_space<vmem>>, vector<1x12x128xf32>
    %477 = vector.shape_cast %476 : vector<1x12x128xf32> to vector<12x128xf32>
    %478 = vector.shape_cast %475 : vector<12x128xf32> to vector<1x12x128xf32>
    tpu.vector_store %arg11[%c0_159, %c0_160, %c1152], %478 {strides = array<i32>} : memref<1x12x1280xf32, #tpu.memory_space<vmem>>, vector<1x12x128xf32>,
    return
  }
  func.func @transform_0(%arg0: i32, %arg1: i32) -> (i32, i32, i32) {
    %c0_i32 = arith.constant 0 : i32
    %c0_i32_0 = arith.constant 0 : i32
    return %arg0, %arg1, %c0_i32 : i32, i32, i32
  }
  func.func @transform_1(%arg0: i32, %arg1: i32) -> (i32, i32, i32) {
    %c0_i32 = arith.constant 0 : i32
    %c0_i32_0 = arith.constant 0 : i32
    return %arg0, %arg1, %c0_i32 : i32, i32, i32
  }
  func.func @transform_2(%arg0: i32, %arg1: i32) -> (i32, i32) {
    %c0_i32 = arith.constant 0 : i32
    %c0_i32_0 = arith.constant 0 : i32
    %c0_i32_1 = arith.constant 0 : i32
    return %c0_i32, %c0_i32_0 : i32, i32
  }
  func.func @transform_3(%arg0: i32, %arg1: i32) -> (i32, i32) {
    %c0_i32 = arith.constant 0 : i32
    %c0_i32_0 = arith.constant 0 : i32
    %c0_i32_1 = arith.constant 0 : i32
    return %c0_i32, %c0_i32_0 : i32, i32
  }
  func.func @transform_4(%arg0: i32, %arg1: i32) -> (i32, i32) {
    %c0_i32 = arith.constant 0 : i32
    %c0_i32_0 = arith.constant 0 : i32
    %c0_i32_1 = arith.constant 0 : i32
    return %c0_i32, %c0_i32_0 : i32, i32
  }
  func.func @transform_5(%arg0: i32, %arg1: i32) -> (i32, i32) {
    %c0_i32 = arith.constant 0 : i32
    %c0_i32_0 = arith.constant 0 : i32
    %c0_i32_1 = arith.constant 0 : i32
    return %c0_i32, %c0_i32_0 : i32, i32
  }
  func.func @transform_6(%arg0: i32, %arg1: i32) -> (i32, i32) {
    %c0_i32 = arith.constant 0 : i32
    %c0_i32_0 = arith.constant 0 : i32
    %c0_i32_1 = arith.constant 0 : i32
    return %c0_i32, %c0_i32_0 : i32, i32
  }
  func.func @transform_7(%arg0: i32, %arg1: i32) -> (i32, i32) {
    %c0_i32 = arith.constant 0 : i32
    %c0_i32_0 = arith.constant 0 : i32
    %c0_i32_1 = arith.constant 0 : i32
    return %c0_i32, %c0_i32_0 : i32, i32
  }
  func.func @transform_8(%arg0: i32, %arg1: i32) -> (i32, i32) {
    %c0_i32 = arith.constant 0 : i32
    %c0_i32_0 = arith.constant 0 : i32
    %c0_i32_1 = arith.constant 0 : i32
    return %c0_i32, %c0_i32_0 : i32, i32
  }
  func.func @transform_9(%arg0: i32, %arg1: i32) -> (i32, i32, i32) {
    %c0_i32 = arith.constant 0 : i32
    %c0_i32_0 = arith.constant 0 : i32
    return %arg0, %arg1, %c0_i32 : i32, i32, i32
  }
}

</mosaic_0001>

<bundles_post_ra>
// kernel: _lambda_.2
= control target key start
LH: loop header
LB: loop body
LE: loop exit
PB: predicated region body
PF: predicated region fallthrough
CT: control target
= control target key end

     0   :  { %s996_s24 = smov 0   ;;  %s998_s25 = smov 0   ;;  %s1133_s0 = inlined_call_operand.vmem [shape: f32[2,10,12,23], index: 0, kind: input, shape index: {}]   ;;  %s1134_s1 = inlined_call_operand.vmem [shape: f32[2,5,12,23], index: 1, kind: input, shape index: {}]   ;;  %s1135_s2 = inlined_call_operand.vmem [shape: f32[10,1,23], index: 2, kind: input, shape index: {}]   ;;  %s1136_s3 = inlined_call_operand.vmem [shape: f32[5,1,23], index: 3, kind: input, shape index: {}]   ;;  %s1137_s4 = inlined_call_operand.vmem [shape: f32[23,128], index: 4, kind: input, shape index: {}]   ;;  %s1138_s5 = inlined_call_operand.vmem [shape: f32[1,128], index: 5, kind: input, shape index: {}]   ;;  %s1139_s6 = inlined_call_operand.vmem [shape: f32[1,128], index: 6, kind: input, shape index: {}]   ;;  %s1140_s7 = inlined_call_operand.vmem [shape: f32[2,12,128], index: 7, kind: output, shape index: {}]  }
   0x1   :  { %s1000_s26 = smov 0  }
   0x2 LB: > { %s29_s27 = sadd.s32 1, %s950_s25  ;;  %p821_p0 = scmp.ge.s32.totalorder %s954_s26, 1  ;;  %s954_s26 = sphi %s1000_s26, %s17_s26   ;;  %s950_s25 = sphi %s998_s25, %s1142_s25   ;;  %s946_s24 = sphi %s996_s24, %s1141_s24  }
   0x3   : > { %p31_p1 = scmp.ge.s32.totalorder %s29_s27, 2  ;;  %p275_p2 = scmp.lt.s32.totalorder %s954_s26, 3 }
   0x5   : > { %s1144_s27 = smov (%p31_p1, %s29_s27), 0  ;;  %p276_p3 = pnand %p821_p0, %p275_p2 }
   0x6   : > { %p325_p4 = scmp.lt.s32.totalorder (!%p276_p3), %s946_s24, 1 }
   0x7   : > { %279 = sbr.rel (%p276_p3) target bundleno = 561 (0x231), region = 48 }
   0xc   : > { %v577_v0 = vld [vmem:[%s1137_s4 + $0x10] sm:$0x7f]  ;;  %vm585_vm0 = vcmask 1046528   ;;  %v576_v1 = vld [vmem:[%s1137_s4 + $0x8] sm:$0xff]  ;;  %v575_v2 = vld [vmem:[%s1137_s4] sm:$0xff]  ;;  %s1146_s24 = smov (!%p325_p4, %s946_s24), 1 }
   0xd   : > { %893 = vmatprep.subr.msk.mxu0 %vm585_vm0, %v577_v0  ;;  %s902_s11 = smul.u32 160, %s1146_s24  ;;  %v826_v3 = vld [vmem:[%s1135_s2] ss:$0 sm:$0xff]  ;;  %v830_v4 = vld [vmem:[%s1135_s2 + $0x1] ss:$0 sm:$0xff]  ;;  %vm578_vm1 = vcmask 187392  }
   0xe   : > { %894 = vmatpush3.msk.msra.mxu0 %vm585_vm0, %v577_v0  ;;  %v834_v5 = vld [vmem:[%s1135_s2 + $0x2] ss:$0 sm:$0xff]  ;;  %v838_v6 = vld [vmem:[%s1135_s2 + $0x3] ss:$0 sm:$0xff]  ;;  %v842_v10 = vld [vmem:[%s1135_s2 + $0x4] ss:$0 sm:$0xff] }
   0xf   : > { %895 = vmatprep.subr.mxu0 %v576_v1  ;;  %s1035_s18 = scalar_lea.vmem %s1133_s0, %s902_s11  ;;  %v846_v28 = vld [vmem:[%s1135_s2 + $0x5] ss:$0 sm:$0xff]  ;;  %v850_v35 = vld [vmem:[%s1135_s2 + $0x6] ss:$0 sm:$0xff]  ;;  %s903_s10 = smul.u32 80, %s1146_s24  ;;  %vm668_vm2 = vcmask 1043456  }
  0x10   : > { %896 = vmatpush3.msra.mxu0 %v576_v1  ;;  %v354_v7 = vld [vmem:[%s1035_s18] sm:$0xff]  ;;  %v355_v8 = vld [vmem:[%s1035_s18 + $0x8] sm:$0xf]  ;;  %v827_v9 = vld [vmem:[%s1035_s18 + $0x10] sm:$0xff]  ;;  %s887_s13 = sshll.u32 %s1146_s24, 4 }
  0x11   : > { %897 = vmatprep.subr.mxu0 %v575_v2  ;;  %v363_v11 = vmul.f32 %v826_v3, %v354_v7  ;;  %v364_v12 = vmul.f32 %v826_v3, %v355_v8  ;;  %v828_v13 = vld [vmem:[%s1035_s18 + $0x18] sm:$0xf]  ;;  %v376_v14 = vmul.f32 %v830_v4, %v827_v9  ;;  %v831_v15 = vld [vmem:[%s1035_s18 + $0x20] sm:$0xff]  ;;  %v832_v16 = vld [vmem:[%s1035_s18 + $0x28] sm:$0xf]  ;;  %s1079_s17 = scalar_lea.vmem %s1134_s1, %s903_s10  ;;  %s352_s19 = scalar_lea.vmem %s1140_s7, %s887_s13 }
  0x12   : > { %898 = vmatpush3.msra.mxu0 %v575_v2  ;;  %v377_v17 = vmul.f32 %v830_v4, %v828_v13  ;;  %v391_v18 = vmul.f32 %v834_v5, %v831_v15  ;;  %v392_v19 = vmul.f32 %v834_v5, %v832_v16  ;;  %v835_v20 = vld [vmem:[%s1035_s18 + $0x30] sm:$0xff]  ;;  %v836_v21 = vld [vmem:[%s1035_s18 + $0x38] sm:$0xf]  ;;  %v839_v22 = vld [vmem:[%s1035_s18 + $0x40] sm:$0xff] }
  0x13   : > { %v378_v23 = vadd.f32 %v376_v14, %v363_v11  ;;  %v406_v24 = vmul.f32 %v838_v6, %v835_v20  ;;  %v840_v25 = vld [vmem:[%s1035_s18 + $0x48] sm:$0xf]  ;;  %v407_v26 = vmul.f32 %v838_v6, %v836_v21  ;;  %v843_v27 = vld [vmem:[%s1035_s18 + $0x50] sm:$0xff]  ;;  %v421_v31 = vmul.f32 %v842_v10, %v839_v22  ;;  %v844_v32 = vld [vmem:[%s1035_s18 + $0x58] sm:$0xf] }
  0x14   : > { %v379_v29 = vadd.f32 %v377_v17, %v364_v12  ;;  %v422_v33 = vmul.f32 %v842_v10, %v840_v25  ;;  %v847_v34 = vld [vmem:[%s1035_s18 + $0x60] sm:$0xff]  ;;  %v436_v38 = vmul.f32 %v846_v28, %v843_v27  ;;  %v848_v39 = vld [vmem:[%s1035_s18 + $0x68] sm:$0xf]  ;;  %v437_v40 = vmul.f32 %v846_v28, %v844_v32  ;;  %v851_v41 = vld [vmem:[%s1035_s18 + $0x70] sm:$0xff] }
  0x15   : > { %v393_v30 = vadd.f32 %v391_v18, %v378_v23  ;;  %v854_v42 = vld [vmem:[%s1135_s2 + $0x7] ss:$0 sm:$0xff]  ;;  %v451_v45 = vmul.f32 %v850_v35, %v847_v34  ;;  %v852_v46 = vld [vmem:[%s1035_s18 + $0x78] sm:$0xf]  ;;  %v452_v47 = vmul.f32 %v850_v35, %v848_v39  ;;  %v858_v49 = vld [vmem:[%s1135_s2 + $0x8] ss:$0 sm:$0xff] }
  0x16   : > { %v394_v36 = vadd.f32 %v392_v19, %v379_v29  ;;  %v855_v48 = vld [vmem:[%s1035_s18 + $0x80] sm:$0xff]  ;;  %v466_v52 = vmul.f32 %v854_v42, %v851_v41  ;;  %v856_v53 = vld [vmem:[%s1035_s18 + $0x88] sm:$0xf]  ;;  %v467_v54 = vmul.f32 %v854_v42, %v852_v46  ;;  %v859_v55 = vld [vmem:[%s1035_s18 + $0x90] sm:$0xff] }
  0x17   : > { %v408_v37 = vadd.f32 %v406_v24, %v393_v30  ;;  %v862_v56 = vld [vmem:[%s1135_s2 + $0x9] ss:$0 sm:$0xff]  ;;  %v481_v59 = vmul.f32 %v858_v49, %v855_v48  ;;  %v860_v60 = vld [vmem:[%s1035_s18 + $0x98] sm:$0xf]  ;;  %v482_v61 = vmul.f32 %v858_v49, %v856_v53  ;;  %v500_v62 = vld [vmem:[%s1079_s17] sm:$0xff] }
  0x18   : > { %v409_v43 = vadd.f32 %v407_v26, %v394_v36  ;;  %v863_v63 = vld [vmem:[%s1136_s3] ss:$0 sm:$0xff]  ;;  %v496_v2 = vmul.f32 %v862_v56, %v859_v55  ;;  %v501_v3 = vld [vmem:[%s1079_s17 + $0x8] sm:$0xf]  ;;  %v497_v4 = vmul.f32 %v862_v56, %v860_v60  ;;  %v864_v5 = vld [vmem:[%s1079_s17 + $0x10] sm:$0xff] }
  0x19   : > { %v423_v44 = vadd.f32 %v421_v31, %v408_v37  ;;  %v867_v6 = vld [vmem:[%s1136_s3 + $0x1] ss:$0 sm:$0xff]  ;;  %v509_v9 = vmul.f32 %v863_v63, %v500_v62  ;;  %v865_v10 = vld [vmem:[%s1079_s17 + $0x18] sm:$0xf]  ;;  %v510_v11 = vmul.f32 %v863_v63, %v501_v3  ;;  %v871_v13 = vld [vmem:[%s1136_s3 + $0x2] ss:$0 sm:$0xff] }
  0x1a   : > { %v424_v50 = vadd.f32 %v422_v33, %v409_v43  ;;  %v868_v12 = vld [vmem:[%s1079_s17 + $0x20] sm:$0xff]  ;;  %v524_v16 = vmul.f32 %v867_v6, %v864_v5  ;;  %v869_v17 = vld [vmem:[%s1079_s17 + $0x28] sm:$0xf]  ;;  %v525_v18 = vmul.f32 %v867_v6, %v865_v10  ;;  %v872_v19 = vld [vmem:[%s1079_s17 + $0x30] sm:$0xff] }
  0x1b   : > { %v438_v51 = vadd.f32 %v436_v38, %v423_v44  ;;  %v875_v20 = vld [vmem:[%s1136_s3 + $0x3] ss:$0 sm:$0xff]  ;;  %v539_v23 = vmul.f32 %v871_v13, %v868_v12  ;;  %v873_v24 = vld [vmem:[%s1079_s17 + $0x38] sm:$0xf]  ;;  %v540_v25 = vmul.f32 %v871_v13, %v869_v17  ;;  %v879_v27 = vld [vmem:[%s1136_s3 + $0x4] ss:$0 sm:$0xff] }
  0x1c   : > { %v439_v57 = vadd.f32 %v437_v40, %v424_v50  ;;  %v876_v26 = vld [vmem:[%s1079_s17 + $0x40] sm:$0xff]  ;;  %v554_v30 = vmul.f32 %v875_v20, %v872_v19  ;;  %v877_v31 = vld [vmem:[%s1079_s17 + $0x48] sm:$0xf]  ;;  %v555_v32 = vmul.f32 %v875_v20, %v873_v24 }
  0x1d   : > { %v453_v58 = vadd.f32 %v451_v45, %v438_v51  ;;  %v569_v35 = vmul.f32 %v879_v27, %v876_v26  ;;  %v570_v36 = vmul.f32 %v879_v27, %v877_v31  ;;  %v884_v3 = vld [vmem:[%s1139_s6] ss:$0 sm:$0xff] }
  0x1e   : > { %v454_v0 = vadd.f32 %v452_v47, %v439_v57 }
  0x1f   : > { %v468_v1 = vadd.f32 %v466_v52, %v453_v58 }
  0x20   : > { %v469_v7 = vadd.f32 %v467_v54, %v454_v0 }
  0x21   : > { %v483_v8 = vadd.f32 %v481_v59, %v468_v1  ;;  %v883_v1 = vld [vmem:[%s1138_s5] ss:$0 sm:$0xff] }
  0x22   : > { %v484_v14 = vadd.f32 %v482_v61, %v469_v7 }
  0x23   : > { %v498_v15 = vadd.f32 %v496_v2, %v483_v8 }
  0x24   : > { %v499_v21 = vadd.f32 %v497_v4, %v484_v14 }
  0x25   : > { %v511_v22 = vadd.f32 %v509_v9, %v498_v15 }
  0x26   : > { %v512_v28 = vadd.f32 %v510_v11, %v499_v21 }
  0x27   : > { %v526_v29 = vadd.f32 %v524_v16, %v511_v22 }
  0x28   : > { %v527_v33 = vadd.f32 %v525_v18, %v512_v28 }
  0x29   : > { %v541_v34 = vadd.f32 %v539_v23, %v526_v29 }
  0x2a   : > { %v542_v37 = vadd.f32 %v540_v25, %v527_v33 }
  0x2b   : > { %v556_v38 = vadd.f32 %v554_v30, %v541_v34 }
  0x2c   : > { %v557_v39 = vadd.f32 %v555_v32, %v542_v37 }
  0x2d   : > { %v571_v40 = vadd.f32 %v569_v35, %v556_v38 }
  0x2e   : > { %v572_v41 = vadd.f32 %v570_v36, %v557_v39 }
  0x2f   : > { %v573_v42 = vmax.f32 %v571_v40, 0.0 }
  0x30   : > { %v574_v43 = vmax.f32 %v572_v41, 0.0 }
  0x31   : > { %899 = vmatprep.mubr.msk.f32.mxu0 %vm578_vm1, %v573_v42 }
  0x32   : > { %900 = vmatmul.mubr.msk.f32.vlgmr.msra.gmra.mxu0 %vm578_vm1, %v574_v43 }
  0xf2   : > { %v901_v44 = vpop.f32.mrf.mxu0 }
  0xf3   : > { %v665_v45 = vmax.f32 %v901_v44, 0.0 }
  0xf4   : > { %v655_v46 = vpop.f32.mrf.mxu0 }
  0xf5   : > { %v669_v47 = vsel %vm668_vm2, %v665_v45, 0.0  ;;  %v664_v48 = vmax.f32 %v655_v46, 0.0 }
  0xf6   : > { %670 = vadd.xlane.f32.xlu0 %v669_v47 }
  0xfa   : > { %666 = vadd.xlane.f32.xlu0 %v664_v48 }
 0x17f   : > { %v671_v49 = vpop.xlane.xlu0 %670 }
 0x180   : > { %v674_v50 = vmul.f32 0.0078125, %v671_v49 }
 0x182   : > { %v676_v53 = vsub.f32 %v665_v45, %v674_v50 }
 0x183   : > { %v667_v51 = vpop.xlane.xlu0 %666 }
 0x184   : > { %v673_v52 = vmul.f32 0.0078125, %v667_v51  ;;  %v678_v56 = vmul.f32 %v676_v53, %v676_v53 }
 0x186   : > { %v675_v54 = vsub.f32 %v664_v48, %v673_v52  ;;  %v681_v57 = vsel %vm668_vm2, %v678_v56, 0.0 }
 0x188   : > { %v677_v55 = vmul.f32 %v675_v54, %v675_v54 }
 0x18a   : > { %679 = vadd.xlane.f32.xlu1 %v677_v55 }
 0x18e   : > { %682 = vadd.xlane.f32.xlu1 %v681_v57 }
 0x213   : > { %v680_v58 = vpop.xlane.xlu1 %679 }
 0x214   : > { %v684_v59 = vmul.f32 0.0078125, %v680_v58 }
 0x216   : > { %v686_v60 = vadd.f32 1e-05, %v684_v59 }
 0x217   : > { %v683_v61 = vpop.xlane.xlu1 %682 }
 0x218   : > { %928 = vrsqrt.f32 %v686_v60  ;;  %v685_v62 = vmul.f32 0.0078125, %v683_v61 }
 0x21a   : > { %v687_v63 = vadd.f32 1e-05, %v685_v62 }
 0x21c   : > { %930 = vrsqrt.f32 %v687_v63 }
 0x225   : > { %v929_v0 = vpop.eup %928 }
 0x226   : > { %v690_v2 = vmul.f32 %v929_v0, %v675_v54 }
 0x228   : > { %v699_v4 = vmul.f32 %v883_v1, %v690_v2 }
 0x229   : > { %v931_v5 = vpop.eup %930 }
 0x22a   : > { %v708_v6 = vadd.f32 %v884_v3, %v699_v4  ;;  %v691_v7 = vmul.f32 %v931_v5, %v676_v53 }
 0x22c   : > { %710 = vst [vmem:[%s352_s19] sm:$0xff] %v708_v6  ;;  %v700_v8 = vmul.f32 %v883_v1, %v691_v7 }
 0x22e   : > { %v709_v9 = vadd.f32 %v884_v3, %v700_v8 }
 0x230   : > { %711 = vst [vmem:[%s352_s19 + $0x8] sm:$0xf] %v709_v9 }
 0x231 PF: > { %s17_s26 = sadd.s32 1, %s954_s26   ;;  %s1141_s24 = smov %s950_s25 }
 0x232   : > { %p14_p5 = scmp.ge.s32.totalorder %s17_s26, 4   ;;  %s1142_s25 = smov %s1144_s27 }
 0x234   :  { %16 = sbr.rel (!%p14_p5) target bundleno = 2 (0x2), region = 107 }

// kernel: _lambda_.3
= control target key start
LH: loop header
LB: loop body
LE: loop exit
PB: predicated region body
PF: predicated region fallthrough
CT: control target
= control target key end

     0   :  { %s2245_s30 = smov 0   ;;  %s2247_s10 = smov 0   ;;  %s3364_s0 = inlined_call_operand.vmem [shape: f32[2,12,128], index: 0, kind: input, shape index: {}]   ;;  %s3365_s1 = inlined_call_operand.vmem [shape: f32[2,12,128], index: 1, kind: input, shape index: {}]   ;;  %s3366_s2 = inlined_call_operand.vmem [shape: f32[128,256], index: 2, kind: input, shape index: {}]   ;;  %s3367_s3 = inlined_call_operand.vmem [shape: f32[128,128], index: 3, kind: input, shape index: {}]   ;;  %s3368_s4 = inlined_call_operand.vmem [shape: f32[1,128], index: 4, kind: input, shape index: {}]   ;;  %s3369_s5 = inlined_call_operand.vmem [shape: f32[128,640], index: 5, kind: input, shape index: {}]   ;;  %s3370_s6 = inlined_call_operand.vmem [shape: f32[1,128], index: 6, kind: input, shape index: {}]   ;;  %s3371_s7 = inlined_call_operand.vmem [shape: f32[1,128], index: 7, kind: input, shape index: {}]   ;;  %s3372_s8 = inlined_call_operand.vmem [shape: f32[1,128], index: 8, kind: input, shape index: {}]   ;;  %s3373_s9 = inlined_call_operand.vmem [shape: f32[2,12,1280], index: 9, kind: output, shape index: {}]  }
   0x1   :  { %s2249_s11 = smov 0  }
   0x2 LB: > { %s31_s12 = sadd.s32 1, %s2188_s10  ;;  %p1843_p0 = scmp.ge.s32.totalorder %s2192_s11, 1  ;;  %s2192_s11 = sphi %s2249_s11, %s19_s11   ;;  %s2188_s10 = sphi %s2247_s10, %s3429_s10   ;;  %s2184_s30 = sphi %s2245_s30, %s3428_s30  }
   0x3   : > { %p33_p1 = scmp.ge.s32.totalorder %s31_s12, 2  ;;  %p325_p2 = scmp.lt.s32.totalorder %s2192_s11, 3 }
   0x5   : > { %s3431_s12 = smov (%p33_p1, %s31_s12), 0  ;;  %p326_p3 = pnand %p1843_p0, %p325_p2 }
   0x7   : > { %329 = sbr.rel (%p326_p3) target bundleno = 891 (0x37b), region = 56 }
   0xc   : > { %v446_v0 = vld [vmem:[%s3366_s2 + $0xf8] sm:$0xff]  ;;  %v445_v2 = vld [vmem:[%s3366_s2 + $0xf0] sm:$0xff]  ;;  %v444_v3 = vld [vmem:[%s3366_s2 + $0xe8] sm:$0xff]  ;;  %p380_p4 = scmp.lt.s32.totalorder %s2184_s30, 1  ;;  %v3374_v51 = vmov 0.0   ;;  %vm1208_vm0 = vcmask 1043456  }
   0xd   : > { %v539_v1 = vld [vmem:[%s3367_s3 + $0x78] sm:$0xff]  ;;  %447 = vmatprep.subr.mxu0 %v446_v0  ;;  %v538_v4 = vld [vmem:[%s3367_s3 + $0x70] sm:$0xff]  ;;  %v443_v5 = vld [vmem:[%s3366_s2 + $0xe0] sm:$0xff]  ;;  %511 = vmatprep.mubr.f32.mxu0 %v3374_v51 }
   0xe   : > { %1911 = vmatprep.subr.mxu1 %v539_v1  ;;  %448 = vmatpush1.msra.mxu0 %v445_v2  ;;  %v442_v6 = vld [vmem:[%s3366_s2 + $0xd8] sm:$0xff]  ;;  %v537_v7 = vld [vmem:[%s3367_s3 + $0x68] sm:$0xff]  ;;  %v441_v8 = vld [vmem:[%s3366_s2 + $0xd0] sm:$0xff]  ;;  %s3433_s30 = smov (!%p380_p4, %s2184_s30), 1 }
   0xf   : > { %1912 = vmatpush3.msra.mxu1 %v539_v1  ;;  %449 = vmatprep.subr.mxu0 %v444_v3  ;;  %v440_v9 = vld [vmem:[%s3366_s2 + $0xc8] sm:$0xff]  ;;  %v536_v10 = vld [vmem:[%s3367_s3 + $0x60] sm:$0xff]  ;;  %v438_v12 = vld [vmem:[%s3366_s2 + $0xb8] sm:$0xff]  ;;  %s1855_s27 = sshll.u32 %s3433_s30, 4  ;;  %s2016_s14 = smul.u32 160, %s3433_s30 }
  0x10   : > { %1913 = vmatprep.subr.mxu1 %v538_v4  ;;  %450 = vmatpush1.msra.mxu0 %v443_v5  ;;  %v439_v11 = vld [vmem:[%s3366_s2 + $0xc0] sm:$0xff]  ;;  %v535_v13 = vld [vmem:[%s3367_s3 + $0x58] sm:$0xff]  ;;  %v437_v14 = vld [vmem:[%s3366_s2 + $0xb0] sm:$0xff]  ;;  %s397_s21 = scalar_lea.vmem %s3365_s1, %s1855_s27  ;;  %s387_s29 = scalar_lea.vmem %s3364_s0, %s1855_s27 }
  0x11   : > { %1914 = vmatpush3.msra.mxu1 %v538_v4  ;;  %451 = vmatprep.subr.mxu0 %v442_v6  ;;  %v436_v15 = vld [vmem:[%s3366_s2 + $0xa8] sm:$0xff]  ;;  %v534_v16 = vld [vmem:[%s3367_s3 + $0x50] sm:$0xff]  ;;  %v435_v17 = vld [vmem:[%s3366_s2 + $0xa0] sm:$0xff]  ;;  %s3294_s15 = scalar_lea.vmem %s3373_s9, %s2016_s14 }
  0x12   : > { %1915 = vmatprep.subr.mxu1 %v537_v7  ;;  %452 = vmatpush1.msra.mxu0 %v441_v8  ;;  %v434_v18 = vld [vmem:[%s3366_s2 + $0x98] sm:$0xff]  ;;  %v533_v19 = vld [vmem:[%s3367_s3 + $0x48] sm:$0xff]  ;;  %v433_v20 = vld [vmem:[%s3366_s2 + $0x90] sm:$0xff] }
  0x13   : > { %1916 = vmatpush3.msra.mxu1 %v537_v7  ;;  %453 = vmatprep.subr.mxu0 %v440_v9  ;;  %v432_v21 = vld [vmem:[%s3366_s2 + $0x88] sm:$0xff]  ;;  %v532_v22 = vld [vmem:[%s3367_s3 + $0x40] sm:$0xff]  ;;  %v430_v24 = vld [vmem:[%s3366_s2 + $0x78] sm:$0xff] }
  0x14   : > { %1917 = vmatprep.subr.mxu1 %v536_v10  ;;  %454 = vmatpush1.msra.mxu0 %v439_v11  ;;  %v431_v23 = vld [vmem:[%s3366_s2 + $0x80] sm:$0xff]  ;;  %v531_v25 = vld [vmem:[%s3367_s3 + $0x38] sm:$0xff]  ;;  %v429_v26 = vld [vmem:[%s3366_s2 + $0x70] sm:$0xff] }
  0x15   : > { %1918 = vmatpush3.msra.mxu1 %v536_v10  ;;  %455 = vmatprep.subr.mxu0 %v438_v12  ;;  %v428_v27 = vld [vmem:[%s3366_s2 + $0x68] sm:$0xff]  ;;  %v530_v28 = vld [vmem:[%s3367_s3 + $0x30] sm:$0xff]  ;;  %v427_v29 = vld [vmem:[%s3366_s2 + $0x60] sm:$0xff] }
  0x16   : > { %1919 = vmatprep.subr.mxu1 %v535_v13  ;;  %456 = vmatpush1.msra.mxu0 %v437_v14  ;;  %v426_v30 = vld [vmem:[%s3366_s2 + $0x58] sm:$0xff]  ;;  %v529_v31 = vld [vmem:[%s3367_s3 + $0x28] sm:$0xff]  ;;  %v425_v32 = vld [vmem:[%s3366_s2 + $0x50] sm:$0xff] }
  0x17   : > { %1920 = vmatpush3.msra.mxu1 %v535_v13  ;;  %457 = vmatprep.subr.mxu0 %v436_v15  ;;  %v424_v33 = vld [vmem:[%s3366_s2 + $0x48] sm:$0xff]  ;;  %v528_v34 = vld [vmem:[%s3367_s3 + $0x20] sm:$0xff]  ;;  %v422_v36 = vld [vmem:[%s3366_s2 + $0x38] sm:$0xff] }
  0x18   : > { %1921 = vmatprep.subr.mxu1 %v534_v16  ;;  %458 = vmatpush1.msra.mxu0 %v435_v17  ;;  %v423_v35 = vld [vmem:[%s3366_s2 + $0x40] sm:$0xff]  ;;  %v527_v37 = vld [vmem:[%s3367_s3 + $0x18] sm:$0xff]  ;;  %v421_v38 = vld [vmem:[%s3366_s2 + $0x30] sm:$0xff] }
  0x19   : > { %1922 = vmatpush3.msra.mxu1 %v534_v16  ;;  %459 = vmatprep.subr.mxu0 %v434_v18  ;;  %v420_v39 = vld [vmem:[%s3366_s2 + $0x28] sm:$0xff]  ;;  %v526_v40 = vld [vmem:[%s3367_s3 + $0x10] sm:$0xff]  ;;  %v419_v41 = vld [vmem:[%s3366_s2 + $0x20] sm:$0xff] }
  0x1a   : > { %1923 = vmatprep.subr.mxu1 %v533_v19  ;;  %460 = vmatpush1.msra.mxu0 %v433_v20  ;;  %v418_v42 = vld [vmem:[%s3366_s2 + $0x18] sm:$0xff]  ;;  %v525_v43 = vld [vmem:[%s3367_s3 + $0x8] sm:$0xff]  ;;  %v417_v44 = vld [vmem:[%s3366_s2 + $0x10] sm:$0xff] }
  0x1b   : > { %1924 = vmatpush3.msra.mxu1 %v533_v19  ;;  %461 = vmatprep.subr.mxu0 %v432_v21  ;;  %v416_v45 = vld [vmem:[%s3366_s2 + $0x8] sm:$0xff]  ;;  %v524_v46 = vld [vmem:[%s3367_s3] sm:$0xff]  ;;  %v2431_v53 = vld [vmem:[%s3369_s5 + $0x270] sm:$0xff] }
  0x1c   : > { %1925 = vmatprep.subr.mxu1 %v532_v22  ;;  %462 = vmatpush1.msra.mxu0 %v431_v23  ;;  %v415_v47 = vld [vmem:[%s3366_s2] sm:$0xff]  ;;  %v413_v50 = vld [vmem:[%s397_s21 + $0x8] sm:$0xf]  ;;  %v2436_v54 = vld [vmem:[%s3369_s5 + $0x258] sm:$0xff] }
  0x1d   : > { %1926 = vmatpush3.msra.mxu1 %v532_v22  ;;  %463 = vmatprep.subr.mxu0 %v430_v24  ;;  %v412_v48 = vld [vmem:[%s397_s21] sm:$0xff]  ;;  %v2441_v55 = vld [vmem:[%s3369_s5 + $0x268] sm:$0xff]  ;;  %v2446_v56 = vld [vmem:[%s3369_s5 + $0x238] sm:$0xff] }
  0x1e   : > { %1927 = vmatprep.subr.mxu1 %v531_v25  ;;  %464 = vmatpush1.msra.mxu0 %v429_v26  ;;  %v410_v49 = vld [vmem:[%s387_s29] sm:$0xff]  ;;  %v411_v57 = vld [vmem:[%s387_s29 + $0x8] sm:$0xf]  ;;  %v2460_v59 = vld [vmem:[%s3369_s5 + $0x230] sm:$0xff] }
  0x1f   : > { %1928 = vmatpush3.msra.mxu1 %v531_v25  ;;  %465 = vmatprep.subr.mxu0 %v428_v27  ;;  %v2426_v52 = vld [vmem:[%s3369_s5 + $0x260] sm:$0xff]  ;;  %v2453_v58 = vld [vmem:[%s3369_s5 + $0x248] sm:$0xff]  ;;  %v2472_v61 = vld [vmem:[%s3369_s5 + $0x210] sm:$0xff] }
  0x20   : > { %1929 = vmatprep.subr.mxu1 %v530_v28  ;;  %466 = vmatpush1.msra.mxu0 %v427_v29  ;;  %v2465_v60 = vld [vmem:[%s3369_s5 + $0x240] sm:$0xff]  ;;  %v2483_v63 = vld [vmem:[%s3369_s5 + $0x208] sm:$0xff]  ;;  %v2488_v0 = vld [vmem:[%s3369_s5 + $0x218] sm:$0xff] }
  0x21   : > { %1930 = vmatpush3.msra.mxu1 %v530_v28  ;;  %467 = vmatprep.subr.mxu0 %v426_v30  ;;  %v2477_v62 = vld [vmem:[%s3369_s5 + $0x220] sm:$0xff]  ;;  %v2495_v1 = vld [vmem:[%s3369_s5 + $0x1e8] sm:$0xff]  ;;  %v2500_v2 = vld [vmem:[%s3369_s5 + $0x1f8] sm:$0xff] }
  0x22   : > { %1931 = vmatprep.subr.mxu1 %v529_v31  ;;  %468 = vmatpush1.msra.mxu0 %v425_v32  ;;  %v2507_v3 = vld [vmem:[%s3369_s5 + $0x1e0] sm:$0xff]  ;;  %v2512_v4 = vld [vmem:[%s3369_s5 + $0x1f0] sm:$0xff]  ;;  %v2531_v7 = vld [vmem:[%s3369_s5 + $0x1b8] sm:$0xff] }
  0x23   : > { %1932 = vmatpush3.msra.mxu1 %v529_v31  ;;  %469 = vmatprep.subr.mxu0 %v424_v33  ;;  %v2519_v5 = vld [vmem:[%s3369_s5 + $0x1c0] sm:$0xff]  ;;  %v2524_v6 = vld [vmem:[%s3369_s5 + $0x1d0] sm:$0xff]  ;;  %v2536_v8 = vld [vmem:[%s3369_s5 + $0x1c8] sm:$0xff] }
  0x24   : > { %1933 = vmatprep.subr.mxu1 %v528_v34  ;;  %470 = vmatpush1.msra.mxu0 %v423_v35  ;;  %v2549_v9 = vld [vmem:[%s3369_s5 + $0x198] sm:$0xff]  ;;  %v2554_v10 = vld [vmem:[%s3369_s5 + $0x1a8] sm:$0xff]  ;;  %v2561_v11 = vld [vmem:[%s3369_s5 + $0x190] sm:$0xff] }
  0x25   : > { %1934 = vmatpush3.msra.mxu1 %v528_v34  ;;  %471 = vmatprep.subr.mxu0 %v422_v36  ;;  %v2566_v12 = vld [vmem:[%s3369_s5 + $0x1a0] sm:$0xff]  ;;  %v2573_v13 = vld [vmem:[%s3369_s5 + $0x170] sm:$0xff]  ;;  %v2585_v15 = vld [vmem:[%s3369_s5 + $0x168] sm:$0xff] }
  0x26   : > { %1935 = vmatprep.subr.mxu1 %v527_v37  ;;  %472 = vmatpush1.msra.mxu0 %v421_v38  ;;  %v2578_v14 = vld [vmem:[%s3369_s5 + $0x180] sm:$0xff]  ;;  %v2590_v16 = vld [vmem:[%s3369_s5 + $0x178] sm:$0xff]  ;;  %v2597_v17 = vld [vmem:[%s3369_s5 + $0x148] sm:$0xff] }
  0x27   : > { %1936 = vmatpush3.msra.mxu1 %v527_v37  ;;  %473 = vmatprep.subr.mxu0 %v420_v39  ;;  %v2602_v18 = vld [vmem:[%s3369_s5 + $0x158] sm:$0xff]  ;;  %v2609_v19 = vld [vmem:[%s3369_s5 + $0x140] sm:$0xff]  ;;  %v2614_v20 = vld [vmem:[%s3369_s5 + $0x150] sm:$0xff] }
  0x28   : > { %1937 = vmatprep.subr.mxu1 %v526_v40  ;;  %474 = vmatpush1.msra.mxu0 %v419_v41  ;;  %3393 = vst [vmem:[#allocation2_spill] sm:$0xff] %v2614_v20  ;;  %v2621_v21 = vld [vmem:[%s3369_s5 + $0x120] sm:$0xff]  ;;  %v2626_v22 = vld [vmem:[%s3369_s5 + $0x130] sm:$0xff]  ;;  %v2633_v23 = vld [vmem:[%s3369_s5 + $0x118] sm:$0xff] }
  0x29   : > { %1938 = vmatpush3.msra.mxu1 %v526_v40  ;;  %475 = vmatprep.subr.mxu0 %v418_v42  ;;  %3394 = vst [vmem:[#allocation3_spill] sm:$0xff] %v2626_v22  ;;  %v2638_v24 = vld [vmem:[%s3369_s5 + $0x128] sm:$0xff]  ;;  %v2645_v25 = vld [vmem:[%s3369_s5 + $0xf8] sm:$0xff]  ;;  %v2657_v27 = vld [vmem:[%s3369_s5 + $0xf0] sm:$0xff] }
  0x2a   : > { %1939 = vmatprep.subr.mxu1 %v525_v43  ;;  %476 = vmatpush1.msra.mxu0 %v417_v44  ;;  %3395 = vst [vmem:[#allocation4_spill] sm:$0xff] %v2638_v24  ;;  %v2650_v26 = vld [vmem:[%s3369_s5 + $0x108] sm:$0xff]  ;;  %v2662_v28 = vld [vmem:[%s3369_s5 + $0x100] sm:$0xff]  ;;  %v2669_v29 = vld [vmem:[%s3369_s5 + $0xd0] sm:$0xff] }
  0x2b   : > { %1940 = vmatpush3.msra.mxu1 %v525_v43  ;;  %477 = vmatprep.subr.mxu0 %v416_v45  ;;  %3396 = vst [vmem:[#allocation5_spill] sm:$0xff] %v2650_v26  ;;  %3397 = vst [vmem:[#allocation6_spill] sm:$0xff] %v2662_v28  ;;  %v2674_v30 = vld [vmem:[%s3369_s5 + $0xe0] sm:$0xff]  ;;  %v2681_v31 = vld [vmem:[%s3369_s5 + $0xc8] sm:$0xff] }
  0x2c   : > { %1941 = vmatprep.subr.mxu1 %v524_v46  ;;  %478 = vmatpush1.msra.mxu0 %v415_v47  ;;  %3398 = vst [vmem:[#allocation7_spill] sm:$0xff] %v2674_v30  ;;  %v2686_v32 = vld [vmem:[%s3369_s5 + $0xd8] sm:$0xff]  ;;  %v2693_v33 = vld [vmem:[%s3369_s5 + $0xa8] sm:$0xff]  ;;  %v2705_v35 = vld [vmem:[%s3369_s5 + $0xa0] sm:$0xff] }
  0x2d   : > { %1942 = vmatpush3.msra.mxu1 %v524_v46  ;;  %1943 = vmatprep.mubr.f32.mxu1 %v412_v48  ;;  %3399 = vst [vmem:[#allocation8_spill] sm:$0xff] %v2686_v32  ;;  %v2698_v34 = vld [vmem:[%s3369_s5 + $0xb8] sm:$0xff]  ;;  %v2710_v36 = vld [vmem:[%s3369_s5 + $0xb0] sm:$0xff]  ;;  %v2717_v37 = vld [vmem:[%s3369_s5 + $0x80] sm:$0xff] }
  0x2e   : > { %512 = vmatmul.mubr.f32.vlgmr.msra.gmra.mxu0 %v410_v49  ;;  %1944 = vmatmul.mubr.f32.vlgmr.msra.gmra.mxu1 %v413_v50  ;;  %3400 = vst [vmem:[#allocation9_spill] sm:$0xff] %v2698_v34  ;;  %3401 = vst [vmem:[#allocation10_spill] sm:$0xff] %v2710_v36  ;;  %v2722_v38 = vld [vmem:[%s3369_s5 + $0x90] sm:$0xff]  ;;  %v2729_v39 = vld [vmem:[%s3369_s5 + $0x78] sm:$0xff] }
  0x2f   : > { %517 = vmatprep.mubr.f32.mxu0 %v3374_v51  ;;  %730 = vmatprep.subr.mxu0 %v2426_v52  ;;  %3402 = vst [vmem:[#allocation11_spill] sm:$0xff] %v2722_v38  ;;  %v2734_v40 = vld [vmem:[%s3369_s5 + $0x88] sm:$0xff]  ;;  %v2741_v41 = vld [vmem:[%s3369_s5 + $0x58] sm:$0xff]  ;;  %v2753_v43 = vld [vmem:[%s3369_s5 + $0x50] sm:$0xff] }
  0x30   : > { %807 = vmatprep.subr.mxu1 %v2431_v53  ;;  %731 = vmatpush1.msra.mxu0 %v2436_v54  ;;  %3403 = vst [vmem:[#allocation12_spill] sm:$0xff] %v2734_v40  ;;  %v2746_v42 = vld [vmem:[%s3369_s5 + $0x68] sm:$0xff]  ;;  %v2758_v44 = vld [vmem:[%s3369_s5 + $0x60] sm:$0xff]  ;;  %v2765_v45 = vld [vmem:[%s3369_s5 + $0x30] sm:$0xff] }
  0x31   : > { %808 = vmatpush1.msra.mxu1 %v2441_v55  ;;  %732 = vmatprep.subr.mxu0 %v2446_v56  ;;  %3404 = vst [vmem:[#allocation13_spill] sm:$0xff] %v2746_v42  ;;  %3405 = vst [vmem:[#allocation14_spill] sm:$0xff] %v2758_v44  ;;  %v2770_v46 = vld [vmem:[%s3369_s5 + $0x40] sm:$0xff]  ;;  %v2777_v47 = vld [vmem:[%s3369_s5 + $0x28] sm:$0xff] }
  0x32   : > { %518 = vmatmul.mubr.f32.gmra.mxu0 %v411_v57  ;;  %809 = vmatprep.subr.mxu1 %v2453_v58  ;;  %3406 = vst [vmem:[#allocation15_spill] sm:$0xff] %v2770_v46  ;;  %v2782_v48 = vld [vmem:[%s3369_s5 + $0x38] sm:$0xff]  ;;  %v2789_v49 = vld [vmem:[%s3369_s5 + $0x8] sm:$0xff]  ;;  %v2801_v57 = vld [vmem:[%s3369_s5] sm:$0xff] }
  0x33   : > { %733 = vmatpush1.msra.mxu0 %v2460_v59  ;;  %810 = vmatpush1.msra.mxu1 %v2465_v60  ;;  %3407 = vst [vmem:[#allocation16_spill] sm:$0xff] %v2782_v48  ;;  %v2794_v50 = vld [vmem:[%s3369_s5 + $0x18] sm:$0xff] }
  0x34   : > { %734 = vmatprep.subr.mxu0 %v2472_v61  ;;  %811 = vmatprep.subr.mxu1 %v2477_v62  ;;  %3408 = vst [vmem:[#allocation17_spill] sm:$0xff] %v2794_v50 }
  0x35   : > { %735 = vmatpush1.msra.mxu0 %v2483_v63  ;;  %812 = vmatpush1.msra.mxu1 %v2488_v0 }
  0x36   : > { %736 = vmatprep.subr.mxu0 %v2495_v1  ;;  %813 = vmatprep.subr.mxu1 %v2500_v2 }
  0x37   : > { %737 = vmatpush1.msra.mxu0 %v2507_v3  ;;  %814 = vmatpush1.msra.mxu1 %v2512_v4 }
  0x38   : > { %738 = vmatprep.subr.mxu0 %v2519_v5  ;;  %815 = vmatprep.subr.mxu1 %v2524_v6 }
  0x39   : > { %739 = vmatpush1.msra.mxu0 %v2531_v7  ;;  %816 = vmatpush1.msra.mxu1 %v2536_v8 }
  0x3a   : > { %794 = vmatprep.mubr.f32.mxu0 %v3374_v51  ;;  %871 = vmatprep.mubr.f32.mxu1 %v3374_v51  ;;  %v2806_v51 = vld [vmem:[%s3369_s5 + $0x10] sm:$0xff] }
  0x3b   : > { %740 = vmatprep.subr.mxu0 %v2549_v9  ;;  %817 = vmatprep.subr.mxu1 %v2554_v10  ;;  %3409 = vst [vmem:[#allocation18_spill] sm:$0xff] %v2806_v51 }
  0x3c   : > { %741 = vmatpush1.msra.mxu0 %v2561_v11  ;;  %818 = vmatpush1.msra.mxu1 %v2566_v12 }
  0x3d   : > { %742 = vmatprep.subr.mxu0 %v2573_v13  ;;  %819 = vmatprep.subr.mxu1 %v2578_v14 }
  0x3e   : > { %743 = vmatpush1.msra.mxu0 %v2585_v15  ;;  %820 = vmatpush1.msra.mxu1 %v2590_v16 }
  0x3f   : > { %744 = vmatprep.subr.mxu0 %v2597_v17  ;;  %821 = vmatprep.subr.mxu1 %v2602_v18 }
  0x40   : > { %745 = vmatpush1.msra.mxu0 %v2609_v19  ;;  %822 = vmatpush1.msra.mxu1 %v2614_v20 }
  0x41   : > { %746 = vmatprep.subr.mxu0 %v2621_v21  ;;  %823 = vmatprep.subr.mxu1 %v2626_v22  ;;  %v2823_v22 = vld [vmem:[%s3369_s5 + $0x250] sm:$0xff] }
  0x42   : > { %747 = vmatpush1.msra.mxu0 %v2633_v23  ;;  %824 = vmatpush1.msra.mxu1 %v2638_v24 }
  0x43   : > { %748 = vmatprep.subr.mxu0 %v2645_v25  ;;  %825 = vmatprep.subr.mxu1 %v2650_v26 }
  0x44   : > { %749 = vmatpush1.msra.mxu0 %v2657_v27  ;;  %826 = vmatpush1.msra.mxu1 %v2662_v28 }
  0x45   : > { %750 = vmatprep.subr.mxu0 %v2669_v29  ;;  %827 = vmatprep.subr.mxu1 %v2674_v30 }
  0x46   : > { %751 = vmatpush1.msra.mxu0 %v2681_v31  ;;  %828 = vmatpush1.msra.mxu1 %v2686_v32 }
  0x47   : > { %752 = vmatprep.subr.mxu0 %v2693_v33  ;;  %829 = vmatprep.subr.mxu1 %v2698_v34 }
  0x48   : > { %753 = vmatpush1.msra.mxu0 %v2705_v35  ;;  %830 = vmatpush1.msra.mxu1 %v2710_v36 }
  0x49   : > { %754 = vmatprep.subr.mxu0 %v2717_v37  ;;  %831 = vmatprep.subr.mxu1 %v2722_v38 }
  0x4a   : > { %755 = vmatpush1.msra.mxu0 %v2729_v39  ;;  %832 = vmatpush1.msra.mxu1 %v2734_v40 }
  0x4b   : > { %756 = vmatprep.subr.mxu0 %v2741_v41  ;;  %833 = vmatprep.subr.mxu1 %v2746_v42 }
  0x4c   : > { %757 = vmatpush1.msra.mxu0 %v2753_v43  ;;  %834 = vmatpush1.msra.mxu1 %v2758_v44 }
  0x4d   : > { %758 = vmatprep.subr.mxu0 %v2765_v45  ;;  %835 = vmatprep.subr.mxu1 %v2770_v46 }
  0x4e   : > { %759 = vmatpush1.msra.mxu0 %v2777_v47  ;;  %836 = vmatpush1.msra.mxu1 %v2782_v48  ;;  %v2813_v48 = vld [vmem:[%s3369_s5 + $0x278] sm:$0xff] }
  0x4f   : > { %760 = vmatprep.subr.mxu0 %v2789_v49  ;;  %837 = vmatprep.subr.mxu1 %v2794_v50  ;;  %v1849_v50 = vld [vmem:[%s3368_s4] ss:$0 sm:$0xff] }
  0x50   : > { %761 = vmatpush1.msra.mxu0 %v2801_v57  ;;  %838 = vmatpush1.msra.mxu1 %v2806_v51 }
  0x51   : > { %1946 = vmatprep.subr.mxu0 %v2813_v48  ;;  %959 = vmatprep.subr.mxu1 %v2426_v52 }
  0xee   : > { %v513_v46 = vpop.f32.mrf.mxu0  ;;  %v1945_v34 = vpop.f32.mrf.mxu1 }
  0xef   : > { %v621_v44 = vadd.f32 %v1849_v50, %v513_v46 }
  0xf0   : > { %v515_v42 = vpop.f32.mrf.mxu0  ;;  %v606_v24 = vpop.f32.mrf.mxu1 }
  0xf1   : > { %v625_v40 = vmul.f32 0.70710677, %v621_v44  ;;  %v623_v30 = vmul.f32 0.5, %v621_v44  ;;  %v633_v20 = vadd.f32 %v606_v24, %v515_v42 }
  0xf2   : > { %v519_v38 = vpop.f32.mrf.mxu0 }
  0xf3   : > { %2042 = verf.f32 %v625_v40  ;;  %v622_v51 = vadd.f32 %v1849_v50, %v519_v38 }
  0xf4   : > { %v521_v24 = vpop.f32.mrf.mxu0 }
  0xf5   : > { %v626_v36 = vmul.f32 0.70710677, %v622_v51  ;;  %v624_v52 = vmul.f32 0.5, %v622_v51  ;;  %v2832_v51 = vld [vmem:[%s3369_s5 + $0x228] sm:$0xff] }
  0xf7   : > { %2044 = verf.f32 %v626_v36 }
 0x100   : > { %v2043_v32 = vpop.eup %2042 }
 0x101   : > { %v629_v28 = vadd.f32 1.0, %v2043_v32  ;;  %v2865_v32 = vld [vmem:[%s3369_s5 + $0x1b0] sm:$0xff] }
 0x103   : > { %v631_v26 = vmul.f32 %v629_v28, %v623_v30  ;;  %v3410_v30 = vmov 0.0  }
 0x104   : > { %v2045_v46 = vpop.eup %2044 }
 0x105   : > { %795 = vmatmul.mubr.f32.vlgmr.msra.gmra.mxu0 %v631_v26  ;;  %872 = vmatmul.mubr.f32.vlgmr.msra.gmra.mxu1 %v631_v26  ;;  %v630_v36 = vadd.f32 1.0, %v2045_v46 }
 0x106   : > { %1947 = vmatpush3.msra.mxu0 %v2813_v48  ;;  %960 = vmatpush1.msra.mxu1 %v2436_v54  ;;  %v2840_v54 = vadd.f32 %v1849_v50, %v633_v20  ;;  %v2856_v20 = vld [vmem:[%s3369_s5 + $0x1d8] sm:$0xff] }
 0x107   : > { %1948 = vmatprep.subr.mxu0 %v2823_v22  ;;  %961 = vmatprep.subr.mxu1 %v2446_v56  ;;  %v2836_v28 = vmul.f32 %v630_v36, %v624_v52  ;;  %v2847_v56 = vld [vmem:[%s3369_s5 + $0x200] sm:$0xff] }
 0x108   : > { %1949 = vmatpush3.msra.mxu0 %v2823_v22  ;;  %962 = vmatpush1.msra.mxu1 %v2460_v59  ;;  %v634_v59 = vadd.f32 %v1945_v34, %v521_v24 }
 0x109   : > { %800 = vmatprep.mubr.f32.mxu0 %v3410_v30  ;;  %877 = vmatprep.mubr.f32.mxu1 %v3410_v30 }
 0x10a   : > { %1950 = vmatprep.subr.mxu0 %v2832_v51  ;;  %963 = vmatprep.subr.mxu1 %v2472_v61  ;;  %v639_v61 = vmul.f32 0.70710677, %v2840_v54 }
 0x10b   : > { %801 = vmatmul.mubr.f32.gmra.mxu0 %v2836_v28  ;;  %878 = vmatmul.mubr.f32.gmra.mxu1 %v2836_v28 }
 0x10c   : > { %1951 = vmatpush3.msra.mxu0 %v2832_v51  ;;  %964 = vmatpush1.msra.mxu1 %v2483_v63  ;;  %v2869_v63 = vadd.f32 %v1849_v50, %v634_v59  ;;  %2046 = verf.f32 %v639_v61 }
 0x10d   : > { %1952 = vmatprep.subr.mxu0 %v2847_v56  ;;  %1978 = vmatprep.mubr.f32.mxu0 %v631_v26  ;;  %v637_v26 = vmul.f32 0.5, %v2840_v54 }
 0x10e   : > { %965 = vmatprep.subr.mxu1 %v2495_v1  ;;  %1953 = vmatpush3.msra.mxu0 %v2847_v56  ;;  %v2876_v1 = vld [vmem:[%s3369_s5 + $0x188] sm:$0xff] }
 0x10f   : > { %966 = vmatpush1.msra.mxu1 %v2507_v3  ;;  %1954 = vmatprep.subr.mxu0 %v2856_v20  ;;  %v2885_v3 = vld [vmem:[%s3369_s5 + $0x160] sm:$0xff] }
 0x110   : > { %967 = vmatprep.subr.mxu1 %v2519_v5  ;;  %1955 = vmatpush3.msra.mxu0 %v2856_v20  ;;  %v640_v5 = vmul.f32 0.70710677, %v2869_v63 }
 0x111   : > { %968 = vmatpush1.msra.mxu1 %v2531_v7  ;;  %1956 = vmatprep.subr.mxu0 %v2865_v32  ;;  %v2895_v7 = vld [vmem:[%s3369_s5 + $0x138] sm:$0xff] }
 0x112   : > { %969 = vmatprep.subr.mxu1 %v2549_v9  ;;  %1957 = vmatpush3.msra.mxu0 %v2865_v32  ;;  %v2904_v9 = vld [vmem:[%s3369_s5 + $0x110] sm:$0xff]  ;;  %2048 = verf.f32 %v640_v5 }
 0x113   : > { %970 = vmatpush1.msra.mxu1 %v2561_v11  ;;  %1958 = vmatprep.subr.mxu0 %v2876_v1  ;;  %v2913_v11 = vld [vmem:[%s3369_s5 + $0xe8] sm:$0xff] }
 0x114   : > { %971 = vmatprep.subr.mxu1 %v2573_v13  ;;  %1959 = vmatpush3.msra.mxu0 %v2876_v1  ;;  %v2922_v13 = vld [vmem:[%s3369_s5 + $0xc0] sm:$0xff] }
 0x115   : > { %972 = vmatpush1.msra.mxu1 %v2585_v15  ;;  %1960 = vmatprep.subr.mxu0 %v2885_v3  ;;  %v2931_v15 = vld [vmem:[%s3369_s5 + $0x98] sm:$0xff] }
 0x116   : > { %973 = vmatprep.subr.mxu1 %v2597_v17  ;;  %1961 = vmatpush3.msra.mxu0 %v2885_v3  ;;  %v2940_v17 = vld [vmem:[%s3369_s5 + $0x70] sm:$0xff] }
 0x117   : > { %974 = vmatpush1.msra.mxu1 %v2609_v19  ;;  %1962 = vmatprep.subr.mxu0 %v2895_v7 }
 0x118   : > { %975 = vmatprep.subr.mxu1 %v2621_v21  ;;  %1963 = vmatpush3.msra.mxu0 %v2895_v7  ;;  %v2949_v21 = vld [vmem:[%s3369_s5 + $0x48] sm:$0xff] }
 0x119   : > { %976 = vmatpush1.msra.mxu1 %v2633_v23  ;;  %1964 = vmatprep.subr.mxu0 %v2904_v9  ;;  %v2047_v19 = vpop.eup %2046 }
 0x11a   : > { %977 = vmatprep.subr.mxu1 %v2645_v25  ;;  %1965 = vmatpush3.msra.mxu0 %v2904_v9  ;;  %v643_v23 = vadd.f32 1.0, %v2047_v19  ;;  %v2958_v25 = vld [vmem:[%s3369_s5 + $0x20] sm:$0xff] }
 0x11b   : > { %978 = vmatpush1.msra.mxu1 %v2657_v27  ;;  %1966 = vmatprep.subr.mxu0 %v2913_v11 }
 0x11c   : > { %979 = vmatprep.subr.mxu1 %v2669_v29  ;;  %1967 = vmatpush3.msra.mxu0 %v2913_v11  ;;  %v2967_v29 = vmul.f32 %v643_v23, %v637_v26 }
 0x11d   : > { %980 = vmatpush1.msra.mxu1 %v2681_v31  ;;  %1968 = vmatprep.subr.mxu0 %v2922_v13  ;;  %v638_v31 = vmul.f32 0.5, %v2869_v63 }
 0x11e   : > { %981 = vmatprep.subr.mxu1 %v2693_v33  ;;  %1969 = vmatpush3.msra.mxu0 %v2922_v13 }
 0x11f   : > { %982 = vmatpush1.msra.mxu1 %v2705_v35  ;;  %1970 = vmatprep.subr.mxu0 %v2931_v15  ;;  %v2049_v27 = vpop.eup %2048  ;;  %v3427_v35 = vld [vmem:[#allocation18_spill] sm:$0xff] }
 0x120   : > { %983 = vmatprep.subr.mxu1 %v2717_v37  ;;  %1971 = vmatpush3.msra.mxu0 %v2931_v15  ;;  %v644_v33 = vadd.f32 1.0, %v2049_v27  ;;  %v3053_v37 = vld [vmem:[%s3370_s6] ss:$0 sm:$0xff] }
 0x121   : > { %984 = vmatpush1.msra.mxu1 %v2729_v39  ;;  %1972 = vmatprep.subr.mxu0 %v2940_v17 }
 0x122   : > { %985 = vmatprep.subr.mxu1 %v2741_v41  ;;  %1973 = vmatpush3.msra.mxu0 %v2940_v17  ;;  %v2984_v34 = vmul.f32 %v644_v33, %v638_v31 }
 0x123   : > { %986 = vmatpush1.msra.mxu1 %v2753_v43  ;;  %1974 = vmatprep.subr.mxu0 %v2949_v21 }
 0x124   : > { %987 = vmatprep.subr.mxu1 %v2765_v45  ;;  %1975 = vmatpush3.msra.mxu0 %v2949_v21 }
 0x125   : > { %988 = vmatpush1.msra.mxu1 %v2777_v47  ;;  %1976 = vmatprep.subr.mxu0 %v2958_v25 }
 0x126   : > { %989 = vmatprep.subr.mxu1 %v2789_v49  ;;  %1977 = vmatpush3.msra.mxu0 %v2958_v25 }
 0x127   : > { %990 = vmatpush1.msra.mxu1 %v2801_v57  ;;  %1023 = vmatprep.mubr.f32.mxu1 %v3410_v30 }
 0x128   : > { %1979 = vmatmul.mubr.f32.vlgmr.msra.gmra.mxu0 %v2836_v28  ;;  %1024 = vmatmul.mubr.f32.vlgmr.msra.gmra.mxu1 %v2967_v29 }
 0x129   : > { %1036 = vmatprep.subr.mxu0 %v2431_v53  ;;  %1981 = vmatprep.subr.mxu1 %v2813_v48  ;;  %v3411_v53 = vld [vmem:[#allocation2_spill] sm:$0xff] }
 0x12a   : > { %1037 = vmatpush1.msra.mxu0 %v2441_v55  ;;  %1982 = vmatpush3.msra.mxu1 %v2813_v48  ;;  %v3412_v55 = vld [vmem:[#allocation3_spill] sm:$0xff] }
 0x12b   : > { %1038 = vmatprep.subr.mxu0 %v2453_v58  ;;  %1983 = vmatprep.subr.mxu1 %v2823_v22  ;;  %v3413_v58 = vld [vmem:[#allocation4_spill] sm:$0xff] }
 0x12c   : > { %1029 = vmatprep.mubr.f32.mxu1 %v3410_v30  ;;  %1039 = vmatpush1.msra.mxu0 %v2465_v60  ;;  %v3414_v60 = vld [vmem:[#allocation5_spill] sm:$0xff] }
 0x12d   : > { %1984 = vmatpush3.msra.mxu1 %v2823_v22  ;;  %1040 = vmatprep.subr.mxu0 %v2477_v62  ;;  %v3415_v62 = vld [vmem:[#allocation6_spill] sm:$0xff]  ;;  %v3426_v22 = vld [vmem:[#allocation17_spill] sm:$0xff] }
 0x12e   : > { %1030 = vmatmul.mubr.f32.gmra.mxu1 %v2984_v34  ;;  %1985 = vmatprep.subr.mxu1 %v2832_v51 }
 0x12f   : > { %1041 = vmatpush1.msra.mxu0 %v2488_v0  ;;  %1986 = vmatpush3.msra.mxu1 %v2832_v51  ;;  %v3416_v0 = vld [vmem:[#allocation7_spill] sm:$0xff] }
 0x130   : > { %2013 = vmatprep.mubr.f32.mxu1 %v2967_v29  ;;  %1042 = vmatprep.subr.mxu0 %v2500_v2  ;;  %v3417_v2 = vld [vmem:[#allocation8_spill] sm:$0xff] }
 0x131   : > { %1987 = vmatprep.subr.mxu1 %v2847_v56  ;;  %1043 = vmatpush1.msra.mxu0 %v2512_v4  ;;  %v3418_v4 = vld [vmem:[#allocation9_spill] sm:$0xff] }
 0x132   : > { %1988 = vmatpush3.msra.mxu1 %v2847_v56  ;;  %1044 = vmatprep.subr.mxu0 %v2524_v6  ;;  %v3419_v6 = vld [vmem:[#allocation10_spill] sm:$0xff] }
 0x133   : > { %1989 = vmatprep.subr.mxu1 %v2856_v20  ;;  %1045 = vmatpush1.msra.mxu0 %v2536_v8  ;;  %v3420_v8 = vld [vmem:[#allocation11_spill] sm:$0xff] }
 0x134   : > { %1990 = vmatpush3.msra.mxu1 %v2856_v20  ;;  %1046 = vmatprep.subr.mxu0 %v2554_v10  ;;  %v3421_v10 = vld [vmem:[#allocation12_spill] sm:$0xff] }
 0x135   : > { %1991 = vmatprep.subr.mxu1 %v2865_v32  ;;  %1047 = vmatpush1.msra.mxu0 %v2566_v12  ;;  %v3422_v12 = vld [vmem:[#allocation13_spill] sm:$0xff] }
 0x136   : > { %1992 = vmatpush3.msra.mxu1 %v2865_v32  ;;  %1048 = vmatprep.subr.mxu0 %v2578_v14  ;;  %v3423_v14 = vld [vmem:[#allocation14_spill] sm:$0xff] }
 0x137   : > { %1993 = vmatprep.subr.mxu1 %v2876_v1  ;;  %1049 = vmatpush1.msra.mxu0 %v2590_v16  ;;  %v3424_v16 = vld [vmem:[#allocation15_spill] sm:$0xff] }
 0x138   : > { %1994 = vmatpush3.msra.mxu1 %v2876_v1  ;;  %1050 = vmatprep.subr.mxu0 %v2602_v18  ;;  %v3425_v18 = vld [vmem:[#allocation16_spill] sm:$0xff] }
 0x139   : > { %1995 = vmatprep.subr.mxu1 %v2885_v3  ;;  %1051 = vmatpush1.msra.mxu0 %v3411_v53 }
 0x13a   : > { %1996 = vmatpush3.msra.mxu1 %v2885_v3  ;;  %1052 = vmatprep.subr.mxu0 %v3412_v55 }
 0x13b   : > { %1997 = vmatprep.subr.mxu1 %v2895_v7  ;;  %1053 = vmatpush1.msra.mxu0 %v3413_v58 }
 0x13c   : > { %1998 = vmatpush3.msra.mxu1 %v2895_v7  ;;  %1054 = vmatprep.subr.mxu0 %v3414_v60 }
 0x13d   : > { %1999 = vmatprep.subr.mxu1 %v2904_v9  ;;  %1055 = vmatpush1.msra.mxu0 %v3415_v62 }
 0x13e   : > { %2000 = vmatpush3.msra.mxu1 %v2904_v9  ;;  %1056 = vmatprep.subr.mxu0 %v3416_v0 }
 0x13f   : > { %2001 = vmatprep.subr.mxu1 %v2913_v11  ;;  %1057 = vmatpush1.msra.mxu0 %v3417_v2 }
 0x140   : > { %2002 = vmatpush3.msra.mxu1 %v2913_v11  ;;  %1058 = vmatprep.subr.mxu0 %v3418_v4 }
 0x141   : > { %2003 = vmatprep.subr.mxu1 %v2922_v13  ;;  %1059 = vmatpush1.msra.mxu0 %v3419_v6 }
 0x142   : > { %2004 = vmatpush3.msra.mxu1 %v2922_v13  ;;  %1060 = vmatprep.subr.mxu0 %v3420_v8 }
 0x143   : > { %2005 = vmatprep.subr.mxu1 %v2931_v15  ;;  %1061 = vmatpush1.msra.mxu0 %v3421_v10 }
 0x144   : > { %2006 = vmatpush3.msra.mxu1 %v2931_v15  ;;  %1062 = vmatprep.subr.mxu0 %v3422_v12 }
 0x145   : > { %2007 = vmatprep.subr.mxu1 %v2940_v17  ;;  %1063 = vmatpush1.msra.mxu0 %v3423_v14 }
 0x146   : > { %2008 = vmatpush3.msra.mxu1 %v2940_v17  ;;  %1064 = vmatprep.subr.mxu0 %v3424_v16 }
 0x147   : > { %2009 = vmatprep.subr.mxu1 %v2949_v21  ;;  %1065 = vmatpush1.msra.mxu0 %v3425_v18 }
 0x148   : > { %2010 = vmatpush3.msra.mxu1 %v2949_v21  ;;  %1066 = vmatprep.subr.mxu0 %v3426_v22 }
 0x149   : > { %2011 = vmatprep.subr.mxu1 %v2958_v25  ;;  %1067 = vmatpush1.msra.mxu0 %v3427_v35 }
 0x14a   : > { %1100 = vmatprep.mubr.f32.mxu0 %v3410_v30  ;;  %2012 = vmatpush3.msra.mxu1 %v2958_v25 }
 0x14b   : > { %1101 = vmatmul.mubr.f32.vlgmr.msra.gmra.mxu0 %v2967_v29  ;;  %2014 = vmatmul.mubr.f32.vlgmr.msra.gmra.mxu1 %v2984_v34 }
 0x14c   : > { %1106 = vmatprep.mubr.f32.mxu0 %v3410_v30 }
 0x14f   : > { %1107 = vmatmul.mubr.f32.gmra.mxu0 %v2984_v34 }
 0x1c5   : > { %v796_v38 = vpop.f32.mrf.mxu0  ;;  %v873_v39 = vpop.f32.mrf.mxu1 }
 0x1c6   : > { %v1194_v40 = vadd.f32 %v3053_v37, %v796_v38  ;;  %v1312_v41 = vadd.f32 %v3053_v37, %v873_v39 }
 0x1c7   : > { %v798_v42 = vpop.f32.mrf.mxu0  ;;  %v875_v43 = vpop.f32.mrf.mxu1 }
 0x1c8   : > { %v1198_v44 = vmul.f32 0.70710677, %v1194_v40  ;;  %v1316_v45 = vmul.f32 0.70710677, %v1312_v41  ;;  %v1260_v47 = vadd.f32 %v3053_v37, %v798_v42  ;;  %v1364_v48 = vadd.f32 %v3053_v37, %v875_v43 }
 0x1c9   : > { %v1196_v63 = vmul.f32 0.5, %v1194_v40  ;;  %v1314_v15 = vmul.f32 0.5, %v1312_v41 }
 0x1ca   : > { %2050 = verf.f32 %v1198_v44  ;;  %v1264_v49 = vmul.f32 0.70710677, %v1260_v47  ;;  %v1368_v52 = vmul.f32 0.70710677, %v1364_v48  ;;  %v1262_v11 = vmul.f32 0.5, %v1260_v47 }
 0x1cb   : > { %2052 = verf.f32 %v1316_v45  ;;  %v802_v50 = vpop.f32.mrf.mxu0  ;;  %v879_v57 = vpop.f32.mrf.mxu1  ;;  %v1366_v29 = vmul.f32 0.5, %v1364_v48 }
 0x1cc   : > { %v1195_v46 = vadd.f32 %v3053_v37, %v802_v50  ;;  %v1313_v36 = vadd.f32 %v3053_v37, %v879_v57  ;;  %2054 = verf.f32 %v1264_v49 }
 0x1cd   : > { %v804_v51 = vpop.f32.mrf.mxu0  ;;  %v881_v28 = vpop.f32.mrf.mxu1  ;;  %2056 = verf.f32 %v1368_v52 }
 0x1ce   : > { %v1199_v24 = vmul.f32 0.70710677, %v1195_v46  ;;  %v1317_v30 = vmul.f32 0.70710677, %v1313_v36  ;;  %v1261_v54 = vadd.f32 %v3053_v37, %v804_v51  ;;  %v1365_v56 = vadd.f32 %v3053_v37, %v881_v28 }
 0x1cf   : > { %v1197_v25 = vmul.f32 0.5, %v1195_v46  ;;  %v1315_v34 = vmul.f32 0.5, %v1313_v36 }
 0x1d0   : > { %2058 = verf.f32 %v1199_v24  ;;  %v1265_v59 = vmul.f32 0.70710677, %v1261_v54  ;;  %v1369_v20 = vmul.f32 0.70710677, %v1365_v56  ;;  %v1263_v58 = vmul.f32 0.5, %v1261_v54 }
 0x1d1   : > { %2060 = verf.f32 %v1317_v30  ;;  %v1367_v8 = vmul.f32 0.5, %v1365_v56 }
 0x1d2   : > { %2062 = verf.f32 %v1265_v59 }
 0x1d3   : > { %2064 = verf.f32 %v1369_v20 }
 0x1d7   : > { %v2051_v61 = vpop.eup %2050 }
 0x1d8   : > { %v2053_v32 = vpop.eup %2052  ;;  %v1202_v1 = vadd.f32 1.0, %v2051_v61 }
 0x1d9   : > { %v2055_v3 = vpop.eup %2054  ;;  %v1320_v7 = vadd.f32 1.0, %v2053_v32 }
 0x1da   : > { %v3063_v5 = vmul.f32 %v1202_v1, %v1196_v63  ;;  %v2057_v9 = vpop.eup %2056  ;;  %v1268_v13 = vadd.f32 1.0, %v2055_v3 }
 0x1db   : > { %v1372_v21 = vadd.f32 1.0, %v2057_v9  ;;  %v3068_v26 = vmul.f32 %v1320_v7, %v1314_v15 }
 0x1dc   : > { %1206 = vadd.xlane.f32.xlu0 %v3063_v5  ;;  %v3066_v19 = vmul.f32 %v1268_v13, %v1262_v11 }
 0x1dd   : > { %v2059_v17 = vpop.eup %2058  ;;  %v3074_v60 = vmul.f32 %v1372_v21, %v1366_v29 }
 0x1de   : > { %v2061_v23 = vpop.eup %2060  ;;  %v1203_v27 = vadd.f32 1.0, %v2059_v17  ;;  %1272 = vadd.xlane.f32.xlu1 %v3066_v19 }
 0x1df   : > { %v1321_v31 = vadd.f32 1.0, %v2061_v23  ;;  %v2063_v33 = vpop.eup %2062 }
 0x1e0   : > { %1324 = vadd.xlane.f32.xlu0 %v3068_v26  ;;  %v3072_v53 = vmul.f32 %v1203_v27, %v1197_v25  ;;  %v2065_v55 = vpop.eup %2064  ;;  %v1269_v62 = vadd.f32 1.0, %v2063_v33 }
 0x1e1   : > { %v3076_v0 = vmul.f32 %v1321_v31, %v1315_v34  ;;  %v1373_v2 = vadd.f32 1.0, %v2065_v55 }
 0x1e2   : > { %1376 = vadd.xlane.f32.xlu1 %v3074_v60  ;;  %v1209_v4 = vsel %vm1208_vm0, %v3072_v53, 0.0  ;;  %v3081_v6 = vmul.f32 %v1269_v62, %v1263_v58 }
 0x1e3   : > { %v1326_v10 = vsel %vm1208_vm0, %v3076_v0, 0.0  ;;  %v3085_v12 = vmul.f32 %v1373_v2, %v1367_v8 }
 0x1e4   : > { %1210 = vadd.xlane.f32.xlu0 %v1209_v4  ;;  %v1274_v14 = vsel %vm1208_vm0, %v3081_v6, 0.0 }
 0x1e5   : > { %v1378_v40 = vsel %vm1208_vm0, %v3085_v12, 0.0 }
 0x1e6   : > { %1327 = vadd.xlane.f32.xlu1 %v1326_v10 }
 0x1e8   : > { %v1025_v16 = vpop.f32.mrf.mxu1  ;;  %v1980_v18 = vpop.f32.mrf.mxu0  ;;  %1275 = vadd.xlane.f32.xlu0 %v1274_v14 }
 0x1e9   : > { %v1468_v22 = vadd.f32 %v3053_v37, %v1025_v16  ;;  %v1417_v35 = vadd.f32 %v1980_v18, %v3053_v37 }
 0x1ea   : > { %v1027_v38 = vpop.f32.mrf.mxu1  ;;  %v950_v39 = vpop.f32.mrf.mxu0  ;;  %1379 = vadd.xlane.f32.xlu1 %v1378_v40 }
 0x1eb   : > { %v1472_v41 = vmul.f32 0.70710677, %v1468_v22  ;;  %v1421_v42 = vmul.f32 0.70710677, %v1417_v35  ;;  %v1520_v43 = vadd.f32 %v3053_v37, %v1027_v38  ;;  %v1416_v44 = vadd.f32 %v3053_v37, %v950_v39 }
 0x1ec   : > { %v1470_v28 = vmul.f32 0.5, %v1468_v22  ;;  %v1419_v30 = vmul.f32 0.5, %v1417_v35 }
 0x1ed   : > { %2066 = verf.f32 %v1472_v41  ;;  %v1524_v45 = vmul.f32 0.70710677, %v1520_v43  ;;  %v1420_v48 = vmul.f32 0.70710677, %v1416_v44  ;;  %v1418_v3 = vmul.f32 0.5, %v1416_v44 }
 0x1ee   : > { %2068 = verf.f32 %v1421_v42  ;;  %v1031_v47 = vpop.f32.mrf.mxu1  ;;  %v1522_v23 = vmul.f32 0.5, %v1520_v43 }
 0x1ef   : > { %v1469_v49 = vadd.f32 %v3053_v37, %v1031_v47  ;;  %2070 = verf.f32 %v1420_v48 }
 0x1f0   : > { %v1033_v50 = vpop.f32.mrf.mxu1  ;;  %2072 = verf.f32 %v1524_v45 }
 0x1f1   : > { %v1473_v57 = vmul.f32 0.70710677, %v1469_v49  ;;  %v1521_v52 = vadd.f32 %v3053_v37, %v1033_v50  ;;  %v1471_v7 = vmul.f32 0.5, %v1469_v49 }
 0x1f3   : > { %2074 = verf.f32 %v1473_v57  ;;  %v1525_v46 = vmul.f32 0.70710677, %v1521_v52  ;;  %v1523_v27 = vmul.f32 0.5, %v1521_v52 }
 0x1f5   : > { %2076 = verf.f32 %v1525_v46 }
 0x1fa   : > { %v2067_v36 = vpop.eup %2066 }
 0x1fb   : > { %v2069_v51 = vpop.eup %2068  ;;  %v1476_v24 = vadd.f32 1.0, %v2067_v36 }
 0x1fc   : > { %v1425_v54 = vadd.f32 1.0, %v2069_v51  ;;  %v2071_v59 = vpop.eup %2070 }
 0x1fd   : > { %v3097_v56 = vmul.f32 %v1476_v24, %v1470_v28  ;;  %v2073_v61 = vpop.eup %2072  ;;  %v1424_v32 = vadd.f32 1.0, %v2071_v59 }
 0x1fe   : > { %v3099_v20 = vmul.f32 %v1425_v54, %v1419_v30  ;;  %v1528_v17 = vadd.f32 1.0, %v2073_v61 }
 0x1ff   : > { %1480 = vadd.xlane.f32.xlu1 %v3097_v56  ;;  %v3104_v13 = vmul.f32 %v1424_v32, %v1418_v3 }
 0x200   : > { %v2075_v63 = vpop.eup %2074  ;;  %v1430_v1 = vsel %vm1208_vm0, %v3099_v20, 0.0  ;;  %v3111_v29 = vmul.f32 %v1528_v17, %v1522_v23 }
 0x201   : > { %1431 = vadd.xlane.f32.xlu0 %v1430_v1  ;;  %v1477_v9 = vadd.f32 1.0, %v2075_v63 }
 0x202   : > { %v2077_v11 = vpop.eup %2076 }
 0x203   : > { %v3106_v15 = vmul.f32 %v1477_v9, %v1471_v7  ;;  %v1529_v21 = vadd.f32 1.0, %v2077_v11 }
 0x205   : > { %1428 = vadd.xlane.f32.xlu0 %v3104_v13  ;;  %v1482_v25 = vsel %vm1208_vm0, %v3106_v15, 0.0  ;;  %v3113_v31 = vmul.f32 %v1529_v21, %v1523_v27 }
 0x206   : > { %1483 = vadd.xlane.f32.xlu1 %v1482_v25 }
 0x207   : > { %v1534_v62 = vsel %vm1208_vm0, %v3113_v31, 0.0 }
 0x209   : > { %1532 = vadd.xlane.f32.xlu0 %v3111_v29 }
 0x20b   : > { %v1102_v33 = vpop.f32.mrf.mxu0  ;;  %v2015_v34 = vpop.f32.mrf.mxu1 }
 0x20c   : > { %v1572_v55 = vadd.f32 %v3053_v37, %v1102_v33  ;;  %v1677_v58 = vadd.f32 %v2015_v34, %v3053_v37 }
 0x20d   : > { %v1104_v2 = vpop.f32.mrf.mxu0  ;;  %v1179_v4 = vpop.f32.mrf.mxu1  ;;  %1535 = vadd.xlane.f32.xlu0 %v1534_v62 }
 0x20e   : > { %v1576_v8 = vmul.f32 0.70710677, %v1572_v55  ;;  %v1681_v10 = vmul.f32 0.70710677, %v1677_v58  ;;  %v1624_v14 = vadd.f32 %v3053_v37, %v1104_v2  ;;  %v1676_v18 = vadd.f32 %v3053_v37, %v1179_v4 }
 0x20f   : > { %v1108_v16 = vpop.f32.mrf.mxu0  ;;  %v1574_v45 = vmul.f32 0.5, %v1572_v55  ;;  %v1679_v48 = vmul.f32 0.5, %v1677_v58 }
 0x210   : > { %2078 = verf.f32 %v1576_v8  ;;  %v1573_v22 = vadd.f32 %v3053_v37, %v1108_v16  ;;  %v1628_v40 = vmul.f32 0.70710677, %v1624_v14  ;;  %v1680_v41 = vmul.f32 0.70710677, %v1676_v18 }
 0x211   : > { %2080 = verf.f32 %v1681_v10  ;;  %v1110_v35 = vpop.f32.mrf.mxu0  ;;  %v1626_v3 = vmul.f32 0.5, %v1624_v14  ;;  %v1678_v9 = vmul.f32 0.5, %v1676_v18 }
 0x212   : > { %v1577_v38 = vmul.f32 0.70710677, %v1573_v22  ;;  %v1625_v39 = vadd.f32 %v3053_v37, %v1110_v35  ;;  %v1575_v46 = vmul.f32 0.5, %v1573_v22 }
 0x214   : > { %v1629_v42 = vmul.f32 0.70710677, %v1625_v39  ;;  %2082 = verf.f32 %v1577_v38  ;;  %v1627_v28 = vmul.f32 0.5, %v1625_v39 }
 0x216   : > { %2084 = verf.f32 %v1629_v42 }
 0x217   : > { %2086 = verf.f32 %v1628_v40 }
 0x218   : > { %2088 = verf.f32 %v1680_v41 }
 0x21d   : > { %v2079_v43 = vpop.eup %2078 }
 0x21e   : > { %v2081_v44 = vpop.eup %2080  ;;  %v1580_v47 = vadd.f32 1.0, %v2079_v43 }
 0x21f   : > { %v1685_v49 = vadd.f32 1.0, %v2081_v44 }
 0x220   : > { %v3124_v50 = vmul.f32 %v1580_v47, %v1574_v45 }
 0x221   : > { %v3126_v57 = vmul.f32 %v1685_v49, %v1679_v48  ;;  %v2083_v52 = vpop.eup %2082 }
 0x222   : > { %1584 = vadd.xlane.f32.xlu1 %v3124_v50  ;;  %v1581_v36 = vadd.f32 1.0, %v2083_v52 }
 0x223   : > { %v2085_v37 = vpop.eup %2084  ;;  %v1690_v54 = vsel %vm1208_vm0, %v3126_v57, 0.0 }
 0x224   : > { %v2087_v51 = vpop.eup %2086  ;;  %v1633_v24 = vadd.f32 1.0, %v2085_v37  ;;  %v3131_v59 = vmul.f32 %v1581_v36, %v1575_v46 }
 0x225   : > { %v2089_v30 = vpop.eup %2088  ;;  %v1632_v32 = vadd.f32 1.0, %v2087_v51 }
 0x226   : > { %1691 = vadd.xlane.f32.xlu1 %v1690_v54  ;;  %v3133_v61 = vmul.f32 %v1633_v24, %v1627_v28  ;;  %v1684_v1 = vadd.f32 1.0, %v2089_v30  ;;  %v1586_v7 = vsel %vm1208_vm0, %v3131_v59, 0.0 }
 0x227   : > { %v3139_v11 = vmul.f32 %v1632_v32, %v1626_v3 }
 0x228   : > { %v1638_v63 = vsel %vm1208_vm0, %v3133_v61, 0.0  ;;  %v3141_v17 = vmul.f32 %v1684_v1, %v1678_v9 }
 0x229   : > { %1639 = vadd.xlane.f32.xlu0 %v1638_v63 }
 0x22a   : > { %1587 = vadd.xlane.f32.xlu1 %v1586_v7 }
 0x22d   : > { %1636 = vadd.xlane.f32.xlu0 %v3139_v11 }
 0x22e   : > { %1688 = vadd.xlane.f32.xlu1 %v3141_v17 }
 0x265   : > { %v1207_v21 = vpop.xlane.xlu0 %1206 }
 0x266   : > { %v1213_v23 = vmul.f32 0.0078125, %v1207_v21 }
 0x267   : > { %v1273_v27 = vpop.xlane.xlu1 %1272 }
 0x268   : > { %v3146_v25 = vsub.f32 %v3063_v5, %v1213_v23  ;;  %v1277_v34 = vmul.f32 0.0078125, %v1273_v27 }
 0x269   : > { %v1325_v33 = vpop.xlane.xlu0 %1324 }
 0x26a   : > { %v1329_v55 = vmul.f32 0.0078125, %v1325_v33  ;;  %v1217_v58 = vmul.f32 %v3146_v25, %v3146_v25  ;;  %v3154_v8 = vsub.f32 %v3066_v19, %v1277_v34 }
 0x26b   : > { %v1377_v2 = vpop.xlane.xlu1 %1376 }
 0x26c   : > { %v3151_v62 = vsub.f32 %v3068_v26, %v1329_v55  ;;  %1219 = vadd.xlane.f32.xlu0 %v1217_v58  ;;  %v1381_v10 = vmul.f32 0.0078125, %v1377_v2  ;;  %v1281_v19 = vmul.f32 %v3154_v8, %v3154_v8 }
 0x26d   : > { %v1211_v4 = vpop.xlane.xlu0 %1210 }
 0x26e   : > { %v1214_v14 = vmul.f32 0.0078125, %v1211_v4  ;;  %v1333_v5 = vmul.f32 %v3151_v62, %v3151_v62  ;;  %v3162_v26 = vsub.f32 %v3074_v60, %v1381_v10 }
 0x26f   : > { %v1328_v18 = vpop.xlane.xlu1 %1327 }
 0x270   : > { %v3159_v16 = vsub.f32 %v3072_v53, %v1214_v14  ;;  %1335 = vadd.xlane.f32.xlu0 %v1333_v5  ;;  %v1330_v22 = vmul.f32 0.0078125, %v1328_v18  ;;  %v1385_v44 = vmul.f32 %v3162_v26, %v3162_v26 }
 0x271   : > { %v1276_v35 = vpop.xlane.xlu0 %1275 }
 0x272   : > { %v1278_v38 = vmul.f32 0.0078125, %v1276_v35  ;;  %v1218_v39 = vmul.f32 %v3159_v16, %v3159_v16  ;;  %v3169_v40 = vsub.f32 %v3076_v0, %v1330_v22 }
 0x273   : > { %v1380_v41 = vpop.xlane.xlu1 %1379 }
 0x274   : > { %v3172_v53 = vsub.f32 %v3081_v6, %v1278_v38  ;;  %1283 = vadd.xlane.f32.xlu0 %v1281_v19  ;;  %v1221_v42 = vsel %vm1208_vm0, %v1218_v39, 0.0  ;;  %v1382_v43 = vmul.f32 0.0078125, %v1380_v41  ;;  %v1334_v60 = vmul.f32 %v3169_v40, %v3169_v40 }
 0x275   : > { %1222 = vadd.xlane.f32.xlu1 %v1221_v42 }
 0x276   : > { %v3180_v45 = vsub.f32 %v3085_v12, %v1382_v43  ;;  %v1337_v0 = vsel %vm1208_vm0, %v1334_v60, 0.0  ;;  %v1282_v6 = vmul.f32 %v3172_v53, %v3172_v53 }
 0x278   : > { %1387 = vadd.xlane.f32.xlu0 %v1385_v44  ;;  %v1285_v47 = vsel %vm1208_vm0, %v1282_v6, 0.0  ;;  %v1386_v48 = vmul.f32 %v3180_v45, %v3180_v45 }
 0x279   : > { %1338 = vadd.xlane.f32.xlu1 %v1337_v0 }
 0x27a   : > { %v1389_v49 = vsel %vm1208_vm0, %v1386_v48, 0.0 }
 0x27d   : > { %1286 = vadd.xlane.f32.xlu1 %v1285_v47 }
 0x281   : > { %1390 = vadd.xlane.f32.xlu1 %v1389_v49 }
 0x288   : > { %v1481_v52 = vpop.xlane.xlu1 %1480 }
 0x289   : > { %v1485_v37 = vmul.f32 0.0078125, %v1481_v52 }
 0x28a   : > { %v1432_v12 = vpop.xlane.xlu0 %1431 }
 0x28b   : > { %v3190_v46 = vsub.f32 %v3097_v56, %v1485_v37  ;;  %v1434_v36 = vmul.f32 0.0078125, %v1432_v12 }
 0x28d   : > { %v3193_v51 = vsub.f32 %v3099_v20, %v1434_v36  ;;  %v1489_v28 = vmul.f32 %v3190_v46, %v3190_v46 }
 0x28e   : > { %v1429_v24 = vpop.xlane.xlu0 %1428 }
 0x28f   : > { %v1433_v30 = vmul.f32 0.0078125, %v1429_v24  ;;  %v1484_v54 = vpop.xlane.xlu1 %1483  ;;  %1491 = vadd.xlane.f32.xlu0 %v1489_v28  ;;  %v1438_v32 = vmul.f32 %v3193_v51, %v3193_v51 }
 0x290   : > { %v1486_v63 = vmul.f32 0.0078125, %v1484_v54 }
 0x291   : > { %v3200_v1 = vsub.f32 %v3104_v13, %v1433_v30  ;;  %v1441_v56 = vsel %vm1208_vm0, %v1438_v32, 0.0 }
 0x292   : > { %v3204_v3 = vsub.f32 %v3106_v15, %v1486_v63  ;;  %v1533_v20 = vpop.xlane.xlu0 %1532  ;;  %1442 = vadd.xlane.f32.xlu1 %v1441_v56 }
 0x293   : > { %v1537_v7 = vmul.f32 0.0078125, %v1533_v20  ;;  %v1437_v9 = vmul.f32 %v3200_v1, %v3200_v1 }
 0x294   : > { %v1490_v21 = vmul.f32 %v3204_v3, %v3204_v3 }
 0x295   : > { %v3211_v23 = vsub.f32 %v3111_v29, %v1537_v7  ;;  %1439 = vadd.xlane.f32.xlu0 %v1437_v9 }
 0x296   : > { %v1536_v13 = vpop.xlane.xlu0 %1535  ;;  %v1493_v27 = vsel %vm1208_vm0, %v1490_v21, 0.0 }
 0x297   : > { %v1538_v33 = vmul.f32 0.0078125, %v1536_v13  ;;  %1494 = vadd.xlane.f32.xlu1 %v1493_v27  ;;  %v1541_v15 = vmul.f32 %v3211_v23, %v3211_v23 }
 0x299   : > { %v3217_v34 = vsub.f32 %v3113_v31, %v1538_v33  ;;  %1543 = vadd.xlane.f32.xlu0 %v1541_v15  ;;  %v3258_v15 = vld [vmem:[%s3371_s7] ss:$0 sm:$0xff] }
 0x29b   : > { %v1542_v55 = vmul.f32 %v3217_v34, %v3217_v34 }
 0x29d   : > { %v1545_v58 = vsel %vm1208_vm0, %v1542_v55, 0.0 }
 0x29e   : > { %1546 = vadd.xlane.f32.xlu1 %v1545_v58 }
 0x2ab   : > { %v1585_v29 = vpop.xlane.xlu1 %1584 }
 0x2ac   : > { %v1589_v2 = vmul.f32 0.0078125, %v1585_v29  ;;  %v3264_v29 = vld [vmem:[%s3372_s8] ss:$0 sm:$0xff] }
 0x2ae   : > { %v3223_v4 = vsub.f32 %v3124_v50, %v1589_v2 }
 0x2af   : > { %v1692_v10 = vpop.xlane.xlu1 %1691 }
 0x2b0   : > { %v1593_v14 = vmul.f32 %v3223_v4, %v3223_v4  ;;  %v1694_v35 = vmul.f32 0.0078125, %v1692_v10 }
 0x2b2   : > { %1595 = vadd.xlane.f32.xlu0 %v1593_v14  ;;  %v1640_v5 = vpop.xlane.xlu0 %1639  ;;  %v3239_v44 = vsub.f32 %v3126_v57, %v1694_v35 }
 0x2b3   : > { %v1642_v31 = vmul.f32 0.0078125, %v1640_v5  ;;  %v1588_v18 = vpop.xlane.xlu1 %1587 }
 0x2b4   : > { %v1590_v22 = vmul.f32 0.0078125, %v1588_v18 }
 0x2b5   : > { %v3228_v38 = vsub.f32 %v3133_v61, %v1642_v31 }
 0x2b6   : > { %v3231_v19 = vsub.f32 %v3131_v59, %v1590_v22  ;;  %v1637_v39 = vpop.xlane.xlu0 %1636 }
 0x2b7   : > { %v1641_v41 = vmul.f32 0.0078125, %v1637_v39  ;;  %v1689_v50 = vpop.xlane.xlu1 %1688  ;;  %v1646_v61 = vmul.f32 %v3228_v38, %v3228_v38 }
 0x2b8   : > { %v1693_v42 = vmul.f32 0.0078125, %v1689_v50  ;;  %v1594_v43 = vmul.f32 %v3231_v19, %v3231_v19 }
 0x2b9   : > { %v3236_v60 = vsub.f32 %v3139_v11, %v1641_v41  ;;  %v1649_v47 = vsel %vm1208_vm0, %v1646_v61, 0.0  ;;  %v1698_v11 = vmul.f32 %v3239_v44, %v3239_v44 }
 0x2ba   : > { %v1597_v0 = vsel %vm1208_vm0, %v1594_v43, 0.0  ;;  %v3245_v59 = vsub.f32 %v3141_v17, %v1693_v42 }
 0x2bb   : > { %1598 = vadd.xlane.f32.xlu1 %v1597_v0  ;;  %v1645_v6 = vmul.f32 %v3236_v60, %v3236_v60  ;;  %v1701_v48 = vsel %vm1208_vm0, %v1698_v11, 0.0 }
 0x2bc   : > { %v1697_v57 = vmul.f32 %v3245_v59, %v3245_v59 }
 0x2bd   : > { %1647 = vadd.xlane.f32.xlu0 %v1645_v6 }
 0x2bf   : > { %1650 = vadd.xlane.f32.xlu1 %v1649_v47 }
 0x2c1   : > { %1699 = vadd.xlane.f32.xlu0 %v1697_v57 }
 0x2c3   : > { %1702 = vadd.xlane.f32.xlu1 %v1701_v48 }
 0x2f5   : > { %v1220_v17 = vpop.xlane.xlu0 %1219 }
 0x2f6   : > { %v1224_v49 = vmul.f32 0.0078125, %v1220_v17 }
 0x2f8   : > { %v1226_v52 = vadd.f32 1e-05, %v1224_v49 }
 0x2f9   : > { %v1336_v37 = vpop.xlane.xlu0 %1335 }
 0x2fa   : > { %2090 = vrsqrt.f32 %v1226_v52  ;;  %v1340_v12 = vmul.f32 0.0078125, %v1336_v37 }
 0x2fc   : > { %v1342_v36 = vadd.f32 1e-05, %v1340_v12 }
 0x2fd   : > { %v1284_v28 = vpop.xlane.xlu0 %1283 }
 0x2fe   : > { %2092 = vrsqrt.f32 %v1342_v36  ;;  %v1288_v24 = vmul.f32 0.0078125, %v1284_v28  ;;  %v1223_v30 = vpop.xlane.xlu1 %1222 }
 0x2ff   : > { %v1225_v54 = vmul.f32 0.0078125, %v1223_v30 }
 0x300   : > { %v1290_v32 = vadd.f32 1e-05, %v1288_v24 }
 0x301   : > { %v1227_v63 = vadd.f32 1e-05, %v1225_v54  ;;  %v1388_v56 = vpop.xlane.xlu0 %1387 }
 0x302   : > { %2094 = vrsqrt.f32 %v1290_v32  ;;  %v1392_v20 = vmul.f32 0.0078125, %v1388_v56  ;;  %v1339_v7 = vpop.xlane.xlu1 %1338 }
 0x303   : > { %2096 = vrsqrt.f32 %v1227_v63  ;;  %v1341_v9 = vmul.f32 0.0078125, %v1339_v7 }
 0x304   : > { %v1394_v21 = vadd.f32 1e-05, %v1392_v20 }
 0x305   : > { %v1343_v13 = vadd.f32 1e-05, %v1341_v9 }
 0x306   : > { %2098 = vrsqrt.f32 %v1394_v21  ;;  %v1287_v27 = vpop.xlane.xlu1 %1286 }
 0x307   : > { %v2091_v33 = vpop.eup %2090  ;;  %2100 = vrsqrt.f32 %v1343_v13  ;;  %v1289_v55 = vmul.f32 0.0078125, %v1287_v27 }
 0x308   : > { %v1230_v58 = vmul.f32 %v2091_v33, %v3146_v25 }
 0x309   : > { %v1291_v2 = vadd.f32 1e-05, %v1289_v55 }
 0x30a   : > { %v1238_v10 = vmul.f32 %v3258_v15, %v1230_v58  ;;  %v1391_v14 = vpop.xlane.xlu1 %1390 }
 0x30b   : > { %v2093_v5 = vpop.eup %2092  ;;  %2102 = vrsqrt.f32 %v1291_v2  ;;  %v1393_v31 = vmul.f32 0.0078125, %v1391_v14 }
 0x30c   : > { %v1246_v18 = vadd.f32 %v3264_v29, %v1238_v10  ;;  %v1346_v22 = vmul.f32 %v2093_v5, %v3151_v62 }
 0x30d   : > { %v1395_v35 = vadd.f32 1e-05, %v1393_v31 }
 0x30e   : > { %v1250_v39 = vmul.f32 0.70710677, %v1246_v18  ;;  %v1348_v25 = vmul.f32 %v3258_v15, %v1346_v22  ;;  %v1248_v27 = vmul.f32 0.5, %v1246_v18 }
 0x30f   : > { %v2095_v41 = vpop.eup %2094  ;;  %2104 = vrsqrt.f32 %v1395_v35 }
 0x310   : > { %v2097_v50 = vpop.eup %2096  ;;  %2106 = verf.f32 %v1250_v39  ;;  %v1350_v42 = vadd.f32 %v3264_v29, %v1348_v25  ;;  %v1294_v43 = vmul.f32 %v2095_v41, %v3154_v8 }
 0x311   : > { %v1231_v0 = vmul.f32 %v2097_v50, %v3159_v16 }
 0x312   : > { %v1354_v61 = vmul.f32 0.70710677, %v1350_v42  ;;  %v1296_v6 = vmul.f32 %v3258_v15, %v1294_v43  ;;  %v1352_v35 = vmul.f32 0.5, %v1350_v42 }
 0x313   : > { %v2099_v47 = vpop.eup %2098  ;;  %v1239_v62 = vmul.f32 %v3258_v15, %v1231_v0 }
 0x314   : > { %v2101_v11 = vpop.eup %2100  ;;  %2108 = verf.f32 %v1354_v61  ;;  %v1298_v57 = vadd.f32 %v3264_v29, %v1296_v6  ;;  %v1398_v48 = vmul.f32 %v2099_v47, %v3162_v26 }
 0x315   : > { %v1247_v17 = vadd.f32 %v3264_v29, %v1239_v62  ;;  %v1347_v49 = vmul.f32 %v2101_v11, %v3169_v40 }
 0x316   : > { %v1302_v8 = vmul.f32 0.70710677, %v1298_v57  ;;  %v1400_v16 = vmul.f32 %v3258_v15, %v1398_v48  ;;  %v1300_v47 = vmul.f32 0.5, %v1298_v57 }
 0x317   : > { %v1251_v52 = vmul.f32 0.70710677, %v1247_v17  ;;  %v1349_v37 = vmul.f32 %v3258_v15, %v1347_v49  ;;  %v1249_v48 = vmul.f32 0.5, %v1247_v17 }
 0x318   : > { %v2103_v12 = vpop.eup %2102  ;;  %2110 = verf.f32 %v1302_v8  ;;  %v1402_v36 = vadd.f32 %v3264_v29, %v1400_v16  ;;  %v1492_v28 = vpop.xlane.xlu0 %1491 }
 0x319   : > { %2112 = verf.f32 %v1251_v52  ;;  %v3283_v24 = vadd.f32 %v3264_v29, %v1349_v37  ;;  %v1295_v26 = vmul.f32 %v2103_v12, %v3172_v53  ;;  %v1496_v30 = vmul.f32 0.0078125, %v1492_v28 }
 0x31a   : > { %v1406_v54 = vmul.f32 0.70710677, %v1402_v36  ;;  %v1404_v28 = vmul.f32 0.5, %v1402_v36 }
 0x31b   : > { %v1355_v40 = vmul.f32 0.70710677, %v3283_v24  ;;  %v1297_v32 = vmul.f32 %v3258_v15, %v1295_v26  ;;  %v1498_v63 = vadd.f32 1e-05, %v1496_v30  ;;  %v1443_v56 = vpop.xlane.xlu1 %1442 }
 0x31c   : > { %v2105_v20 = vpop.eup %2104  ;;  %2114 = verf.f32 %v1406_v54  ;;  %v1445_v7 = vmul.f32 0.0078125, %v1443_v56  ;;  %v1353_v54 = vmul.f32 0.5, %v3283_v24 }
 0x31d   : > { %v2107_v9 = vpop.eup %2106  ;;  %2116 = verf.f32 %v1355_v40  ;;  %v1299_v21 = vadd.f32 %v3264_v29, %v1297_v32  ;;  %v1399_v13 = vmul.f32 %v2105_v20, %v3180_v45 }
 0x31e   : > { %v1254_v53 = vadd.f32 1.0, %v2107_v9  ;;  %2118 = vrsqrt.f32 %v1498_v63  ;;  %v1447_v33 = vadd.f32 1e-05, %v1445_v7  ;;  %v1440_v55 = vpop.xlane.xlu0 %1439 }
 0x31f   : > { %v1303_v58 = vmul.f32 0.70710677, %v1299_v21  ;;  %v1401_v2 = vmul.f32 %v3258_v15, %v1399_v13  ;;  %v1444_v10 = vmul.f32 0.0078125, %v1440_v55  ;;  %v1301_v9 = vmul.f32 0.5, %v1299_v21 }
 0x320   : > { %v1256_v14 = vmul.f32 %v1254_v53, %v1248_v27  ;;  %2120 = vrsqrt.f32 %v1447_v33  ;;  %v1495_v5 = vpop.xlane.xlu1 %1494 }
 0x321   : > { %v2109_v31 = vpop.eup %2108  ;;  %2122 = verf.f32 %v1303_v58  ;;  %v1403_v45 = vadd.f32 %v3264_v29, %v1401_v2  ;;  %v1446_v18 = vadd.f32 1e-05, %v1444_v10  ;;  %v1497_v22 = vmul.f32 0.0078125, %v1495_v5 }
 0x322   : > { %1258 = vst [vmem:[%s3294_s15] sm:$0xff] %v1256_v14  ;;  %v1358_v39 = vadd.f32 1.0, %v2109_v31  ;;  %v1544_v25 = vpop.xlane.xlu0 %1543 }
 0x323   : > { %v1407_v41 = vmul.f32 0.70710677, %v1403_v45  ;;  %2124 = vrsqrt.f32 %v1446_v18  ;;  %v1499_v50 = vadd.f32 1e-05, %v1497_v22  ;;  %v1548_v0 = vmul.f32 0.0078125, %v1544_v25 }
 0x324   : > { %v1360_v43 = vmul.f32 %v1358_v39, %v1352_v35  ;;  %v1405_v14 = vmul.f32 0.5, %v1403_v45 }
 0x325   : > { %v2111_v61 = vpop.eup %2110  ;;  %2126 = verf.f32 %v1407_v41  ;;  %v1550_v11 = vadd.f32 1e-05, %v1548_v0 }
 0x326   : > { %v2113_v6 = vpop.eup %2112  ;;  %1362 = vst [vmem:[%s3294_s15 + $0x10] sm:$0xff] %v1360_v43  ;;  %v1306_v62 = vadd.f32 1.0, %v2111_v61  ;;  %2128 = vrsqrt.f32 %v1499_v50 }
 0x327   : > { %v1255_v49 = vadd.f32 1.0, %v2113_v6  ;;  %v1547_v42 = vpop.xlane.xlu1 %1546  ;;  %2130 = vrsqrt.f32 %v1550_v11 }
 0x328   : > { %v1308_v8 = vmul.f32 %v1306_v62, %v1300_v47  ;;  %v1549_v16 = vmul.f32 0.0078125, %v1547_v42 }
 0x329   : > { %v2115_v52 = vpop.eup %2114  ;;  %v1257_v37 = vmul.f32 %v1255_v49, %v1249_v48 }
 0x32a   : > { %v2117_v12 = vpop.eup %2116  ;;  %1310 = vst [vmem:[%s3294_s15 + $0x8] sm:$0xff] %v1308_v8  ;;  %v1410_v26 = vadd.f32 1.0, %v2115_v52  ;;  %v1551_v30 = vadd.f32 1e-05, %v1549_v16 }
 0x32b   : > { %v2119_v57 = vpop.eup %2118  ;;  %1259 = vst [vmem:[%s3294_s15 + $0x50] sm:$0xf] %v1257_v37  ;;  %v1359_v40 = vadd.f32 1.0, %v2117_v12 }
 0x32c   : > { %v1412_v17 = vmul.f32 %v1410_v26, %v1404_v28  ;;  %v1502_v32 = vmul.f32 %v2119_v57, %v3190_v46  ;;  %2132 = vrsqrt.f32 %v1551_v30 }
 0x32d   : > { %v2121_v63 = vpop.eup %2120  ;;  %v1361_v56 = vmul.f32 %v1359_v40, %v1353_v54 }
 0x32e   : > { %v2123_v20 = vpop.eup %2122  ;;  %1414 = vst [vmem:[%s3294_s15 + $0x18] sm:$0xff] %v1412_v17  ;;  %v1504_v7 = vmul.f32 %v3258_v15, %v1502_v32  ;;  %v1451_v36 = vmul.f32 %v2121_v63, %v3193_v51 }
 0x32f   : > { %1363 = vst [vmem:[%s3294_s15 + $0x60] sm:$0xf] %v1361_v56  ;;  %v1307_v13 = vadd.f32 1.0, %v2123_v20 }
 0x330   : > { %v2125_v27 = vpop.eup %2124  ;;  %v1506_v24 = vadd.f32 %v3264_v29, %v1504_v7  ;;  %v1453_v53 = vmul.f32 %v3258_v15, %v1451_v36 }
 0x331   : > { %v1309_v33 = vmul.f32 %v1307_v13, %v1301_v9  ;;  %v1450_v46 = vmul.f32 %v2125_v27, %v3200_v1 }
 0x332   : > { %v2127_v55 = vpop.eup %2126  ;;  %v1510_v58 = vmul.f32 0.70710677, %v1506_v24  ;;  %v1455_v2 = vadd.f32 %v3264_v29, %v1453_v53  ;;  %v1508_v42 = vmul.f32 0.5, %v1506_v24 }
 0x333   : > { %v2129_v10 = vpop.eup %2128  ;;  %1311 = vst [vmem:[%s3294_s15 + $0x58] sm:$0xf] %v1309_v33  ;;  %v1411_v51 = vadd.f32 1.0, %v2127_v55  ;;  %v1452_v21 = vmul.f32 %v3258_v15, %v1450_v46 }
 0x334   : > { %2134 = verf.f32 %v1510_v58  ;;  %v1459_v5 = vmul.f32 0.70710677, %v1455_v2  ;;  %v1503_v31 = vmul.f32 %v2129_v10, %v3204_v3  ;;  %v2131_v18 = vpop.eup %2130  ;;  %v1457_v52 = vmul.f32 0.5, %v1455_v2 }
 0x335   : > { %v1413_v22 = vmul.f32 %v1411_v51, %v1405_v14  ;;  %v1454_v35 = vadd.f32 %v3264_v29, %v1452_v21  ;;  %v1554_v39 = vmul.f32 %v2131_v18, %v3211_v23 }
 0x336   : > { %2136 = verf.f32 %v1459_v5  ;;  %v1505_v1 = vmul.f32 %v3258_v15, %v1503_v31 }
 0x337   : > { %1415 = vst [vmem:[%s3294_s15 + $0x68] sm:$0xf] %v1413_v22  ;;  %v1458_v25 = vmul.f32 0.70710677, %v1454_v35  ;;  %v1556_v41 = vmul.f32 %v3258_v15, %v1554_v39  ;;  %v1456_v54 = vmul.f32 0.5, %v1454_v35 }
 0x338   : > { %v1507_v45 = vadd.f32 %v3264_v29, %v1505_v1 }
 0x339   : > { %v2133_v50 = vpop.eup %2132  ;;  %2138 = verf.f32 %v1458_v25  ;;  %v1558_v3 = vadd.f32 %v3264_v29, %v1556_v41 }
 0x33a   : > { %v1511_v43 = vmul.f32 0.70710677, %v1507_v45  ;;  %v1555_v0 = vmul.f32 %v2133_v50, %v3217_v34  ;;  %v1509_v9 = vmul.f32 0.5, %v1507_v45 }
 0x33b   : > { %v1596_v61 = vpop.xlane.xlu0 %1595  ;;  %v1562_v6 = vmul.f32 0.70710677, %v1558_v3  ;;  %v1560_v55 = vmul.f32 0.5, %v1558_v3 }
 0x33c   : > { %2140 = verf.f32 %v1511_v43  ;;  %v1557_v47 = vmul.f32 %v3258_v15, %v1555_v0  ;;  %v1600_v62 = vmul.f32 0.0078125, %v1596_v61 }
 0x33d   : > { %2142 = verf.f32 %v1562_v6 }
 0x33e   : > { %v1559_v23 = vadd.f32 %v3264_v29, %v1557_v47  ;;  %v1602_v11 = vadd.f32 1e-05, %v1600_v62 }
 0x340   : > { %v1563_v48 = vmul.f32 0.70710677, %v1559_v23  ;;  %2144 = vrsqrt.f32 %v1602_v11  ;;  %v1561_v22 = vmul.f32 0.5, %v1559_v23 }
 0x341   : > { %v2135_v49 = vpop.eup %2134 }
 0x342   : > { %v1514_v8 = vadd.f32 1.0, %v2135_v49  ;;  %2146 = verf.f32 %v1563_v48 }
 0x343   : > { %v2137_v16 = vpop.eup %2136 }
 0x344   : > { %v1516_v34 = vmul.f32 %v1514_v8, %v1508_v42  ;;  %v1463_v37 = vadd.f32 1.0, %v2137_v16  ;;  %v1599_v12 = vpop.xlane.xlu1 %1598 }
 0x345   : > { %v1601_v28 = vmul.f32 0.0078125, %v1599_v12 }
 0x346   : > { %v2139_v26 = vpop.eup %2138  ;;  %1518 = vst [vmem:[%s3294_s15 + $0x28] sm:$0xff] %v1516_v34  ;;  %v1465_v30 = vmul.f32 %v1463_v37, %v1457_v52  ;;  %v1648_v57 = vpop.xlane.xlu0 %1647 }
 0x347   : > { %v1462_v40 = vadd.f32 1.0, %v2139_v26  ;;  %v1603_v17 = vadd.f32 1e-05, %v1601_v28  ;;  %v1652_v32 = vmul.f32 0.0078125, %v1648_v57 }
 0x348   : > { %1467 = vst [vmem:[%s3294_s15 + $0x70] sm:$0xf] %v1465_v30  ;;  %v1651_v63 = vpop.xlane.xlu1 %1650 }
 0x349   : > { %v2141_v56 = vpop.eup %2140  ;;  %v1464_v20 = vmul.f32 %v1462_v40, %v1456_v54  ;;  %2148 = vrsqrt.f32 %v1603_v17  ;;  %v1654_v7 = vadd.f32 1e-05, %v1652_v32  ;;  %v1653_v36 = vmul.f32 0.0078125, %v1651_v63 }
 0x34a   : > { %v1515_v13 = vadd.f32 1.0, %v2141_v56  ;;  %v1700_v27 = vpop.xlane.xlu0 %1699  ;;  %v2143_v24 = vpop.eup %2142 }
 0x34b   : > { %1466 = vst [vmem:[%s3294_s15 + $0x20] sm:$0xff] %v1464_v20  ;;  %2150 = vrsqrt.f32 %v1654_v7  ;;  %v1655_v53 = vadd.f32 1e-05, %v1653_v36  ;;  %v1704_v33 = vmul.f32 0.0078125, %v1700_v27  ;;  %v1566_v58 = vadd.f32 1.0, %v2143_v24 }
 0x34c   : > { %v1517_v46 = vmul.f32 %v1515_v13, %v1509_v9  ;;  %v1703_v2 = vpop.xlane.xlu1 %1702 }
 0x34d   : > { %2152 = vrsqrt.f32 %v1655_v53  ;;  %v1706_v10 = vadd.f32 1e-05, %v1704_v33  ;;  %v1705_v14 = vmul.f32 0.0078125, %v1703_v2  ;;  %v2145_v51 = vpop.eup %2144  ;;  %v1568_v21 = vmul.f32 %v1566_v58, %v1560_v55 }
 0x34e   : > { %1519 = vst [vmem:[%s3294_s15 + $0x78] sm:$0xf] %v1517_v46  ;;  %v1606_v31 = vmul.f32 %v2145_v51, %v3223_v4 }
 0x34f   : > { %v2147_v5 = vpop.eup %2146  ;;  %2154 = vrsqrt.f32 %v1706_v10  ;;  %v1707_v18 = vadd.f32 1e-05, %v1705_v14  ;;  %1570 = vst [vmem:[%s3294_s15 + $0x30] sm:$0xff] %v1568_v21 }
 0x350   : > { %v1567_v35 = vadd.f32 1.0, %v2147_v5  ;;  %v1608_v1 = vmul.f32 %v3258_v15, %v1606_v31 }
 0x351   : > { %2156 = vrsqrt.f32 %v1707_v18 }
 0x352   : > { %v1569_v39 = vmul.f32 %v1567_v35, %v1561_v22  ;;  %v1610_v25 = vadd.f32 %v3264_v29, %v1608_v1 }
 0x354   : > { %1571 = vst [vmem:[%s3294_s15 + $0x80] sm:$0xf] %v1569_v39  ;;  %v1614_v45 = vmul.f32 0.70710677, %v1610_v25  ;;  %v1612_v28 = vmul.f32 0.5, %v1610_v25 }
 0x356   : > { %v2149_v41 = vpop.eup %2148  ;;  %2158 = verf.f32 %v1614_v45 }
 0x357   : > { %v1607_v50 = vmul.f32 %v2149_v41, %v3231_v19 }
 0x358   : > { %v2151_v43 = vpop.eup %2150 }
 0x359   : > { %v1609_v4 = vmul.f32 %v3258_v15, %v1607_v50  ;;  %v1658_v3 = vmul.f32 %v2151_v43, %v3236_v60 }
 0x35a   : > { %v2153_v0 = vpop.eup %2152 }
 0x35b   : > { %v1611_v61 = vadd.f32 %v3264_v29, %v1609_v4  ;;  %v1660_v6 = vmul.f32 %v3258_v15, %v1658_v3  ;;  %v1659_v47 = vmul.f32 %v2153_v0, %v3228_v38 }
 0x35c   : > { %v2155_v62 = vpop.eup %2154 }
 0x35d   : > { %v1615_v23 = vmul.f32 0.70710677, %v1611_v61  ;;  %v1662_v11 = vadd.f32 %v3264_v29, %v1660_v6  ;;  %v1661_v48 = vmul.f32 %v3258_v15, %v1659_v47  ;;  %v1710_v19 = vmul.f32 %v2155_v62, %v3245_v59 }
 0x35e   : > { %v2157_v49 = vpop.eup %2156  ;;  %v1613_v54 = vmul.f32 0.5, %v1611_v61 }
 0x35f   : > { %2160 = verf.f32 %v1615_v23  ;;  %v1666_v42 = vmul.f32 0.70710677, %v1662_v11  ;;  %v1663_v60 = vadd.f32 %v3264_v29, %v1661_v48  ;;  %v1712_v8 = vmul.f32 %v3258_v15, %v1710_v19 }
 0x360   : > { %v1711_v16 = vmul.f32 %v2157_v49, %v3239_v44  ;;  %v1664_v32 = vmul.f32 0.5, %v1662_v11 }
 0x361   : > { %2162 = verf.f32 %v1666_v42  ;;  %v1667_v38 = vmul.f32 0.70710677, %v1663_v60  ;;  %v1714_v34 = vadd.f32 %v3264_v29, %v1712_v8  ;;  %v1665_v20 = vmul.f32 0.5, %v1663_v60 }
 0x362   : > { %v1713_v52 = vmul.f32 %v3258_v15, %v1711_v16 }
 0x363   : > { %2164 = verf.f32 %v1667_v38  ;;  %v2159_v37 = vpop.eup %2158  ;;  %v1718_v12 = vmul.f32 0.70710677, %v1714_v34  ;;  %v1716_v13 = vmul.f32 0.5, %v1714_v34 }
 0x364   : > { %v1715_v59 = vadd.f32 %v3264_v29, %v1713_v52  ;;  %v1618_v26 = vadd.f32 1.0, %v2159_v37 }
 0x365   : > { %2166 = verf.f32 %v1718_v12 }
 0x366   : > { %v1719_v30 = vmul.f32 0.70710677, %v1715_v59  ;;  %v1620_v57 = vmul.f32 %v1618_v26, %v1612_v28  ;;  %v1717_v33 = vmul.f32 0.5, %v1715_v59 }
 0x368   : > { %2168 = verf.f32 %v1719_v30  ;;  %1622 = vst [vmem:[%s3294_s15 + $0x38] sm:$0xff] %v1620_v57 }
 0x36c   : > { %v2161_v44 = vpop.eup %2160 }
 0x36d   : > { %v1619_v40 = vadd.f32 1.0, %v2161_v44 }
 0x36e   : > { %v2163_v17 = vpop.eup %2162 }
 0x36f   : > { %v1621_v15 = vmul.f32 %v1619_v40, %v1613_v54  ;;  %v1670_v63 = vadd.f32 1.0, %v2163_v17 }
 0x370   : > { %v2165_v56 = vpop.eup %2164 }
 0x371   : > { %1623 = vst [vmem:[%s3294_s15 + $0x88] sm:$0xf] %v1621_v15  ;;  %v1672_v29 = vmul.f32 %v1670_v63, %v1664_v32  ;;  %v1671_v7 = vadd.f32 1.0, %v2165_v56 }
 0x372   : > { %v2167_v36 = vpop.eup %2166 }
 0x373   : > { %1674 = vst [vmem:[%s3294_s15 + $0x40] sm:$0xff] %v1672_v29  ;;  %v1673_v9 = vmul.f32 %v1671_v7, %v1665_v20  ;;  %v1722_v27 = vadd.f32 1.0, %v2167_v36 }
 0x375   : > { %v2169_v24 = vpop.eup %2168  ;;  %1675 = vst [vmem:[%s3294_s15 + $0x90] sm:$0xf] %v1673_v9  ;;  %v1724_v53 = vmul.f32 %v1722_v27, %v1716_v13 }
 0x376   : > { %v1723_v46 = vadd.f32 1.0, %v2169_v24 }
 0x377   : > { %1726 = vst [vmem:[%s3294_s15 + $0x48] sm:$0xff] %v1724_v53 }
 0x378   : > { %v1725_v55 = vmul.f32 %v1723_v46, %v1717_v33 }
 0x37a   : > { %1727 = vst [vmem:[%s3294_s15 + $0x98] sm:$0xf] %v1725_v55 }
 0x37b PF: > { %s19_s11 = sadd.s32 1, %s2192_s11   ;;  %s3428_s30 = smov %s2188_s10 }
 0x37c   : > { %p16_p5 = scmp.ge.s32.totalorder %s19_s11, 4   ;;  %s3429_s10 = smov %s3431_s12 }
 0x37e   :  { %18 = sbr.rel (!%p16_p5) target bundleno = 2 (0x2), region = 89 }

</bundles_post_ra>
